<compile_context>
chip_gen: v7x
topology: tpu7x:2x2x1
jax: 0.10.0
libtpu: 0.0.40
codegen_flags: <defaults>
</compile_context>

<pallas_src>
import functools

import jax
import jax.numpy as jnp
from jax import lax
from jax.experimental import pallas as pl
from jax.experimental.pallas import tpu as pltpu


def _round_up(x, m):
    return (x + m - 1) // m * m


# ----------------------------------------------------------------------------
# Pallas kernel: one (batch tile, time chunk) grid step.
# LSTM state (h, c, running max) persists in VMEM scratch across time chunks.
# ----------------------------------------------------------------------------
def blstm_text_kernel(
    xf_ref,      # (Tc, Bt, D)   bf16  forward-direction time window of x
    xb_ref,      # (Tc, Bt, D)   bf16  mirrored window (backward direction)
    wxf_ref,     # (D, 4*Hp)     bf16  input->gates weight, forward
    wxb_ref,     # (D, 4*Hp)     bf16  input->gates weight, backward
    bf_ref,      # (1, 4*Hp)     f32   combined bias (b_ih + b_hh), forward
    bb_ref,      # (1, 4*Hp)     f32   combined bias, backward
    whf_ref,     # (Hp, 4*Hp)    bf16  hidden->gates weight, forward
    whb_ref,     # (Hp, 4*Hp)    bf16  hidden->gates weight, backward
    fcwf_ref,    # (Hp, Cp)      bf16  classifier weight, forward half
    fcwb_ref,    # (Hp, Cp)      bf16  classifier weight, backward half
    fcb_ref,     # (1, Cp)       f32   classifier bias
    out_ref,     # (Bt, Cp)      f32   logits tile (written at last chunk)
    xpf_ref,     # (Tc*Bt, 4*Hp) f32   scratch: x-projection, forward window
    xpb_ref,     # (Tc*Bt, 4*Hp) f32   scratch: x-projection, backward window
    hf_ref, hb_ref,              # (Bt, Hp) f32 scratch: hidden state
    cf_ref, cb_ref,              # (Bt, Hp) f32 scratch: cell state
    mf_ref, mb_ref,              # (Bt, Hp) f32 scratch: running temporal max
    *,
    hidden_pad,
    unroll,
):
    Hp = hidden_pad
    tc, bt, d = xf_ref.shape
    k = pl.program_id(1)

    # -------- Chunk 0: initialize the persistent recurrence state. -----------
    @pl.when(k == 0)
    def _init():
        hf_ref[...] = jnp.zeros_like(hf_ref)
        hb_ref[...] = jnp.zeros_like(hb_ref)
        cf_ref[...] = jnp.zeros_like(cf_ref)
        cb_ref[...] = jnp.zeros_like(cb_ref)
        neg = jnp.full(mf_ref.shape, jnp.finfo(jnp.float32).min, jnp.float32)
        mf_ref[...] = neg
        mb_ref[...] = neg

    # -------- Chunk prologue: one MXU matmul per direction (M = Tc*Bt), ------
    # -------- biases folded in, f32 accumulation / storage.            ------
    xpf_ref[...] = (
        jnp.dot(xf_ref[...].reshape(tc * bt, d), wxf_ref[...],
                preferred_element_type=jnp.float32)
        + bf_ref[...]
    )
    xpb_ref[...] = (
        jnp.dot(xb_ref[...].reshape(tc * bt, d), wxb_ref[...],
                preferred_element_type=jnp.float32)
        + bb_ref[...]
    )

    def gate_math(gates, c_ref, m_ref):
        # PyTorch gate order i, f, g, o; each gate is a 128-lane-aligned block.
        i_g = jax.nn.sigmoid(gates[:, 0 * Hp:1 * Hp])
        f_g = jax.nn.sigmoid(gates[:, 1 * Hp:2 * Hp])
        g_g = jnp.tanh(gates[:, 2 * Hp:3 * Hp])
        o_g = jax.nn.sigmoid(gates[:, 3 * Hp:4 * Hp])
        c_new = f_g * c_ref[...] + i_g * g_g     # cell state RMW through VMEM
        c_ref[...] = c_new
        h_new = o_g * jnp.tanh(c_new)
        m_ref[...] = jnp.maximum(m_ref[...], h_new)   # max-pool RMW (no carry)
        return h_new

    def step(s, carry):
        h_f, h_b = carry
        row_f = pl.multiple_of(s * bt, bt)             # local time s (forward)
        row_b = pl.multiple_of((tc - 1 - s) * bt, bt)  # mirrored local time
        xg_f = xpf_ref[pl.ds(row_f, bt), :]            # (Bt, 4*Hp) f32
        xg_b = xpb_ref[pl.ds(row_b, bt), :]
        # Two dense per-direction dots (no zero-block MACs); weights streamed
        # straight from their pipelined VMEM buffers (not hoisted).
        hg_f = jnp.dot(h_f.astype(jnp.bfloat16), whf_ref[...],
                       preferred_element_type=jnp.float32)
        hg_b = jnp.dot(h_b.astype(jnp.bfloat16), whb_ref[...],
                       preferred_element_type=jnp.float32)
        h_f = gate_math(xg_f + hg_f, cf_ref, mf_ref)
        h_b = gate_math(xg_b + hg_b, cb_ref, mb_ref)
        return h_f, h_b

    h_f, h_b = lax.fori_loop(0, tc, step, (hf_ref[...], hb_ref[...]),
                             unroll=unroll)
    hf_ref[...] = h_f
    hb_ref[...] = h_b

    # -------- Last chunk: pooled features -> classifier (no concat). ---------
    @pl.when(k == pl.num_programs(1) - 1)
    def _final():
        out_ref[...] = (
            jnp.dot(mf_ref[...].astype(jnp.bfloat16), fcwf_ref[...],
                    preferred_element_type=jnp.float32)
            + jnp.dot(mb_ref[...].astype(jnp.bfloat16), fcwb_ref[...],
                      preferred_element_type=jnp.float32)
            + fcb_ref[...]
        )


# ----------------------------------------------------------------------------
# Weight packing / padding.
# ----------------------------------------------------------------------------
def _pad_gate_cols(w, H, Hp):
    """(rows, 4H) -> (rows, 4Hp): pad each PyTorch gate block (i,f,g,o) to Hp lanes."""
    parts = []
    for g in range(4):
        blk = w[:, g * H:(g + 1) * H]
        parts.append(jnp.pad(blk, ((0, 0), (0, Hp - H))))
    return jnp.concatenate(parts, axis=1)


def _prepare_kernel_params(params, *, H, Hp, C, Cp):
    f32, bf16 = jnp.float32, jnp.bfloat16

    wxf = _pad_gate_cols(params["w_ih_f"].astype(f32), H, Hp)
    wxb = _pad_gate_cols(params["w_ih_b"].astype(f32), H, Hp)
    bf = _pad_gate_cols(params["b_f"].astype(f32), H, Hp)
    bb = _pad_gate_cols(params["b_b"].astype(f32), H, Hp)

    # Per-direction dense hidden->gates weights (rows padded H -> Hp with zeros).
    whf = jnp.zeros((Hp, 4 * Hp), f32).at[:H, :].set(
        _pad_gate_cols(params["w_hh_f"].astype(f32), H, Hp))
    whb = jnp.zeros((Hp, 4 * Hp), f32).at[:H, :].set(
        _pad_gate_cols(params["w_hh_b"].astype(f32), H, Hp))

    # Classifier split into fwd/bwd halves (no in-kernel concat), lane padded.
    fc_w = params["fc_w"].astype(f32)                     # (2H, C)
    fcwf = jnp.zeros((Hp, Cp), f32).at[:H, :C].set(fc_w[:H])
    fcwb = jnp.zeros((Hp, Cp), f32).at[:H, :C].set(fc_w[H:])
    fcb = jnp.zeros((1, Cp), f32).at[:, :C].set(params["fc_b"].astype(f32))

    return dict(
        wxf=wxf.astype(bf16), wxb=wxb.astype(bf16), bf=bf, bb=bb,
        whf=whf.astype(bf16), whb=whb.astype(bf16),
        fcwf=fcwf.astype(bf16), fcwb=fcwb.astype(bf16), fcb=fcb)


# ----------------------------------------------------------------------------
# Wrapper: embedding lookup (glue), padding, VMEM budgeting, pallas_call.
# ----------------------------------------------------------------------------
@jax.jit
def my_blstm_text_forward(words, params):
    """words: (B, T) int32 token ids. Returns logits (B, C) float32."""
    embed = params["embed"]                               # (V, D)
    B, T = words.shape
    D = embed.shape[1]
    H = params["w_hh_f"].shape[0]
    C = params["fc_w"].shape[1]

    Hp = _round_up(H, 128)                                # lane-aligned gate blocks
    Cp = _round_up(C, 128)                                # lane-dense output tile
    G = 4 * Hp

    # Batch tiling: pad to the bf16 sublane pack (16).  One tile up to 128 rows
    # (larger tiles blow the vreg file in the recurrence); beyond that split
    # across a "parallel" grid axis (uses both TensorCores on v7x).
    B_pad = _round_up(B, 16)
    if B_pad <= 128:
        B_TILE = B_pad
    else:
        B_TILE = 128
        B_pad = _round_up(B, 128)
    n_b = B_pad // B_TILE

    # ---- Generation-aware VMEM budget (v7x: 64 MiB physical; v5e/v6e: 128). --
    try:
        cap = int(getattr(pltpu.get_tpu_info(), "vmem_capacity_bytes",
                          64 * 1024 * 1024))
    except Exception:  # pragma: no cover - conservative fallback
        cap = 64 * 1024 * 1024
    usable = cap * 7 // 8

    # Fixed footprint; the x2 on weights accounts for Pallas's default input
    # double-buffering of the constant-index weight blocks.
    weight_bytes = 2 * (2 * D * G * 2 + 2 * G * 4 + 2 * Hp * G * 2
                        + 2 * Hp * Cp * 2 + Cp * 4)
    state_bytes = 6 * B_TILE * Hp * 4
    out_bytes = 2 * B_TILE * Cp * 4
    fixed_bytes = weight_bytes + state_bytes + out_bytes

    # Time-chunk length: bounds xp scratch + the streamed x window independent
    # of T.  Per time step: 2 directions x double-buffered bf16 x rows + f32 xp.
    per_step_bytes = 2 * (2 * B_TILE * D * 2) + 2 * (B_TILE * G * 4)
    chunk_budget = max(usable * 3 // 4 - fixed_bytes, per_step_bytes)
    Tc = min(T, max(1, chunk_budget // per_step_bytes))
    while T % Tc != 0:                                    # Tc must divide T
        Tc -= 1
    n_chunks = T // Tc
    unroll = max(u for u in (8, 4, 2, 1) if Tc % u == 0)  # partial unroll

    needed = fixed_bytes + Tc * per_step_bytes
    assert needed <= usable, (
        f"BLSTM kernel VMEM footprint {needed} B exceeds usable VMEM {usable} B")
    vmem_limit = int(min(usable, max(needed + needed // 4, 16 * 1024 * 1024)))

    # Embedding lookup stays in XLA; x keeps its natural (T, B, D) time-major
    # layout -- no wrapper-side transpose/copy of the activations (the windowed
    # access is expressed purely by BlockSpec index_maps below).
    # TODO(synk): move the embedding gather in-kernel (scalar-prefetch token ids
    # + DMA row gather from an HBM-resident table) to skip this HBM round trip.
    x = jnp.take(embed, words.T, axis=0).astype(jnp.bfloat16)   # (T, B, D)
    x = jnp.pad(x, ((0, 0), (0, B_pad - B), (0, 0)))            # (T, B_pad, D)

    kp = _prepare_kernel_params(params, H=H, Hp=Hp, C=C, Cp=Cp)

    # Advisory cost estimate so XLA schedules the surrounding gather sensibly.
    flops = (2 * T * B_pad * D * 2 * G          # x-projection, both directions
             + 2 * T * B_pad * Hp * 2 * G       # recurrent matmuls
             + 2 * B_pad * 2 * Hp * Cp)         # classifier
    transcendentals = 10 * T * B_pad * Hp       # 5 sigmoid/tanh per dir per step
    bytes_accessed = (2 * T * B_pad * D * 2     # x read twice (fwd + bwd views)
                      + weight_bytes // 2 + B_pad * Cp * 4)
    cost = pl.CostEstimate(flops=flops, transcendentals=transcendentals,
                           bytes_accessed=bytes_accessed)

    kernel = functools.partial(blstm_text_kernel, hidden_pad=Hp, unroll=unroll)
    wconst = lambda i, k: (0, 0)

    out = pl.pallas_call(
        kernel,
        out_shape=jax.ShapeDtypeStruct((B_pad, Cp), jnp.float32),
        grid=(n_b, n_chunks),
        in_specs=[
            # forward-direction time window
            pl.BlockSpec((Tc, B_TILE, D), lambda i, k: (k, i, 0)),
            # mirrored window for the backward direction (same array)
            pl.BlockSpec((Tc, B_TILE, D),
                         lambda i, k, n=n_chunks: (n - 1 - k, i, 0)),
            pl.BlockSpec((D, G), wconst),    # wxf
            pl.BlockSpec((D, G), wconst),    # wxb
            pl.BlockSpec((1, G), wconst),    # bf
            pl.BlockSpec((1, G), wconst),    # bb
            pl.BlockSpec((Hp, G), wconst),   # whf
            pl.BlockSpec((Hp, G), wconst),   # whb
            pl.BlockSpec((Hp, Cp), wconst),  # fcwf
            pl.BlockSpec((Hp, Cp), wconst),  # fcwb
            pl.BlockSpec((1, Cp), wconst),   # fcb
        ],
        out_specs=pl.BlockSpec((B_TILE, Cp), lambda i, k: (i, 0)),
        scratch_shapes=[
            pltpu.VMEM((Tc * B_TILE, G), jnp.float32),   # xpf
            pltpu.VMEM((Tc * B_TILE, G), jnp.float32),   # xpb
            pltpu.VMEM((B_TILE, Hp), jnp.float32),       # h_f
            pltpu.VMEM((B_TILE, Hp), jnp.float32),       # h_b
            pltpu.VMEM((B_TILE, Hp), jnp.float32),       # c_f
            pltpu.VMEM((B_TILE, Hp), jnp.float32),       # c_b
            pltpu.VMEM((B_TILE, Hp), jnp.float32),       # m_f
            pltpu.VMEM((B_TILE, Hp), jnp.float32),       # m_b
        ],
        compiler_params=pltpu.CompilerParams(
            dimension_semantics=("parallel", "arbitrary"),
            vmem_limit_bytes=vmem_limit,
        ),
        cost_estimate=cost,
    )(x, x, kp["wxf"], kp["wxb"], kp["bf"], kp["bb"],
      kp["whf"], kp["whb"], kp["fcwf"], kp["fcwb"], kp["fcb"])

    return out[:B, :C]


# ----------------------------------------------------------------------------
# Pure-JAX reference (mirrors torch.nn.LSTM bidirectional forward).
# Matmul operands are rounded through bf16 exactly as the kernel does (f32
# accumulation / elementwise math), so the comparison checks kernel logic.
# ----------------------------------------------------------------------------
def reference_forward(words, params):
    def q(v):  # bf16 round-trip (matches the kernel's matmul-operand precision)
        return v.astype(jnp.bfloat16).astype(jnp.float32)

    embed = params["embed"]
    x = q(jnp.take(embed, words.T, axis=0).astype(jnp.float32))   # (T, B, D)
    T, B, _ = x.shape
    H = params["w_hh_f"].shape[0]

    def run_dir(xs, w_ih, w_hh, b):
        w_ih, w_hh = q(w_ih), q(w_hh)
        h = jnp.zeros((B, H), jnp.float32)
        c = jnp.zeros((B, H), jnp.float32)
        outs = []
        for t in range(xs.shape[0]):
            gates = xs[t] @ w_ih + q(h) @ w_hh + b
            i_g = jax.nn.sigmoid(gates[:, 0 * H:1 * H])
            f_g = jax.nn.sigmoid(gates[:, 1 * H:2 * H])
            g_g = jnp.tanh(gates[:, 2 * H:3 * H])
            o_g = jax.nn.sigmoid(gates[:, 3 * H:4 * H])
            c = f_g * c + i_g * g_g
            h = o_g * jnp.tanh(c)
            outs.append(h)
        return jnp.stack(outs)                                     # (T, B, H)

    out_f = run_dir(x, params["w_ih_f"], params["w_hh_f"], params["b_f"])
    out_b = run_dir(x[::-1], params["w_ih_b"], params["w_hh_b"], params["b_b"])[::-1]
    output = jnp.concatenate([out_f, out_b], axis=-1)              # (T, B, 2H)
    pooled = jnp.max(output, axis=0)                               # (B, 2H)
    return q(pooled) @ q(params["fc_w"]) + params["fc_b"]


# ----------------------------------------------------------------------------
# Deterministic parameter construction + demo run.
# ----------------------------------------------------------------------------
def make_params(key, vocab_size, embed_dim, hidden_size, class_num):
    V, D, H, C = vocab_size, embed_dim, hidden_size, class_num
    ks = jax.random.split(key, 12)
    s_lstm = 1.0 / jnp.sqrt(H)
    s_fc = 1.0 / jnp.sqrt(2 * H)

    def u(k, shape, s):
        return jax.random.uniform(k, shape, jnp.float32, -s, s)

    return {
        "embed": jax.random.normal(ks[0], (V, D), jnp.float32),
        # forward direction (weights stored as (in, 4H) = torch weight.T)
        "w_ih_f": u(ks[1], (D, 4 * H), s_lstm),
        "w_hh_f": u(ks[2], (H, 4 * H), s_lstm),
        "b_f": u(ks[3], (1, 4 * H), s_lstm) + u(ks[4], (1, 4 * H), s_lstm),
        # backward direction
        "w_ih_b": u(ks[5], (D, 4 * H), s_lstm),
        "w_hh_b": u(ks[6], (H, 4 * H), s_lstm),
        "b_b": u(ks[7], (1, 4 * H), s_lstm) + u(ks[8], (1, 4 * H), s_lstm),
        # classifier (stored as (2H, C) = torch weight.T)
        "fc_w": u(ks[9], (2 * H, C), s_fc),
        "fc_b": u(ks[10], (1, C), s_fc),
    }


if __name__ == "__main__":
    VOCAB = 50
    EMBED_DIM = 16
    HIDDEN = 32
    CLASSES = 4
    BATCH = 2
    SEQ = 8

    key = jax.random.PRNGKey(0)
    k_params, k_words = jax.random.split(key)
    params = make_params(k_params, VOCAB, EMBED_DIM, HIDDEN, CLASSES)
    words = jax.random.randint(k_words, (BATCH, SEQ), 0, VOCAB, dtype=jnp.int32)

    logits = my_blstm_text_forward(words, params)
    logits = jax.block_until_ready(logits)

    ref = reference_forward(words, params)
    assert logits.shape == (BATCH, CLASSES)
    assert jnp.allclose(logits, ref, atol=2e-3, rtol=2e-3), (
        f"mismatch: {logits} vs {ref}"
    )

    print("KERNEL_OK")
</pallas_src>

<mosaic_0001>
module attributes {stable_mosaic.version = 11 : i64} {
  func.func @blstm_text_kernel(%arg0: i32, %arg1: i32, %arg2: memref<8x16x16xbf16, #tpu.memory_space<vmem>>, %arg3: memref<8x16x16xbf16, #tpu.memory_space<vmem>>, %arg4: memref<16x512xbf16, #tpu.memory_space<vmem>>, %arg5: memref<16x512xbf16, #tpu.memory_space<vmem>>, %arg6: memref<1x512xf32, #tpu.memory_space<vmem>>, %arg7: memref<1x512xf32, #tpu.memory_space<vmem>>, %arg8: memref<128x512xbf16, #tpu.memory_space<vmem>>, %arg9: memref<128x512xbf16, #tpu.memory_space<vmem>>, %arg10: memref<128x128xbf16, #tpu.memory_space<vmem>>, %arg11: memref<128x128xbf16, #tpu.memory_space<vmem>>, %arg12: memref<1x128xf32, #tpu.memory_space<vmem>>, %arg13: memref<16x128xf32, #tpu.memory_space<vmem>>, %arg14: memref<128x512xf32, #tpu.memory_space<vmem>>, %arg15: memref<128x512xf32, #tpu.memory_space<vmem>>, %arg16: memref<16x128xf32, #tpu.memory_space<vmem>>, %arg17: memref<16x128xf32, #tpu.memory_space<vmem>>, %arg18: memref<16x128xf32, #tpu.memory_space<vmem>>, %arg19: memref<16x128xf32, #tpu.memory_space<vmem>>, %arg20: memref<16x128xf32, #tpu.memory_space<vmem>>, %arg21: memref<16x128xf32, #tpu.memory_space<vmem>>) attributes {dimension_semantics = [#tpu.dimension_semantics<parallel>, #tpu.dimension_semantics<arbitrary>], iteration_bounds = array<i64: 1, 1>, scalar_prefetch = 0 : i64, scratch_operands = 8 : i64, tpu.core_type = #tpu.core_type<tc>, window_params = [{transform_indices = @transform_0, window_bounds = array<i64: 8, 16, 16>}, {transform_indices = @transform_1, window_bounds = array<i64: 8, 16, 16>}, {pipeline_mode = #tpu.pipeline_mode<synchronous>, transform_indices = @transform_2, window_bounds = array<i64: 16, 512>}, {pipeline_mode = #tpu.pipeline_mode<synchronous>, transform_indices = @transform_3, window_bounds = array<i64: 16, 512>}, {pipeline_mode = #tpu.pipeline_mode<synchronous>, transform_indices = @transform_4, window_bounds = array<i64: 1, 512>}, {pipeline_mode = #tpu.pipeline_mode<synchronous>, transform_indices = @transform_5, window_bounds = array<i64: 1, 512>}, {pipeline_mode = #tpu.pipeline_mode<synchronous>, transform_indices = @transform_6, window_bounds = array<i64: 128, 512>}, {pipeline_mode = #tpu.pipeline_mode<synchronous>, transform_indices = @transform_7, window_bounds = array<i64: 128, 512>}, {pipeline_mode = #tpu.pipeline_mode<synchronous>, transform_indices = @transform_8, window_bounds = array<i64: 128, 128>}, {pipeline_mode = #tpu.pipeline_mode<synchronous>, transform_indices = @transform_9, window_bounds = array<i64: 128, 128>}, {pipeline_mode = #tpu.pipeline_mode<synchronous>, transform_indices = @transform_10, window_bounds = array<i64: 1, 128>}, {transform_indices = @transform_11, window_bounds = array<i64: 16, 128>}]} {
    %c0_i32 = arith.constant 0 : i32
    %0 = arith.cmpi eq, %arg1, %c0_i32 : i32
    %1 = arith.extui %0 : i1 to i32
    %c0_i32_0 = arith.constant 0 : i32
    %2 = arith.cmpi ne, %1, %c0_i32_0 : i32
    scf.if %2 {
      %cst_293 = arith.constant 0.000000e+00 : f32
      %642 = vector.broadcast %cst_293 : f32 to vector<16x128xf32>
      %c0_294 = arith.constant 0 : index
      %c0_295 = arith.constant 0 : index
      %643 = vector.load %arg16[%c0_294, %c0_295] : memref<16x128xf32, #tpu.memory_space<vmem>>, vector<16x128xf32>
      tpu.vector_store %arg16[%c0_294, %c0_295], %642 {strides = array<i32>} : memref<16x128xf32, #tpu.memory_space<vmem>>, vector<16x128xf32>,
      %cst_296 = arith.constant 0.000000e+00 : f32
      %644 = vector.broadcast %cst_296 : f32 to vector<16x128xf32>
      %c0_297 = arith.constant 0 : index
      %c0_298 = arith.constant 0 : index
      %645 = vector.load %arg17[%c0_297, %c0_298] : memref<16x128xf32, #tpu.memory_space<vmem>>, vector<16x128xf32>
      tpu.vector_store %arg17[%c0_297, %c0_298], %644 {strides = array<i32>} : memref<16x128xf32, #tpu.memory_space<vmem>>, vector<16x128xf32>,
      %cst_299 = arith.constant 0.000000e+00 : f32
      %646 = vector.broadcast %cst_299 : f32 to vector<16x128xf32>
      %c0_300 = arith.constant 0 : index
      %c0_301 = arith.constant 0 : index
      %647 = vector.load %arg18[%c0_300, %c0_301] : memref<16x128xf32, #tpu.memory_space<vmem>>, vector<16x128xf32>
      tpu.vector_store %arg18[%c0_300, %c0_301], %646 {strides = array<i32>} : memref<16x128xf32, #tpu.memory_space<vmem>>, vector<16x128xf32>,
      %cst_302 = arith.constant 0.000000e+00 : f32
      %648 = vector.broadcast %cst_302 : f32 to vector<16x128xf32>
      %c0_303 = arith.constant 0 : index
      %c0_304 = arith.constant 0 : index
      %649 = vector.load %arg19[%c0_303, %c0_304] : memref<16x128xf32, #tpu.memory_space<vmem>>, vector<16x128xf32>
      tpu.vector_store %arg19[%c0_303, %c0_304], %648 {strides = array<i32>} : memref<16x128xf32, #tpu.memory_space<vmem>>, vector<16x128xf32>,
      %cst_305 = arith.constant -3.40282347E+38 : f32
      %650 = vector.broadcast %cst_305 : f32 to vector<16x128xf32>
      %c0_306 = arith.constant 0 : index
      %c0_307 = arith.constant 0 : index
      %651 = vector.load %arg20[%c0_306, %c0_307] : memref<16x128xf32, #tpu.memory_space<vmem>>, vector<16x128xf32>
      tpu.vector_store %arg20[%c0_306, %c0_307], %650 {strides = array<i32>} : memref<16x128xf32, #tpu.memory_space<vmem>>, vector<16x128xf32>,
      %c0_308 = arith.constant 0 : index
      %c0_309 = arith.constant 0 : index
      %652 = vector.load %arg21[%c0_308, %c0_309] : memref<16x128xf32, #tpu.memory_space<vmem>>, vector<16x128xf32>
      tpu.vector_store %arg21[%c0_308, %c0_309], %650 {strides = array<i32>} : memref<16x128xf32, #tpu.memory_space<vmem>>, vector<16x128xf32>,
    } else {
    }
    %c0 = arith.constant 0 : index
    %c0_1 = arith.constant 0 : index
    %c0_2 = arith.constant 0 : index
    %3 = vector.load %arg2[%c0, %c0_1, %c0_2] : memref<8x16x16xbf16, #tpu.memory_space<vmem>>, vector<8x16x16xbf16>
    %4 = vector.shape_cast %3 : vector<8x16x16xbf16> to vector<128x16xbf16>
    %c0_3 = arith.constant 0 : index
    %c0_4 = arith.constant 0 : index
    %5 = vector.load %arg4[%c0_3, %c0_4] : memref<16x512xbf16, #tpu.memory_space<vmem>>, vector<16x512xbf16>
    %cst = arith.constant dense<0.000000e+00> : vector<128x512xf32>
    %6 = tpu.matmul %4, %5, %cst {dimension_numbers = #tpu.dot_dimension_numbers<[1], [0], [0], [1], [0, 0, 1, 1], [], []>} : vector<128x16xbf16>, vector<16x512xbf16>, vector<128x512xf32> -> vector<128x512xf32>
    %c0_5 = arith.constant 0 : index
    %c0_6 = arith.constant 0 : index
    %7 = vector.load %arg6[%c0_5, %c0_6] : memref<1x512xf32, #tpu.memory_space<vmem>>, vector<1x512xf32>
    %8 = vector.broadcast %7 : vector<1x512xf32> to vector<128x512xf32>
    %9 = arith.addf %6, %8 : vector<128x512xf32>
    %c0_7 = arith.constant 0 : index
    %c0_8 = arith.constant 0 : index
    %10 = vector.load %arg14[%c0_7, %c0_8] : memref<128x512xf32, #tpu.memory_space<vmem>>, vector<128x512xf32>
    tpu.vector_store %arg14[%c0_7, %c0_8], %9 {strides = array<i32>} : memref<128x512xf32, #tpu.memory_space<vmem>>, vector<128x512xf32>,
    %c0_9 = arith.constant 0 : index
    %c0_10 = arith.constant 0 : index
    %c0_11 = arith.constant 0 : index
    %11 = vector.load %arg3[%c0_9, %c0_10, %c0_11] : memref<8x16x16xbf16, #tpu.memory_space<vmem>>, vector<8x16x16xbf16>
    %12 = vector.shape_cast %11 : vector<8x16x16xbf16> to vector<128x16xbf16>
    %c0_12 = arith.constant 0 : index
    %c0_13 = arith.constant 0 : index
    %13 = vector.load %arg5[%c0_12, %c0_13] : memref<16x512xbf16, #tpu.memory_space<vmem>>, vector<16x512xbf16>
    %cst_14 = arith.constant dense<0.000000e+00> : vector<128x512xf32>
    %14 = tpu.matmul %12, %13, %cst_14 {dimension_numbers = #tpu.dot_dimension_numbers<[1], [0], [0], [1], [0, 0, 1, 1], [], []>} : vector<128x16xbf16>, vector<16x512xbf16>, vector<128x512xf32> -> vector<128x512xf32>
    %c0_15 = arith.constant 0 : index
    %c0_16 = arith.constant 0 : index
    %15 = vector.load %arg7[%c0_15, %c0_16] : memref<1x512xf32, #tpu.memory_space<vmem>>, vector<1x512xf32>
    %16 = vector.broadcast %15 : vector<1x512xf32> to vector<128x512xf32>
    %17 = arith.addf %14, %16 : vector<128x512xf32>
    %c0_17 = arith.constant 0 : index
    %c0_18 = arith.constant 0 : index
    %18 = vector.load %arg15[%c0_17, %c0_18] : memref<128x512xf32, #tpu.memory_space<vmem>>, vector<128x512xf32>
    tpu.vector_store %arg15[%c0_17, %c0_18], %17 {strides = array<i32>} : memref<128x512xf32, #tpu.memory_space<vmem>>, vector<128x512xf32>,
    %c0_19 = arith.constant 0 : index
    %c0_20 = arith.constant 0 : index
    %19 = vector.load %arg16[%c0_19, %c0_20] : memref<16x128xf32, #tpu.memory_space<vmem>>, vector<16x128xf32>
    %c0_21 = arith.constant 0 : index
    %c0_22 = arith.constant 0 : index
    %20 = vector.load %arg17[%c0_21, %c0_22] : memref<16x128xf32, #tpu.memory_space<vmem>>, vector<16x128xf32>
    %c0_i32_23 = arith.constant 0 : i32
    %c16_i32 = arith.constant 16 : i32
    %21 = arith.muli %c0_i32_23, %c16_i32 : i32
    %22 = tpu.assume_multiple %21, 16 : i32
    %c7_i32 = arith.constant 7 : i32
    %23 = arith.subi %c7_i32, %c0_i32_23 : i32
    %c16_i32_24 = arith.constant 16 : i32
    %24 = arith.muli %23, %c16_i32_24 : i32
    %25 = tpu.assume_multiple %24, 16 : i32
    %26 = arith.index_cast %22 : i32 to index
    %c0_25 = arith.constant 0 : index
    %27 = vector.load %arg14[%26, %c0_25] : memref<128x512xf32, #tpu.memory_space<vmem>>, vector<16x512xf32>
    %28 = arith.index_cast %25 : i32 to index
    %c0_26 = arith.constant 0 : index
    %29 = vector.load %arg15[%28, %c0_26] : memref<128x512xf32, #tpu.memory_space<vmem>>, vector<16x512xf32>
    %30 = arith.truncf %19 : vector<16x128xf32> to vector<16x128xbf16>
    %c0_27 = arith.constant 0 : index
    %c0_28 = arith.constant 0 : index
    %31 = vector.load %arg8[%c0_27, %c0_28] : memref<128x512xbf16, #tpu.memory_space<vmem>>, vector<128x512xbf16>
    %cst_29 = arith.constant dense<0.000000e+00> : vector<16x512xf32>
    %32 = tpu.matmul %30, %31, %cst_29 {dimension_numbers = #tpu.dot_dimension_numbers<[1], [0], [0], [1], [0, 0, 1, 1], [], []>} : vector<16x128xbf16>, vector<128x512xbf16>, vector<16x512xf32> -> vector<16x512xf32>
    %33 = arith.truncf %20 : vector<16x128xf32> to vector<16x128xbf16>
    %c0_30 = arith.constant 0 : index
    %c0_31 = arith.constant 0 : index
    %34 = vector.load %arg9[%c0_30, %c0_31] : memref<128x512xbf16, #tpu.memory_space<vmem>>, vector<128x512xbf16>
    %cst_32 = arith.constant dense<0.000000e+00> : vector<16x512xf32>
    %35 = tpu.matmul %33, %34, %cst_32 {dimension_numbers = #tpu.dot_dimension_numbers<[1], [0], [0], [1], [0, 0, 1, 1], [], []>} : vector<16x128xbf16>, vector<128x512xbf16>, vector<16x512xf32> -> vector<16x512xf32>
    %36 = arith.addf %27, %32 : vector<16x512xf32>
    %37 = vector.extract_strided_slice %36 {offsets = [0, 0], sizes = [16, 128], strides = [1, 1]} : vector<16x512xf32> to vector<16x128xf32>
    %38 = arith.negf %37 : vector<16x128xf32>
    %39 = math.exp %38 : vector<16x128xf32>
    %cst_33 = arith.constant 1.000000e+00 : f32
    %40 = vector.broadcast %cst_33 : f32 to vector<16x128xf32>
    %41 = arith.addf %40, %39 : vector<16x128xf32>
    %42 = arith.divf %40, %41 : vector<16x128xf32>
    %43 = vector.extract_strided_slice %36 {offsets = [0, 128], sizes = [16, 128], strides = [1, 1]} : vector<16x512xf32> to vector<16x128xf32>
    %44 = arith.negf %43 : vector<16x128xf32>
    %45 = math.exp %44 : vector<16x128xf32>
    %cst_34 = arith.constant 1.000000e+00 : f32
    %46 = vector.broadcast %cst_34 : f32 to vector<16x128xf32>
    %47 = arith.addf %46, %45 : vector<16x128xf32>
    %48 = arith.divf %46, %47 : vector<16x128xf32>
    %49 = vector.extract_strided_slice %36 {offsets = [0, 256], sizes = [16, 128], strides = [1, 1]} : vector<16x512xf32> to vector<16x128xf32>
    %50 = math.tanh %49 : vector<16x128xf32>
    %51 = vector.extract_strided_slice %36 {offsets = [0, 384], sizes = [16, 128], strides = [1, 1]} : vector<16x512xf32> to vector<16x128xf32>
    %52 = arith.negf %51 : vector<16x128xf32>
    %53 = math.exp %52 : vector<16x128xf32>
    %cst_35 = arith.constant 1.000000e+00 : f32
    %54 = vector.broadcast %cst_35 : f32 to vector<16x128xf32>
    %55 = arith.addf %54, %53 : vector<16x128xf32>
    %56 = arith.divf %54, %55 : vector<16x128xf32>
    %c0_36 = arith.constant 0 : index
    %c0_37 = arith.constant 0 : index
    %57 = vector.load %arg18[%c0_36, %c0_37] : memref<16x128xf32, #tpu.memory_space<vmem>>, vector<16x128xf32>
    %58 = arith.mulf %48, %57 : vector<16x128xf32>
    %59 = arith.mulf %42, %50 : vector<16x128xf32>
    %60 = arith.addf %58, %59 : vector<16x128xf32>
    %c0_38 = arith.constant 0 : index
    %c0_39 = arith.constant 0 : index
    %61 = vector.load %arg18[%c0_38, %c0_39] : memref<16x128xf32, #tpu.memory_space<vmem>>, vector<16x128xf32>
    tpu.vector_store %arg18[%c0_38, %c0_39], %60 {strides = array<i32>} : memref<16x128xf32, #tpu.memory_space<vmem>>, vector<16x128xf32>,
    %62 = math.tanh %60 : vector<16x128xf32>
    %63 = arith.mulf %56, %62 : vector<16x128xf32>
    %c0_40 = arith.constant 0 : index
    %c0_41 = arith.constant 0 : index
    %64 = vector.load %arg20[%c0_40, %c0_41] : memref<16x128xf32, #tpu.memory_space<vmem>>, vector<16x128xf32>
    %65 = arith.maximumf %64, %63 : vector<16x128xf32>
    %c0_42 = arith.constant 0 : index
    %c0_43 = arith.constant 0 : index
    %66 = vector.load %arg20[%c0_42, %c0_43] : memref<16x128xf32, #tpu.memory_space<vmem>>, vector<16x128xf32>
    tpu.vector_store %arg20[%c0_42, %c0_43], %65 {strides = array<i32>} : memref<16x128xf32, #tpu.memory_space<vmem>>, vector<16x128xf32>,
    %67 = arith.addf %29, %35 : vector<16x512xf32>
    %68 = vector.extract_strided_slice %67 {offsets = [0, 0], sizes = [16, 128], strides = [1, 1]} : vector<16x512xf32> to vector<16x128xf32>
    %69 = arith.negf %68 : vector<16x128xf32>
    %70 = math.exp %69 : vector<16x128xf32>
    %cst_44 = arith.constant 1.000000e+00 : f32
    %71 = vector.broadcast %cst_44 : f32 to vector<16x128xf32>
    %72 = arith.addf %71, %70 : vector<16x128xf32>
    %73 = arith.divf %71, %72 : vector<16x128xf32>
    %74 = vector.extract_strided_slice %67 {offsets = [0, 128], sizes = [16, 128], strides = [1, 1]} : vector<16x512xf32> to vector<16x128xf32>
    %75 = arith.negf %74 : vector<16x128xf32>
    %76 = math.exp %75 : vector<16x128xf32>
    %cst_45 = arith.constant 1.000000e+00 : f32
    %77 = vector.broadcast %cst_45 : f32 to vector<16x128xf32>
    %78 = arith.addf %77, %76 : vector<16x128xf32>
    %79 = arith.divf %77, %78 : vector<16x128xf32>
    %80 = vector.extract_strided_slice %67 {offsets = [0, 256], sizes = [16, 128], strides = [1, 1]} : vector<16x512xf32> to vector<16x128xf32>
    %81 = math.tanh %80 : vector<16x128xf32>
    %82 = vector.extract_strided_slice %67 {offsets = [0, 384], sizes = [16, 128], strides = [1, 1]} : vector<16x512xf32> to vector<16x128xf32>
    %83 = arith.negf %82 : vector<16x128xf32>
    %84 = math.exp %83 : vector<16x128xf32>
    %cst_46 = arith.constant 1.000000e+00 : f32
    %85 = vector.broadcast %cst_46 : f32 to vector<16x128xf32>
    %86 = arith.addf %85, %84 : vector<16x128xf32>
    %87 = arith.divf %85, %86 : vector<16x128xf32>
    %c0_47 = arith.constant 0 : index
    %c0_48 = arith.constant 0 : index
    %88 = vector.load %arg19[%c0_47, %c0_48] : memref<16x128xf32, #tpu.memory_space<vmem>>, vector<16x128xf32>
    %89 = arith.mulf %79, %88 : vector<16x128xf32>
    %90 = arith.mulf %73, %81 : vector<16x128xf32>
    %91 = arith.addf %89, %90 : vector<16x128xf32>
    %c0_49 = arith.constant 0 : index
    %c0_50 = arith.constant 0 : index
    %92 = vector.load %arg19[%c0_49, %c0_50] : memref<16x128xf32, #tpu.memory_space<vmem>>, vector<16x128xf32>
    tpu.vector_store %arg19[%c0_49, %c0_50], %91 {strides = array<i32>} : memref<16x128xf32, #tpu.memory_space<vmem>>, vector<16x128xf32>,
    %93 = math.tanh %91 : vector<16x128xf32>
    %94 = arith.mulf %87, %93 : vector<16x128xf32>
    %c0_51 = arith.constant 0 : index
    %c0_52 = arith.constant 0 : index
    %95 = vector.load %arg21[%c0_51, %c0_52] : memref<16x128xf32, #tpu.memory_space<vmem>>, vector<16x128xf32>
    %96 = arith.maximumf %95, %94 : vector<16x128xf32>
    %c0_53 = arith.constant 0 : index
    %c0_54 = arith.constant 0 : index
    %97 = vector.load %arg21[%c0_53, %c0_54] : memref<16x128xf32, #tpu.memory_space<vmem>>, vector<16x128xf32>
    tpu.vector_store %arg21[%c0_53, %c0_54], %96 {strides = array<i32>} : memref<16x128xf32, #tpu.memory_space<vmem>>, vector<16x128xf32>,
    %c1_i32 = arith.constant 1 : i32
    %c16_i32_55 = arith.constant 16 : i32
    %98 = arith.muli %c1_i32, %c16_i32_55 : i32
    %99 = tpu.assume_multiple %98, 16 : i32
    %c7_i32_56 = arith.constant 7 : i32
    %100 = arith.subi %c7_i32_56, %c1_i32 : i32
    %c16_i32_57 = arith.constant 16 : i32
    %101 = arith.muli %100, %c16_i32_57 : i32
    %102 = tpu.assume_multiple %101, 16 : i32
    %103 = arith.index_cast %99 : i32 to index
    %c0_58 = arith.constant 0 : index
    %104 = vector.load %arg14[%103, %c0_58] : memref<128x512xf32, #tpu.memory_space<vmem>>, vector<16x512xf32>
    %105 = arith.index_cast %102 : i32 to index
    %c0_59 = arith.constant 0 : index
    %106 = vector.load %arg15[%105, %c0_59] : memref<128x512xf32, #tpu.memory_space<vmem>>, vector<16x512xf32>
    %107 = arith.truncf %63 : vector<16x128xf32> to vector<16x128xbf16>
    %c0_60 = arith.constant 0 : index
    %c0_61 = arith.constant 0 : index
    %108 = vector.load %arg8[%c0_60, %c0_61] : memref<128x512xbf16, #tpu.memory_space<vmem>>, vector<128x512xbf16>
    %cst_62 = arith.constant dense<0.000000e+00> : vector<16x512xf32>
    %109 = tpu.matmul %107, %108, %cst_62 {dimension_numbers = #tpu.dot_dimension_numbers<[1], [0], [0], [1], [0, 0, 1, 1], [], []>} : vector<16x128xbf16>, vector<128x512xbf16>, vector<16x512xf32> -> vector<16x512xf32>
    %110 = arith.truncf %94 : vector<16x128xf32> to vector<16x128xbf16>
    %c0_63 = arith.constant 0 : index
    %c0_64 = arith.constant 0 : index
    %111 = vector.load %arg9[%c0_63, %c0_64] : memref<128x512xbf16, #tpu.memory_space<vmem>>, vector<128x512xbf16>
    %cst_65 = arith.constant dense<0.000000e+00> : vector<16x512xf32>
    %112 = tpu.matmul %110, %111, %cst_65 {dimension_numbers = #tpu.dot_dimension_numbers<[1], [0], [0], [1], [0, 0, 1, 1], [], []>} : vector<16x128xbf16>, vector<128x512xbf16>, vector<16x512xf32> -> vector<16x512xf32>
    %113 = arith.addf %104, %109 : vector<16x512xf32>
    %114 = vector.extract_strided_slice %113 {offsets = [0, 0], sizes = [16, 128], strides = [1, 1]} : vector<16x512xf32> to vector<16x128xf32>
    %115 = arith.negf %114 : vector<16x128xf32>
    %116 = math.exp %115 : vector<16x128xf32>
    %cst_66 = arith.constant 1.000000e+00 : f32
    %117 = vector.broadcast %cst_66 : f32 to vector<16x128xf32>
    %118 = arith.addf %117, %116 : vector<16x128xf32>
    %119 = arith.divf %117, %118 : vector<16x128xf32>
    %120 = vector.extract_strided_slice %113 {offsets = [0, 128], sizes = [16, 128], strides = [1, 1]} : vector<16x512xf32> to vector<16x128xf32>
    %121 = arith.negf %120 : vector<16x128xf32>
    %122 = math.exp %121 : vector<16x128xf32>
    %cst_67 = arith.constant 1.000000e+00 : f32
    %123 = vector.broadcast %cst_67 : f32 to vector<16x128xf32>
    %124 = arith.addf %123, %122 : vector<16x128xf32>
    %125 = arith.divf %123, %124 : vector<16x128xf32>
    %126 = vector.extract_strided_slice %113 {offsets = [0, 256], sizes = [16, 128], strides = [1, 1]} : vector<16x512xf32> to vector<16x128xf32>
    %127 = math.tanh %126 : vector<16x128xf32>
    %128 = vector.extract_strided_slice %113 {offsets = [0, 384], sizes = [16, 128], strides = [1, 1]} : vector<16x512xf32> to vector<16x128xf32>
    %129 = arith.negf %128 : vector<16x128xf32>
    %130 = math.exp %129 : vector<16x128xf32>
    %cst_68 = arith.constant 1.000000e+00 : f32
    %131 = vector.broadcast %cst_68 : f32 to vector<16x128xf32>
    %132 = arith.addf %131, %130 : vector<16x128xf32>
    %133 = arith.divf %131, %132 : vector<16x128xf32>
    %c0_69 = arith.constant 0 : index
    %c0_70 = arith.constant 0 : index
    %134 = vector.load %arg18[%c0_69, %c0_70] : memref<16x128xf32, #tpu.memory_space<vmem>>, vector<16x128xf32>
    %135 = arith.mulf %125, %134 : vector<16x128xf32>
    %136 = arith.mulf %119, %127 : vector<16x128xf32>
    %137 = arith.addf %135, %136 : vector<16x128xf32>
    %c0_71 = arith.constant 0 : index
    %c0_72 = arith.constant 0 : index
    %138 = vector.load %arg18[%c0_71, %c0_72] : memref<16x128xf32, #tpu.memory_space<vmem>>, vector<16x128xf32>
    tpu.vector_store %arg18[%c0_71, %c0_72], %137 {strides = array<i32>} : memref<16x128xf32, #tpu.memory_space<vmem>>, vector<16x128xf32>,
    %139 = math.tanh %137 : vector<16x128xf32>
    %140 = arith.mulf %133, %139 : vector<16x128xf32>
    %c0_73 = arith.constant 0 : index
    %c0_74 = arith.constant 0 : index
    %141 = vector.load %arg20[%c0_73, %c0_74] : memref<16x128xf32, #tpu.memory_space<vmem>>, vector<16x128xf32>
    %142 = arith.maximumf %141, %140 : vector<16x128xf32>
    %c0_75 = arith.constant 0 : index
    %c0_76 = arith.constant 0 : index
    %143 = vector.load %arg20[%c0_75, %c0_76] : memref<16x128xf32, #tpu.memory_space<vmem>>, vector<16x128xf32>
    tpu.vector_store %arg20[%c0_75, %c0_76], %142 {strides = array<i32>} : memref<16x128xf32, #tpu.memory_space<vmem>>, vector<16x128xf32>,
    %144 = arith.addf %106, %112 : vector<16x512xf32>
    %145 = vector.extract_strided_slice %144 {offsets = [0, 0], sizes = [16, 128], strides = [1, 1]} : vector<16x512xf32> to vector<16x128xf32>
    %146 = arith.negf %145 : vector<16x128xf32>
    %147 = math.exp %146 : vector<16x128xf32>
    %cst_77 = arith.constant 1.000000e+00 : f32
    %148 = vector.broadcast %cst_77 : f32 to vector<16x128xf32>
    %149 = arith.addf %148, %147 : vector<16x128xf32>
    %150 = arith.divf %148, %149 : vector<16x128xf32>
    %151 = vector.extract_strided_slice %144 {offsets = [0, 128], sizes = [16, 128], strides = [1, 1]} : vector<16x512xf32> to vector<16x128xf32>
    %152 = arith.negf %151 : vector<16x128xf32>
    %153 = math.exp %152 : vector<16x128xf32>
    %cst_78 = arith.constant 1.000000e+00 : f32
    %154 = vector.broadcast %cst_78 : f32 to vector<16x128xf32>
    %155 = arith.addf %154, %153 : vector<16x128xf32>
    %156 = arith.divf %154, %155 : vector<16x128xf32>
    %157 = vector.extract_strided_slice %144 {offsets = [0, 256], sizes = [16, 128], strides = [1, 1]} : vector<16x512xf32> to vector<16x128xf32>
    %158 = math.tanh %157 : vector<16x128xf32>
    %159 = vector.extract_strided_slice %144 {offsets = [0, 384], sizes = [16, 128], strides = [1, 1]} : vector<16x512xf32> to vector<16x128xf32>
    %160 = arith.negf %159 : vector<16x128xf32>
    %161 = math.exp %160 : vector<16x128xf32>
    %cst_79 = arith.constant 1.000000e+00 : f32
    %162 = vector.broadcast %cst_79 : f32 to vector<16x128xf32>
    %163 = arith.addf %162, %161 : vector<16x128xf32>
    %164 = arith.divf %162, %163 : vector<16x128xf32>
    %c0_80 = arith.constant 0 : index
    %c0_81 = arith.constant 0 : index
    %165 = vector.load %arg19[%c0_80, %c0_81] : memref<16x128xf32, #tpu.memory_space<vmem>>, vector<16x128xf32>
    %166 = arith.mulf %156, %165 : vector<16x128xf32>
    %167 = arith.mulf %150, %158 : vector<16x128xf32>
    %168 = arith.addf %166, %167 : vector<16x128xf32>
    %c0_82 = arith.constant 0 : index
    %c0_83 = arith.constant 0 : index
    %169 = vector.load %arg19[%c0_82, %c0_83] : memref<16x128xf32, #tpu.memory_space<vmem>>, vector<16x128xf32>
    tpu.vector_store %arg19[%c0_82, %c0_83], %168 {strides = array<i32>} : memref<16x128xf32, #tpu.memory_space<vmem>>, vector<16x128xf32>,
    %170 = math.tanh %168 : vector<16x128xf32>
    %171 = arith.mulf %164, %170 : vector<16x128xf32>
    %c0_84 = arith.constant 0 : index
    %c0_85 = arith.constant 0 : index
    %172 = vector.load %arg21[%c0_84, %c0_85] : memref<16x128xf32, #tpu.memory_space<vmem>>, vector<16x128xf32>
    %173 = arith.maximumf %172, %171 : vector<16x128xf32>
    %c0_86 = arith.constant 0 : index
    %c0_87 = arith.constant 0 : index
    %174 = vector.load %arg21[%c0_86, %c0_87] : memref<16x128xf32, #tpu.memory_space<vmem>>, vector<16x128xf32>
    tpu.vector_store %arg21[%c0_86, %c0_87], %173 {strides = array<i32>} : memref<16x128xf32, #tpu.memory_space<vmem>>, vector<16x128xf32>,
    %c2_i32 = arith.constant 2 : i32
    %c16_i32_88 = arith.constant 16 : i32
    %175 = arith.muli %c2_i32, %c16_i32_88 : i32
    %176 = tpu.assume_multiple %175, 16 : i32
    %c7_i32_89 = arith.constant 7 : i32
    %177 = arith.subi %c7_i32_89, %c2_i32 : i32
    %c16_i32_90 = arith.constant 16 : i32
    %178 = arith.muli %177, %c16_i32_90 : i32
    %179 = tpu.assume_multiple %178, 16 : i32
    %180 = arith.index_cast %176 : i32 to index
    %c0_91 = arith.constant 0 : index
    %181 = vector.load %arg14[%180, %c0_91] : memref<128x512xf32, #tpu.memory_space<vmem>>, vector<16x512xf32>
    %182 = arith.index_cast %179 : i32 to index
    %c0_92 = arith.constant 0 : index
    %183 = vector.load %arg15[%182, %c0_92] : memref<128x512xf32, #tpu.memory_space<vmem>>, vector<16x512xf32>
    %184 = arith.truncf %140 : vector<16x128xf32> to vector<16x128xbf16>
    %c0_93 = arith.constant 0 : index
    %c0_94 = arith.constant 0 : index
    %185 = vector.load %arg8[%c0_93, %c0_94] : memref<128x512xbf16, #tpu.memory_space<vmem>>, vector<128x512xbf16>
    %cst_95 = arith.constant dense<0.000000e+00> : vector<16x512xf32>
    %186 = tpu.matmul %184, %185, %cst_95 {dimension_numbers = #tpu.dot_dimension_numbers<[1], [0], [0], [1], [0, 0, 1, 1], [], []>} : vector<16x128xbf16>, vector<128x512xbf16>, vector<16x512xf32> -> vector<16x512xf32>
    %187 = arith.truncf %171 : vector<16x128xf32> to vector<16x128xbf16>
    %c0_96 = arith.constant 0 : index
    %c0_97 = arith.constant 0 : index
    %188 = vector.load %arg9[%c0_96, %c0_97] : memref<128x512xbf16, #tpu.memory_space<vmem>>, vector<128x512xbf16>
    %cst_98 = arith.constant dense<0.000000e+00> : vector<16x512xf32>
    %189 = tpu.matmul %187, %188, %cst_98 {dimension_numbers = #tpu.dot_dimension_numbers<[1], [0], [0], [1], [0, 0, 1, 1], [], []>} : vector<16x128xbf16>, vector<128x512xbf16>, vector<16x512xf32> -> vector<16x512xf32>
    %190 = arith.addf %181, %186 : vector<16x512xf32>
    %191 = vector.extract_strided_slice %190 {offsets = [0, 0], sizes = [16, 128], strides = [1, 1]} : vector<16x512xf32> to vector<16x128xf32>
    %192 = arith.negf %191 : vector<16x128xf32>
    %193 = math.exp %192 : vector<16x128xf32>
    %cst_99 = arith.constant 1.000000e+00 : f32
    %194 = vector.broadcast %cst_99 : f32 to vector<16x128xf32>
    %195 = arith.addf %194, %193 : vector<16x128xf32>
    %196 = arith.divf %194, %195 : vector<16x128xf32>
    %197 = vector.extract_strided_slice %190 {offsets = [0, 128], sizes = [16, 128], strides = [1, 1]} : vector<16x512xf32> to vector<16x128xf32>
    %198 = arith.negf %197 : vector<16x128xf32>
    %199 = math.exp %198 : vector<16x128xf32>
    %cst_100 = arith.constant 1.000000e+00 : f32
    %200 = vector.broadcast %cst_100 : f32 to vector<16x128xf32>
    %201 = arith.addf %200, %199 : vector<16x128xf32>
    %202 = arith.divf %200, %201 : vector<16x128xf32>
    %203 = vector.extract_strided_slice %190 {offsets = [0, 256], sizes = [16, 128], strides = [1, 1]} : vector<16x512xf32> to vector<16x128xf32>
    %204 = math.tanh %203 : vector<16x128xf32>
    %205 = vector.extract_strided_slice %190 {offsets = [0, 384], sizes = [16, 128], strides = [1, 1]} : vector<16x512xf32> to vector<16x128xf32>
    %206 = arith.negf %205 : vector<16x128xf32>
    %207 = math.exp %206 : vector<16x128xf32>
    %cst_101 = arith.constant 1.000000e+00 : f32
    %208 = vector.broadcast %cst_101 : f32 to vector<16x128xf32>
    %209 = arith.addf %208, %207 : vector<16x128xf32>
    %210 = arith.divf %208, %209 : vector<16x128xf32>
    %c0_102 = arith.constant 0 : index
    %c0_103 = arith.constant 0 : index
    %211 = vector.load %arg18[%c0_102, %c0_103] : memref<16x128xf32, #tpu.memory_space<vmem>>, vector<16x128xf32>
    %212 = arith.mulf %202, %211 : vector<16x128xf32>
    %213 = arith.mulf %196, %204 : vector<16x128xf32>
    %214 = arith.addf %212, %213 : vector<16x128xf32>
    %c0_104 = arith.constant 0 : index
    %c0_105 = arith.constant 0 : index
    %215 = vector.load %arg18[%c0_104, %c0_105] : memref<16x128xf32, #tpu.memory_space<vmem>>, vector<16x128xf32>
    tpu.vector_store %arg18[%c0_104, %c0_105], %214 {strides = array<i32>} : memref<16x128xf32, #tpu.memory_space<vmem>>, vector<16x128xf32>,
    %216 = math.tanh %214 : vector<16x128xf32>
    %217 = arith.mulf %210, %216 : vector<16x128xf32>
    %c0_106 = arith.constant 0 : index
    %c0_107 = arith.constant 0 : index
    %218 = vector.load %arg20[%c0_106, %c0_107] : memref<16x128xf32, #tpu.memory_space<vmem>>, vector<16x128xf32>
    %219 = arith.maximumf %218, %217 : vector<16x128xf32>
    %c0_108 = arith.constant 0 : index
    %c0_109 = arith.constant 0 : index
    %220 = vector.load %arg20[%c0_108, %c0_109] : memref<16x128xf32, #tpu.memory_space<vmem>>, vector<16x128xf32>
    tpu.vector_store %arg20[%c0_108, %c0_109], %219 {strides = array<i32>} : memref<16x128xf32, #tpu.memory_space<vmem>>, vector<16x128xf32>,
    %221 = arith.addf %183, %189 : vector<16x512xf32>
    %222 = vector.extract_strided_slice %221 {offsets = [0, 0], sizes = [16, 128], strides = [1, 1]} : vector<16x512xf32> to vector<16x128xf32>
    %223 = arith.negf %222 : vector<16x128xf32>
    %224 = math.exp %223 : vector<16x128xf32>
    %cst_110 = arith.constant 1.000000e+00 : f32
    %225 = vector.broadcast %cst_110 : f32 to vector<16x128xf32>
    %226 = arith.addf %225, %224 : vector<16x128xf32>
    %227 = arith.divf %225, %226 : vector<16x128xf32>
    %228 = vector.extract_strided_slice %221 {offsets = [0, 128], sizes = [16, 128], strides = [1, 1]} : vector<16x512xf32> to vector<16x128xf32>
    %229 = arith.negf %228 : vector<16x128xf32>
    %230 = math.exp %229 : vector<16x128xf32>
    %cst_111 = arith.constant 1.000000e+00 : f32
    %231 = vector.broadcast %cst_111 : f32 to vector<16x128xf32>
    %232 = arith.addf %231, %230 : vector<16x128xf32>
    %233 = arith.divf %231, %232 : vector<16x128xf32>
    %234 = vector.extract_strided_slice %221 {offsets = [0, 256], sizes = [16, 128], strides = [1, 1]} : vector<16x512xf32> to vector<16x128xf32>
    %235 = math.tanh %234 : vector<16x128xf32>
    %236 = vector.extract_strided_slice %221 {offsets = [0, 384], sizes = [16, 128], strides = [1, 1]} : vector<16x512xf32> to vector<16x128xf32>
    %237 = arith.negf %236 : vector<16x128xf32>
    %238 = math.exp %237 : vector<16x128xf32>
    %cst_112 = arith.constant 1.000000e+00 : f32
    %239 = vector.broadcast %cst_112 : f32 to vector<16x128xf32>
    %240 = arith.addf %239, %238 : vector<16x128xf32>
    %241 = arith.divf %239, %240 : vector<16x128xf32>
    %c0_113 = arith.constant 0 : index
    %c0_114 = arith.constant 0 : index
    %242 = vector.load %arg19[%c0_113, %c0_114] : memref<16x128xf32, #tpu.memory_space<vmem>>, vector<16x128xf32>
    %243 = arith.mulf %233, %242 : vector<16x128xf32>
    %244 = arith.mulf %227, %235 : vector<16x128xf32>
    %245 = arith.addf %243, %244 : vector<16x128xf32>
    %c0_115 = arith.constant 0 : index
    %c0_116 = arith.constant 0 : index
    %246 = vector.load %arg19[%c0_115, %c0_116] : memref<16x128xf32, #tpu.memory_space<vmem>>, vector<16x128xf32>
    tpu.vector_store %arg19[%c0_115, %c0_116], %245 {strides = array<i32>} : memref<16x128xf32, #tpu.memory_space<vmem>>, vector<16x128xf32>,
    %247 = math.tanh %245 : vector<16x128xf32>
    %248 = arith.mulf %241, %247 : vector<16x128xf32>
    %c0_117 = arith.constant 0 : index
    %c0_118 = arith.constant 0 : index
    %249 = vector.load %arg21[%c0_117, %c0_118] : memref<16x128xf32, #tpu.memory_space<vmem>>, vector<16x128xf32>
    %250 = arith.maximumf %249, %248 : vector<16x128xf32>
    %c0_119 = arith.constant 0 : index
    %c0_120 = arith.constant 0 : index
    %251 = vector.load %arg21[%c0_119, %c0_120] : memref<16x128xf32, #tpu.memory_space<vmem>>, vector<16x128xf32>
    tpu.vector_store %arg21[%c0_119, %c0_120], %250 {strides = array<i32>} : memref<16x128xf32, #tpu.memory_space<vmem>>, vector<16x128xf32>,
    %c3_i32 = arith.constant 3 : i32
    %c16_i32_121 = arith.constant 16 : i32
    %252 = arith.muli %c3_i32, %c16_i32_121 : i32
    %253 = tpu.assume_multiple %252, 16 : i32
    %c7_i32_122 = arith.constant 7 : i32
    %254 = arith.subi %c7_i32_122, %c3_i32 : i32
    %c16_i32_123 = arith.constant 16 : i32
    %255 = arith.muli %254, %c16_i32_123 : i32
    %256 = tpu.assume_multiple %255, 16 : i32
    %257 = arith.index_cast %253 : i32 to index
    %c0_124 = arith.constant 0 : index
    %258 = vector.load %arg14[%257, %c0_124] : memref<128x512xf32, #tpu.memory_space<vmem>>, vector<16x512xf32>
    %259 = arith.index_cast %256 : i32 to index
    %c0_125 = arith.constant 0 : index
    %260 = vector.load %arg15[%259, %c0_125] : memref<128x512xf32, #tpu.memory_space<vmem>>, vector<16x512xf32>
    %261 = arith.truncf %217 : vector<16x128xf32> to vector<16x128xbf16>
    %c0_126 = arith.constant 0 : index
    %c0_127 = arith.constant 0 : index
    %262 = vector.load %arg8[%c0_126, %c0_127] : memref<128x512xbf16, #tpu.memory_space<vmem>>, vector<128x512xbf16>
    %cst_128 = arith.constant dense<0.000000e+00> : vector<16x512xf32>
    %263 = tpu.matmul %261, %262, %cst_128 {dimension_numbers = #tpu.dot_dimension_numbers<[1], [0], [0], [1], [0, 0, 1, 1], [], []>} : vector<16x128xbf16>, vector<128x512xbf16>, vector<16x512xf32> -> vector<16x512xf32>
    %264 = arith.truncf %248 : vector<16x128xf32> to vector<16x128xbf16>
    %c0_129 = arith.constant 0 : index
    %c0_130 = arith.constant 0 : index
    %265 = vector.load %arg9[%c0_129, %c0_130] : memref<128x512xbf16, #tpu.memory_space<vmem>>, vector<128x512xbf16>
    %cst_131 = arith.constant dense<0.000000e+00> : vector<16x512xf32>
    %266 = tpu.matmul %264, %265, %cst_131 {dimension_numbers = #tpu.dot_dimension_numbers<[1], [0], [0], [1], [0, 0, 1, 1], [], []>} : vector<16x128xbf16>, vector<128x512xbf16>, vector<16x512xf32> -> vector<16x512xf32>
    %267 = arith.addf %258, %263 : vector<16x512xf32>
    %268 = vector.extract_strided_slice %267 {offsets = [0, 0], sizes = [16, 128], strides = [1, 1]} : vector<16x512xf32> to vector<16x128xf32>
    %269 = arith.negf %268 : vector<16x128xf32>
    %270 = math.exp %269 : vector<16x128xf32>
    %cst_132 = arith.constant 1.000000e+00 : f32
    %271 = vector.broadcast %cst_132 : f32 to vector<16x128xf32>
    %272 = arith.addf %271, %270 : vector<16x128xf32>
    %273 = arith.divf %271, %272 : vector<16x128xf32>
    %274 = vector.extract_strided_slice %267 {offsets = [0, 128], sizes = [16, 128], strides = [1, 1]} : vector<16x512xf32> to vector<16x128xf32>
    %275 = arith.negf %274 : vector<16x128xf32>
    %276 = math.exp %275 : vector<16x128xf32>
    %cst_133 = arith.constant 1.000000e+00 : f32
    %277 = vector.broadcast %cst_133 : f32 to vector<16x128xf32>
    %278 = arith.addf %277, %276 : vector<16x128xf32>
    %279 = arith.divf %277, %278 : vector<16x128xf32>
    %280 = vector.extract_strided_slice %267 {offsets = [0, 256], sizes = [16, 128], strides = [1, 1]} : vector<16x512xf32> to vector<16x128xf32>
    %281 = math.tanh %280 : vector<16x128xf32>
    %282 = vector.extract_strided_slice %267 {offsets = [0, 384], sizes = [16, 128], strides = [1, 1]} : vector<16x512xf32> to vector<16x128xf32>
    %283 = arith.negf %282 : vector<16x128xf32>
    %284 = math.exp %283 : vector<16x128xf32>
    %cst_134 = arith.constant 1.000000e+00 : f32
    %285 = vector.broadcast %cst_134 : f32 to vector<16x128xf32>
    %286 = arith.addf %285, %284 : vector<16x128xf32>
    %287 = arith.divf %285, %286 : vector<16x128xf32>
    %c0_135 = arith.constant 0 : index
    %c0_136 = arith.constant 0 : index
    %288 = vector.load %arg18[%c0_135, %c0_136] : memref<16x128xf32, #tpu.memory_space<vmem>>, vector<16x128xf32>
    %289 = arith.mulf %279, %288 : vector<16x128xf32>
    %290 = arith.mulf %273, %281 : vector<16x128xf32>
    %291 = arith.addf %289, %290 : vector<16x128xf32>
    %c0_137 = arith.constant 0 : index
    %c0_138 = arith.constant 0 : index
    %292 = vector.load %arg18[%c0_137, %c0_138] : memref<16x128xf32, #tpu.memory_space<vmem>>, vector<16x128xf32>
    tpu.vector_store %arg18[%c0_137, %c0_138], %291 {strides = array<i32>} : memref<16x128xf32, #tpu.memory_space<vmem>>, vector<16x128xf32>,
    %293 = math.tanh %291 : vector<16x128xf32>
    %294 = arith.mulf %287, %293 : vector<16x128xf32>
    %c0_139 = arith.constant 0 : index
    %c0_140 = arith.constant 0 : index
    %295 = vector.load %arg20[%c0_139, %c0_140] : memref<16x128xf32, #tpu.memory_space<vmem>>, vector<16x128xf32>
    %296 = arith.maximumf %295, %294 : vector<16x128xf32>
    %c0_141 = arith.constant 0 : index
    %c0_142 = arith.constant 0 : index
    %297 = vector.load %arg20[%c0_141, %c0_142] : memref<16x128xf32, #tpu.memory_space<vmem>>, vector<16x128xf32>
    tpu.vector_store %arg20[%c0_141, %c0_142], %296 {strides = array<i32>} : memref<16x128xf32, #tpu.memory_space<vmem>>, vector<16x128xf32>,
    %298 = arith.addf %260, %266 : vector<16x512xf32>
    %299 = vector.extract_strided_slice %298 {offsets = [0, 0], sizes = [16, 128], strides = [1, 1]} : vector<16x512xf32> to vector<16x128xf32>
    %300 = arith.negf %299 : vector<16x128xf32>
    %301 = math.exp %300 : vector<16x128xf32>
    %cst_143 = arith.constant 1.000000e+00 : f32
    %302 = vector.broadcast %cst_143 : f32 to vector<16x128xf32>
    %303 = arith.addf %302, %301 : vector<16x128xf32>
    %304 = arith.divf %302, %303 : vector<16x128xf32>
    %305 = vector.extract_strided_slice %298 {offsets = [0, 128], sizes = [16, 128], strides = [1, 1]} : vector<16x512xf32> to vector<16x128xf32>
    %306 = arith.negf %305 : vector<16x128xf32>
    %307 = math.exp %306 : vector<16x128xf32>
    %cst_144 = arith.constant 1.000000e+00 : f32
    %308 = vector.broadcast %cst_144 : f32 to vector<16x128xf32>
    %309 = arith.addf %308, %307 : vector<16x128xf32>
    %310 = arith.divf %308, %309 : vector<16x128xf32>
    %311 = vector.extract_strided_slice %298 {offsets = [0, 256], sizes = [16, 128], strides = [1, 1]} : vector<16x512xf32> to vector<16x128xf32>
    %312 = math.tanh %311 : vector<16x128xf32>
    %313 = vector.extract_strided_slice %298 {offsets = [0, 384], sizes = [16, 128], strides = [1, 1]} : vector<16x512xf32> to vector<16x128xf32>
    %314 = arith.negf %313 : vector<16x128xf32>
    %315 = math.exp %314 : vector<16x128xf32>
    %cst_145 = arith.constant 1.000000e+00 : f32
    %316 = vector.broadcast %cst_145 : f32 to vector<16x128xf32>
    %317 = arith.addf %316, %315 : vector<16x128xf32>
    %318 = arith.divf %316, %317 : vector<16x128xf32>
    %c0_146 = arith.constant 0 : index
    %c0_147 = arith.constant 0 : index
    %319 = vector.load %arg19[%c0_146, %c0_147] : memref<16x128xf32, #tpu.memory_space<vmem>>, vector<16x128xf32>
    %320 = arith.mulf %310, %319 : vector<16x128xf32>
    %321 = arith.mulf %304, %312 : vector<16x128xf32>
    %322 = arith.addf %320, %321 : vector<16x128xf32>
    %c0_148 = arith.constant 0 : index
    %c0_149 = arith.constant 0 : index
    %323 = vector.load %arg19[%c0_148, %c0_149] : memref<16x128xf32, #tpu.memory_space<vmem>>, vector<16x128xf32>
    tpu.vector_store %arg19[%c0_148, %c0_149], %322 {strides = array<i32>} : memref<16x128xf32, #tpu.memory_space<vmem>>, vector<16x128xf32>,
    %324 = math.tanh %322 : vector<16x128xf32>
    %325 = arith.mulf %318, %324 : vector<16x128xf32>
    %c0_150 = arith.constant 0 : index
    %c0_151 = arith.constant 0 : index
    %326 = vector.load %arg21[%c0_150, %c0_151] : memref<16x128xf32, #tpu.memory_space<vmem>>, vector<16x128xf32>
    %327 = arith.maximumf %326, %325 : vector<16x128xf32>
    %c0_152 = arith.constant 0 : index
    %c0_153 = arith.constant 0 : index
    %328 = vector.load %arg21[%c0_152, %c0_153] : memref<16x128xf32, #tpu.memory_space<vmem>>, vector<16x128xf32>
    tpu.vector_store %arg21[%c0_152, %c0_153], %327 {strides = array<i32>} : memref<16x128xf32, #tpu.memory_space<vmem>>, vector<16x128xf32>,
    %c4_i32 = arith.constant 4 : i32
    %c16_i32_154 = arith.constant 16 : i32
    %329 = arith.muli %c4_i32, %c16_i32_154 : i32
    %330 = tpu.assume_multiple %329, 16 : i32
    %c7_i32_155 = arith.constant 7 : i32
    %331 = arith.subi %c7_i32_155, %c4_i32 : i32
    %c16_i32_156 = arith.constant 16 : i32
    %332 = arith.muli %331, %c16_i32_156 : i32
    %333 = tpu.assume_multiple %332, 16 : i32
    %334 = arith.index_cast %330 : i32 to index
    %c0_157 = arith.constant 0 : index
    %335 = vector.load %arg14[%334, %c0_157] : memref<128x512xf32, #tpu.memory_space<vmem>>, vector<16x512xf32>
    %336 = arith.index_cast %333 : i32 to index
    %c0_158 = arith.constant 0 : index
    %337 = vector.load %arg15[%336, %c0_158] : memref<128x512xf32, #tpu.memory_space<vmem>>, vector<16x512xf32>
    %338 = arith.truncf %294 : vector<16x128xf32> to vector<16x128xbf16>
    %c0_159 = arith.constant 0 : index
    %c0_160 = arith.constant 0 : index
    %339 = vector.load %arg8[%c0_159, %c0_160] : memref<128x512xbf16, #tpu.memory_space<vmem>>, vector<128x512xbf16>
    %cst_161 = arith.constant dense<0.000000e+00> : vector<16x512xf32>
    %340 = tpu.matmul %338, %339, %cst_161 {dimension_numbers = #tpu.dot_dimension_numbers<[1], [0], [0], [1], [0, 0, 1, 1], [], []>} : vector<16x128xbf16>, vector<128x512xbf16>, vector<16x512xf32> -> vector<16x512xf32>
    %341 = arith.truncf %325 : vector<16x128xf32> to vector<16x128xbf16>
    %c0_162 = arith.constant 0 : index
    %c0_163 = arith.constant 0 : index
    %342 = vector.load %arg9[%c0_162, %c0_163] : memref<128x512xbf16, #tpu.memory_space<vmem>>, vector<128x512xbf16>
    %cst_164 = arith.constant dense<0.000000e+00> : vector<16x512xf32>
    %343 = tpu.matmul %341, %342, %cst_164 {dimension_numbers = #tpu.dot_dimension_numbers<[1], [0], [0], [1], [0, 0, 1, 1], [], []>} : vector<16x128xbf16>, vector<128x512xbf16>, vector<16x512xf32> -> vector<16x512xf32>
    %344 = arith.addf %335, %340 : vector<16x512xf32>
    %345 = vector.extract_strided_slice %344 {offsets = [0, 0], sizes = [16, 128], strides = [1, 1]} : vector<16x512xf32> to vector<16x128xf32>
    %346 = arith.negf %345 : vector<16x128xf32>
    %347 = math.exp %346 : vector<16x128xf32>
    %cst_165 = arith.constant 1.000000e+00 : f32
    %348 = vector.broadcast %cst_165 : f32 to vector<16x128xf32>
    %349 = arith.addf %348, %347 : vector<16x128xf32>
    %350 = arith.divf %348, %349 : vector<16x128xf32>
    %351 = vector.extract_strided_slice %344 {offsets = [0, 128], sizes = [16, 128], strides = [1, 1]} : vector<16x512xf32> to vector<16x128xf32>
    %352 = arith.negf %351 : vector<16x128xf32>
    %353 = math.exp %352 : vector<16x128xf32>
    %cst_166 = arith.constant 1.000000e+00 : f32
    %354 = vector.broadcast %cst_166 : f32 to vector<16x128xf32>
    %355 = arith.addf %354, %353 : vector<16x128xf32>
    %356 = arith.divf %354, %355 : vector<16x128xf32>
    %357 = vector.extract_strided_slice %344 {offsets = [0, 256], sizes = [16, 128], strides = [1, 1]} : vector<16x512xf32> to vector<16x128xf32>
    %358 = math.tanh %357 : vector<16x128xf32>
    %359 = vector.extract_strided_slice %344 {offsets = [0, 384], sizes = [16, 128], strides = [1, 1]} : vector<16x512xf32> to vector<16x128xf32>
    %360 = arith.negf %359 : vector<16x128xf32>
    %361 = math.exp %360 : vector<16x128xf32>
    %cst_167 = arith.constant 1.000000e+00 : f32
    %362 = vector.broadcast %cst_167 : f32 to vector<16x128xf32>
    %363 = arith.addf %362, %361 : vector<16x128xf32>
    %364 = arith.divf %362, %363 : vector<16x128xf32>
    %c0_168 = arith.constant 0 : index
    %c0_169 = arith.constant 0 : index
    %365 = vector.load %arg18[%c0_168, %c0_169] : memref<16x128xf32, #tpu.memory_space<vmem>>, vector<16x128xf32>
    %366 = arith.mulf %356, %365 : vector<16x128xf32>
    %367 = arith.mulf %350, %358 : vector<16x128xf32>
    %368 = arith.addf %366, %367 : vector<16x128xf32>
    %c0_170 = arith.constant 0 : index
    %c0_171 = arith.constant 0 : index
    %369 = vector.load %arg18[%c0_170, %c0_171] : memref<16x128xf32, #tpu.memory_space<vmem>>, vector<16x128xf32>
    tpu.vector_store %arg18[%c0_170, %c0_171], %368 {strides = array<i32>} : memref<16x128xf32, #tpu.memory_space<vmem>>, vector<16x128xf32>,
    %370 = math.tanh %368 : vector<16x128xf32>
    %371 = arith.mulf %364, %370 : vector<16x128xf32>
    %c0_172 = arith.constant 0 : index
    %c0_173 = arith.constant 0 : index
    %372 = vector.load %arg20[%c0_172, %c0_173] : memref<16x128xf32, #tpu.memory_space<vmem>>, vector<16x128xf32>
    %373 = arith.maximumf %372, %371 : vector<16x128xf32>
    %c0_174 = arith.constant 0 : index
    %c0_175 = arith.constant 0 : index
    %374 = vector.load %arg20[%c0_174, %c0_175] : memref<16x128xf32, #tpu.memory_space<vmem>>, vector<16x128xf32>
    tpu.vector_store %arg20[%c0_174, %c0_175], %373 {strides = array<i32>} : memref<16x128xf32, #tpu.memory_space<vmem>>, vector<16x128xf32>,
    %375 = arith.addf %337, %343 : vector<16x512xf32>
    %376 = vector.extract_strided_slice %375 {offsets = [0, 0], sizes = [16, 128], strides = [1, 1]} : vector<16x512xf32> to vector<16x128xf32>
    %377 = arith.negf %376 : vector<16x128xf32>
    %378 = math.exp %377 : vector<16x128xf32>
    %cst_176 = arith.constant 1.000000e+00 : f32
    %379 = vector.broadcast %cst_176 : f32 to vector<16x128xf32>
    %380 = arith.addf %379, %378 : vector<16x128xf32>
    %381 = arith.divf %379, %380 : vector<16x128xf32>
    %382 = vector.extract_strided_slice %375 {offsets = [0, 128], sizes = [16, 128], strides = [1, 1]} : vector<16x512xf32> to vector<16x128xf32>
    %383 = arith.negf %382 : vector<16x128xf32>
    %384 = math.exp %383 : vector<16x128xf32>
    %cst_177 = arith.constant 1.000000e+00 : f32
    %385 = vector.broadcast %cst_177 : f32 to vector<16x128xf32>
    %386 = arith.addf %385, %384 : vector<16x128xf32>
    %387 = arith.divf %385, %386 : vector<16x128xf32>
    %388 = vector.extract_strided_slice %375 {offsets = [0, 256], sizes = [16, 128], strides = [1, 1]} : vector<16x512xf32> to vector<16x128xf32>
    %389 = math.tanh %388 : vector<16x128xf32>
    %390 = vector.extract_strided_slice %375 {offsets = [0, 384], sizes = [16, 128], strides = [1, 1]} : vector<16x512xf32> to vector<16x128xf32>
    %391 = arith.negf %390 : vector<16x128xf32>
    %392 = math.exp %391 : vector<16x128xf32>
    %cst_178 = arith.constant 1.000000e+00 : f32
    %393 = vector.broadcast %cst_178 : f32 to vector<16x128xf32>
    %394 = arith.addf %393, %392 : vector<16x128xf32>
    %395 = arith.divf %393, %394 : vector<16x128xf32>
    %c0_179 = arith.constant 0 : index
    %c0_180 = arith.constant 0 : index
    %396 = vector.load %arg19[%c0_179, %c0_180] : memref<16x128xf32, #tpu.memory_space<vmem>>, vector<16x128xf32>
    %397 = arith.mulf %387, %396 : vector<16x128xf32>
    %398 = arith.mulf %381, %389 : vector<16x128xf32>
    %399 = arith.addf %397, %398 : vector<16x128xf32>
    %c0_181 = arith.constant 0 : index
    %c0_182 = arith.constant 0 : index
    %400 = vector.load %arg19[%c0_181, %c0_182] : memref<16x128xf32, #tpu.memory_space<vmem>>, vector<16x128xf32>
    tpu.vector_store %arg19[%c0_181, %c0_182], %399 {strides = array<i32>} : memref<16x128xf32, #tpu.memory_space<vmem>>, vector<16x128xf32>,
    %401 = math.tanh %399 : vector<16x128xf32>
    %402 = arith.mulf %395, %401 : vector<16x128xf32>
    %c0_183 = arith.constant 0 : index
    %c0_184 = arith.constant 0 : index
    %403 = vector.load %arg21[%c0_183, %c0_184] : memref<16x128xf32, #tpu.memory_space<vmem>>, vector<16x128xf32>
    %404 = arith.maximumf %403, %402 : vector<16x128xf32>
    %c0_185 = arith.constant 0 : index
    %c0_186 = arith.constant 0 : index
    %405 = vector.load %arg21[%c0_185, %c0_186] : memref<16x128xf32, #tpu.memory_space<vmem>>, vector<16x128xf32>
    tpu.vector_store %arg21[%c0_185, %c0_186], %404 {strides = array<i32>} : memref<16x128xf32, #tpu.memory_space<vmem>>, vector<16x128xf32>,
    %c5_i32 = arith.constant 5 : i32
    %c16_i32_187 = arith.constant 16 : i32
    %406 = arith.muli %c5_i32, %c16_i32_187 : i32
    %407 = tpu.assume_multiple %406, 16 : i32
    %c7_i32_188 = arith.constant 7 : i32
    %408 = arith.subi %c7_i32_188, %c5_i32 : i32
    %c16_i32_189 = arith.constant 16 : i32
    %409 = arith.muli %408, %c16_i32_189 : i32
    %410 = tpu.assume_multiple %409, 16 : i32
    %411 = arith.index_cast %407 : i32 to index
    %c0_190 = arith.constant 0 : index
    %412 = vector.load %arg14[%411, %c0_190] : memref<128x512xf32, #tpu.memory_space<vmem>>, vector<16x512xf32>
    %413 = arith.index_cast %410 : i32 to index
    %c0_191 = arith.constant 0 : index
    %414 = vector.load %arg15[%413, %c0_191] : memref<128x512xf32, #tpu.memory_space<vmem>>, vector<16x512xf32>
    %415 = arith.truncf %371 : vector<16x128xf32> to vector<16x128xbf16>
    %c0_192 = arith.constant 0 : index
    %c0_193 = arith.constant 0 : index
    %416 = vector.load %arg8[%c0_192, %c0_193] : memref<128x512xbf16, #tpu.memory_space<vmem>>, vector<128x512xbf16>
    %cst_194 = arith.constant dense<0.000000e+00> : vector<16x512xf32>
    %417 = tpu.matmul %415, %416, %cst_194 {dimension_numbers = #tpu.dot_dimension_numbers<[1], [0], [0], [1], [0, 0, 1, 1], [], []>} : vector<16x128xbf16>, vector<128x512xbf16>, vector<16x512xf32> -> vector<16x512xf32>
    %418 = arith.truncf %402 : vector<16x128xf32> to vector<16x128xbf16>
    %c0_195 = arith.constant 0 : index
    %c0_196 = arith.constant 0 : index
    %419 = vector.load %arg9[%c0_195, %c0_196] : memref<128x512xbf16, #tpu.memory_space<vmem>>, vector<128x512xbf16>
    %cst_197 = arith.constant dense<0.000000e+00> : vector<16x512xf32>
    %420 = tpu.matmul %418, %419, %cst_197 {dimension_numbers = #tpu.dot_dimension_numbers<[1], [0], [0], [1], [0, 0, 1, 1], [], []>} : vector<16x128xbf16>, vector<128x512xbf16>, vector<16x512xf32> -> vector<16x512xf32>
    %421 = arith.addf %412, %417 : vector<16x512xf32>
    %422 = vector.extract_strided_slice %421 {offsets = [0, 0], sizes = [16, 128], strides = [1, 1]} : vector<16x512xf32> to vector<16x128xf32>
    %423 = arith.negf %422 : vector<16x128xf32>
    %424 = math.exp %423 : vector<16x128xf32>
    %cst_198 = arith.constant 1.000000e+00 : f32
    %425 = vector.broadcast %cst_198 : f32 to vector<16x128xf32>
    %426 = arith.addf %425, %424 : vector<16x128xf32>
    %427 = arith.divf %425, %426 : vector<16x128xf32>
    %428 = vector.extract_strided_slice %421 {offsets = [0, 128], sizes = [16, 128], strides = [1, 1]} : vector<16x512xf32> to vector<16x128xf32>
    %429 = arith.negf %428 : vector<16x128xf32>
    %430 = math.exp %429 : vector<16x128xf32>
    %cst_199 = arith.constant 1.000000e+00 : f32
    %431 = vector.broadcast %cst_199 : f32 to vector<16x128xf32>
    %432 = arith.addf %431, %430 : vector<16x128xf32>
    %433 = arith.divf %431, %432 : vector<16x128xf32>
    %434 = vector.extract_strided_slice %421 {offsets = [0, 256], sizes = [16, 128], strides = [1, 1]} : vector<16x512xf32> to vector<16x128xf32>
    %435 = math.tanh %434 : vector<16x128xf32>
    %436 = vector.extract_strided_slice %421 {offsets = [0, 384], sizes = [16, 128], strides = [1, 1]} : vector<16x512xf32> to vector<16x128xf32>
    %437 = arith.negf %436 : vector<16x128xf32>
    %438 = math.exp %437 : vector<16x128xf32>
    %cst_200 = arith.constant 1.000000e+00 : f32
    %439 = vector.broadcast %cst_200 : f32 to vector<16x128xf32>
    %440 = arith.addf %439, %438 : vector<16x128xf32>
    %441 = arith.divf %439, %440 : vector<16x128xf32>
    %c0_201 = arith.constant 0 : index
    %c0_202 = arith.constant 0 : index
    %442 = vector.load %arg18[%c0_201, %c0_202] : memref<16x128xf32, #tpu.memory_space<vmem>>, vector<16x128xf32>
    %443 = arith.mulf %433, %442 : vector<16x128xf32>
    %444 = arith.mulf %427, %435 : vector<16x128xf32>
    %445 = arith.addf %443, %444 : vector<16x128xf32>
    %c0_203 = arith.constant 0 : index
    %c0_204 = arith.constant 0 : index
    %446 = vector.load %arg18[%c0_203, %c0_204] : memref<16x128xf32, #tpu.memory_space<vmem>>, vector<16x128xf32>
    tpu.vector_store %arg18[%c0_203, %c0_204], %445 {strides = array<i32>} : memref<16x128xf32, #tpu.memory_space<vmem>>, vector<16x128xf32>,
    %447 = math.tanh %445 : vector<16x128xf32>
    %448 = arith.mulf %441, %447 : vector<16x128xf32>
    %c0_205 = arith.constant 0 : index
    %c0_206 = arith.constant 0 : index
    %449 = vector.load %arg20[%c0_205, %c0_206] : memref<16x128xf32, #tpu.memory_space<vmem>>, vector<16x128xf32>
    %450 = arith.maximumf %449, %448 : vector<16x128xf32>
    %c0_207 = arith.constant 0 : index
    %c0_208 = arith.constant 0 : index
    %451 = vector.load %arg20[%c0_207, %c0_208] : memref<16x128xf32, #tpu.memory_space<vmem>>, vector<16x128xf32>
    tpu.vector_store %arg20[%c0_207, %c0_208], %450 {strides = array<i32>} : memref<16x128xf32, #tpu.memory_space<vmem>>, vector<16x128xf32>,
    %452 = arith.addf %414, %420 : vector<16x512xf32>
    %453 = vector.extract_strided_slice %452 {offsets = [0, 0], sizes = [16, 128], strides = [1, 1]} : vector<16x512xf32> to vector<16x128xf32>
    %454 = arith.negf %453 : vector<16x128xf32>
    %455 = math.exp %454 : vector<16x128xf32>
    %cst_209 = arith.constant 1.000000e+00 : f32
    %456 = vector.broadcast %cst_209 : f32 to vector<16x128xf32>
    %457 = arith.addf %456, %455 : vector<16x128xf32>
    %458 = arith.divf %456, %457 : vector<16x128xf32>
    %459 = vector.extract_strided_slice %452 {offsets = [0, 128], sizes = [16, 128], strides = [1, 1]} : vector<16x512xf32> to vector<16x128xf32>
    %460 = arith.negf %459 : vector<16x128xf32>
    %461 = math.exp %460 : vector<16x128xf32>
    %cst_210 = arith.constant 1.000000e+00 : f32
    %462 = vector.broadcast %cst_210 : f32 to vector<16x128xf32>
    %463 = arith.addf %462, %461 : vector<16x128xf32>
    %464 = arith.divf %462, %463 : vector<16x128xf32>
    %465 = vector.extract_strided_slice %452 {offsets = [0, 256], sizes = [16, 128], strides = [1, 1]} : vector<16x512xf32> to vector<16x128xf32>
    %466 = math.tanh %465 : vector<16x128xf32>
    %467 = vector.extract_strided_slice %452 {offsets = [0, 384], sizes = [16, 128], strides = [1, 1]} : vector<16x512xf32> to vector<16x128xf32>
    %468 = arith.negf %467 : vector<16x128xf32>
    %469 = math.exp %468 : vector<16x128xf32>
    %cst_211 = arith.constant 1.000000e+00 : f32
    %470 = vector.broadcast %cst_211 : f32 to vector<16x128xf32>
    %471 = arith.addf %470, %469 : vector<16x128xf32>
    %472 = arith.divf %470, %471 : vector<16x128xf32>
    %c0_212 = arith.constant 0 : index
    %c0_213 = arith.constant 0 : index
    %473 = vector.load %arg19[%c0_212, %c0_213] : memref<16x128xf32, #tpu.memory_space<vmem>>, vector<16x128xf32>
    %474 = arith.mulf %464, %473 : vector<16x128xf32>
    %475 = arith.mulf %458, %466 : vector<16x128xf32>
    %476 = arith.addf %474, %475 : vector<16x128xf32>
    %c0_214 = arith.constant 0 : index
    %c0_215 = arith.constant 0 : index
    %477 = vector.load %arg19[%c0_214, %c0_215] : memref<16x128xf32, #tpu.memory_space<vmem>>, vector<16x128xf32>
    tpu.vector_store %arg19[%c0_214, %c0_215], %476 {strides = array<i32>} : memref<16x128xf32, #tpu.memory_space<vmem>>, vector<16x128xf32>,
    %478 = math.tanh %476 : vector<16x128xf32>
    %479 = arith.mulf %472, %478 : vector<16x128xf32>
    %c0_216 = arith.constant 0 : index
    %c0_217 = arith.constant 0 : index
    %480 = vector.load %arg21[%c0_216, %c0_217] : memref<16x128xf32, #tpu.memory_space<vmem>>, vector<16x128xf32>
    %481 = arith.maximumf %480, %479 : vector<16x128xf32>
    %c0_218 = arith.constant 0 : index
    %c0_219 = arith.constant 0 : index
    %482 = vector.load %arg21[%c0_218, %c0_219] : memref<16x128xf32, #tpu.memory_space<vmem>>, vector<16x128xf32>
    tpu.vector_store %arg21[%c0_218, %c0_219], %481 {strides = array<i32>} : memref<16x128xf32, #tpu.memory_space<vmem>>, vector<16x128xf32>,
    %c6_i32 = arith.constant 6 : i32
    %c16_i32_220 = arith.constant 16 : i32
    %483 = arith.muli %c6_i32, %c16_i32_220 : i32
    %484 = tpu.assume_multiple %483, 16 : i32
    %c7_i32_221 = arith.constant 7 : i32
    %485 = arith.subi %c7_i32_221, %c6_i32 : i32
    %c16_i32_222 = arith.constant 16 : i32
    %486 = arith.muli %485, %c16_i32_222 : i32
    %487 = tpu.assume_multiple %486, 16 : i32
    %488 = arith.index_cast %484 : i32 to index
    %c0_223 = arith.constant 0 : index
    %489 = vector.load %arg14[%488, %c0_223] : memref<128x512xf32, #tpu.memory_space<vmem>>, vector<16x512xf32>
    %490 = arith.index_cast %487 : i32 to index
    %c0_224 = arith.constant 0 : index
    %491 = vector.load %arg15[%490, %c0_224] : memref<128x512xf32, #tpu.memory_space<vmem>>, vector<16x512xf32>
    %492 = arith.truncf %448 : vector<16x128xf32> to vector<16x128xbf16>
    %c0_225 = arith.constant 0 : index
    %c0_226 = arith.constant 0 : index
    %493 = vector.load %arg8[%c0_225, %c0_226] : memref<128x512xbf16, #tpu.memory_space<vmem>>, vector<128x512xbf16>
    %cst_227 = arith.constant dense<0.000000e+00> : vector<16x512xf32>
    %494 = tpu.matmul %492, %493, %cst_227 {dimension_numbers = #tpu.dot_dimension_numbers<[1], [0], [0], [1], [0, 0, 1, 1], [], []>} : vector<16x128xbf16>, vector<128x512xbf16>, vector<16x512xf32> -> vector<16x512xf32>
    %495 = arith.truncf %479 : vector<16x128xf32> to vector<16x128xbf16>
    %c0_228 = arith.constant 0 : index
    %c0_229 = arith.constant 0 : index
    %496 = vector.load %arg9[%c0_228, %c0_229] : memref<128x512xbf16, #tpu.memory_space<vmem>>, vector<128x512xbf16>
    %cst_230 = arith.constant dense<0.000000e+00> : vector<16x512xf32>
    %497 = tpu.matmul %495, %496, %cst_230 {dimension_numbers = #tpu.dot_dimension_numbers<[1], [0], [0], [1], [0, 0, 1, 1], [], []>} : vector<16x128xbf16>, vector<128x512xbf16>, vector<16x512xf32> -> vector<16x512xf32>
    %498 = arith.addf %489, %494 : vector<16x512xf32>
    %499 = vector.extract_strided_slice %498 {offsets = [0, 0], sizes = [16, 128], strides = [1, 1]} : vector<16x512xf32> to vector<16x128xf32>
    %500 = arith.negf %499 : vector<16x128xf32>
    %501 = math.exp %500 : vector<16x128xf32>
    %cst_231 = arith.constant 1.000000e+00 : f32
    %502 = vector.broadcast %cst_231 : f32 to vector<16x128xf32>
    %503 = arith.addf %502, %501 : vector<16x128xf32>
    %504 = arith.divf %502, %503 : vector<16x128xf32>
    %505 = vector.extract_strided_slice %498 {offsets = [0, 128], sizes = [16, 128], strides = [1, 1]} : vector<16x512xf32> to vector<16x128xf32>
    %506 = arith.negf %505 : vector<16x128xf32>
    %507 = math.exp %506 : vector<16x128xf32>
    %cst_232 = arith.constant 1.000000e+00 : f32
    %508 = vector.broadcast %cst_232 : f32 to vector<16x128xf32>
    %509 = arith.addf %508, %507 : vector<16x128xf32>
    %510 = arith.divf %508, %509 : vector<16x128xf32>
    %511 = vector.extract_strided_slice %498 {offsets = [0, 256], sizes = [16, 128], strides = [1, 1]} : vector<16x512xf32> to vector<16x128xf32>
    %512 = math.tanh %511 : vector<16x128xf32>
    %513 = vector.extract_strided_slice %498 {offsets = [0, 384], sizes = [16, 128], strides = [1, 1]} : vector<16x512xf32> to vector<16x128xf32>
    %514 = arith.negf %513 : vector<16x128xf32>
    %515 = math.exp %514 : vector<16x128xf32>
    %cst_233 = arith.constant 1.000000e+00 : f32
    %516 = vector.broadcast %cst_233 : f32 to vector<16x128xf32>
    %517 = arith.addf %516, %515 : vector<16x128xf32>
    %518 = arith.divf %516, %517 : vector<16x128xf32>
    %c0_234 = arith.constant 0 : index
    %c0_235 = arith.constant 0 : index
    %519 = vector.load %arg18[%c0_234, %c0_235] : memref<16x128xf32, #tpu.memory_space<vmem>>, vector<16x128xf32>
    %520 = arith.mulf %510, %519 : vector<16x128xf32>
    %521 = arith.mulf %504, %512 : vector<16x128xf32>
    %522 = arith.addf %520, %521 : vector<16x128xf32>
    %c0_236 = arith.constant 0 : index
    %c0_237 = arith.constant 0 : index
    %523 = vector.load %arg18[%c0_236, %c0_237] : memref<16x128xf32, #tpu.memory_space<vmem>>, vector<16x128xf32>
    tpu.vector_store %arg18[%c0_236, %c0_237], %522 {strides = array<i32>} : memref<16x128xf32, #tpu.memory_space<vmem>>, vector<16x128xf32>,
    %524 = math.tanh %522 : vector<16x128xf32>
    %525 = arith.mulf %518, %524 : vector<16x128xf32>
    %c0_238 = arith.constant 0 : index
    %c0_239 = arith.constant 0 : index
    %526 = vector.load %arg20[%c0_238, %c0_239] : memref<16x128xf32, #tpu.memory_space<vmem>>, vector<16x128xf32>
    %527 = arith.maximumf %526, %525 : vector<16x128xf32>
    %c0_240 = arith.constant 0 : index
    %c0_241 = arith.constant 0 : index
    %528 = vector.load %arg20[%c0_240, %c0_241] : memref<16x128xf32, #tpu.memory_space<vmem>>, vector<16x128xf32>
    tpu.vector_store %arg20[%c0_240, %c0_241], %527 {strides = array<i32>} : memref<16x128xf32, #tpu.memory_space<vmem>>, vector<16x128xf32>,
    %529 = arith.addf %491, %497 : vector<16x512xf32>
    %530 = vector.extract_strided_slice %529 {offsets = [0, 0], sizes = [16, 128], strides = [1, 1]} : vector<16x512xf32> to vector<16x128xf32>
    %531 = arith.negf %530 : vector<16x128xf32>
    %532 = math.exp %531 : vector<16x128xf32>
    %cst_242 = arith.constant 1.000000e+00 : f32
    %533 = vector.broadcast %cst_242 : f32 to vector<16x128xf32>
    %534 = arith.addf %533, %532 : vector<16x128xf32>
    %535 = arith.divf %533, %534 : vector<16x128xf32>
    %536 = vector.extract_strided_slice %529 {offsets = [0, 128], sizes = [16, 128], strides = [1, 1]} : vector<16x512xf32> to vector<16x128xf32>
    %537 = arith.negf %536 : vector<16x128xf32>
    %538 = math.exp %537 : vector<16x128xf32>
    %cst_243 = arith.constant 1.000000e+00 : f32
    %539 = vector.broadcast %cst_243 : f32 to vector<16x128xf32>
    %540 = arith.addf %539, %538 : vector<16x128xf32>
    %541 = arith.divf %539, %540 : vector<16x128xf32>
    %542 = vector.extract_strided_slice %529 {offsets = [0, 256], sizes = [16, 128], strides = [1, 1]} : vector<16x512xf32> to vector<16x128xf32>
    %543 = math.tanh %542 : vector<16x128xf32>
    %544 = vector.extract_strided_slice %529 {offsets = [0, 384], sizes = [16, 128], strides = [1, 1]} : vector<16x512xf32> to vector<16x128xf32>
    %545 = arith.negf %544 : vector<16x128xf32>
    %546 = math.exp %545 : vector<16x128xf32>
    %cst_244 = arith.constant 1.000000e+00 : f32
    %547 = vector.broadcast %cst_244 : f32 to vector<16x128xf32>
    %548 = arith.addf %547, %546 : vector<16x128xf32>
    %549 = arith.divf %547, %548 : vector<16x128xf32>
    %c0_245 = arith.constant 0 : index
    %c0_246 = arith.constant 0 : index
    %550 = vector.load %arg19[%c0_245, %c0_246] : memref<16x128xf32, #tpu.memory_space<vmem>>, vector<16x128xf32>
    %551 = arith.mulf %541, %550 : vector<16x128xf32>
    %552 = arith.mulf %535, %543 : vector<16x128xf32>
    %553 = arith.addf %551, %552 : vector<16x128xf32>
    %c0_247 = arith.constant 0 : index
    %c0_248 = arith.constant 0 : index
    %554 = vector.load %arg19[%c0_247, %c0_248] : memref<16x128xf32, #tpu.memory_space<vmem>>, vector<16x128xf32>
    tpu.vector_store %arg19[%c0_247, %c0_248], %553 {strides = array<i32>} : memref<16x128xf32, #tpu.memory_space<vmem>>, vector<16x128xf32>,
    %555 = math.tanh %553 : vector<16x128xf32>
    %556 = arith.mulf %549, %555 : vector<16x128xf32>
    %c0_249 = arith.constant 0 : index
    %c0_250 = arith.constant 0 : index
    %557 = vector.load %arg21[%c0_249, %c0_250] : memref<16x128xf32, #tpu.memory_space<vmem>>, vector<16x128xf32>
    %558 = arith.maximumf %557, %556 : vector<16x128xf32>
    %c0_251 = arith.constant 0 : index
    %c0_252 = arith.constant 0 : index
    %559 = vector.load %arg21[%c0_251, %c0_252] : memref<16x128xf32, #tpu.memory_space<vmem>>, vector<16x128xf32>
    tpu.vector_store %arg21[%c0_251, %c0_252], %558 {strides = array<i32>} : memref<16x128xf32, #tpu.memory_space<vmem>>, vector<16x128xf32>,
    %c7_i32_253 = arith.constant 7 : i32
    %c16_i32_254 = arith.constant 16 : i32
    %560 = arith.muli %c7_i32_253, %c16_i32_254 : i32
    %561 = tpu.assume_multiple %560, 16 : i32
    %c7_i32_255 = arith.constant 7 : i32
    %562 = arith.subi %c7_i32_255, %c7_i32_253 : i32
    %c16_i32_256 = arith.constant 16 : i32
    %563 = arith.muli %562, %c16_i32_256 : i32
    %564 = tpu.assume_multiple %563, 16 : i32
    %565 = arith.index_cast %561 : i32 to index
    %c0_257 = arith.constant 0 : index
    %566 = vector.load %arg14[%565, %c0_257] : memref<128x512xf32, #tpu.memory_space<vmem>>, vector<16x512xf32>
    %567 = arith.index_cast %564 : i32 to index
    %c0_258 = arith.constant 0 : index
    %568 = vector.load %arg15[%567, %c0_258] : memref<128x512xf32, #tpu.memory_space<vmem>>, vector<16x512xf32>
    %569 = arith.truncf %525 : vector<16x128xf32> to vector<16x128xbf16>
    %c0_259 = arith.constant 0 : index
    %c0_260 = arith.constant 0 : index
    %570 = vector.load %arg8[%c0_259, %c0_260] : memref<128x512xbf16, #tpu.memory_space<vmem>>, vector<128x512xbf16>
    %cst_261 = arith.constant dense<0.000000e+00> : vector<16x512xf32>
    %571 = tpu.matmul %569, %570, %cst_261 {dimension_numbers = #tpu.dot_dimension_numbers<[1], [0], [0], [1], [0, 0, 1, 1], [], []>} : vector<16x128xbf16>, vector<128x512xbf16>, vector<16x512xf32> -> vector<16x512xf32>
    %572 = arith.truncf %556 : vector<16x128xf32> to vector<16x128xbf16>
    %c0_262 = arith.constant 0 : index
    %c0_263 = arith.constant 0 : index
    %573 = vector.load %arg9[%c0_262, %c0_263] : memref<128x512xbf16, #tpu.memory_space<vmem>>, vector<128x512xbf16>
    %cst_264 = arith.constant dense<0.000000e+00> : vector<16x512xf32>
    %574 = tpu.matmul %572, %573, %cst_264 {dimension_numbers = #tpu.dot_dimension_numbers<[1], [0], [0], [1], [0, 0, 1, 1], [], []>} : vector<16x128xbf16>, vector<128x512xbf16>, vector<16x512xf32> -> vector<16x512xf32>
    %575 = arith.addf %566, %571 : vector<16x512xf32>
    %576 = vector.extract_strided_slice %575 {offsets = [0, 0], sizes = [16, 128], strides = [1, 1]} : vector<16x512xf32> to vector<16x128xf32>
    %577 = arith.negf %576 : vector<16x128xf32>
    %578 = math.exp %577 : vector<16x128xf32>
    %cst_265 = arith.constant 1.000000e+00 : f32
    %579 = vector.broadcast %cst_265 : f32 to vector<16x128xf32>
    %580 = arith.addf %579, %578 : vector<16x128xf32>
    %581 = arith.divf %579, %580 : vector<16x128xf32>
    %582 = vector.extract_strided_slice %575 {offsets = [0, 128], sizes = [16, 128], strides = [1, 1]} : vector<16x512xf32> to vector<16x128xf32>
    %583 = arith.negf %582 : vector<16x128xf32>
    %584 = math.exp %583 : vector<16x128xf32>
    %cst_266 = arith.constant 1.000000e+00 : f32
    %585 = vector.broadcast %cst_266 : f32 to vector<16x128xf32>
    %586 = arith.addf %585, %584 : vector<16x128xf32>
    %587 = arith.divf %585, %586 : vector<16x128xf32>
    %588 = vector.extract_strided_slice %575 {offsets = [0, 256], sizes = [16, 128], strides = [1, 1]} : vector<16x512xf32> to vector<16x128xf32>
    %589 = math.tanh %588 : vector<16x128xf32>
    %590 = vector.extract_strided_slice %575 {offsets = [0, 384], sizes = [16, 128], strides = [1, 1]} : vector<16x512xf32> to vector<16x128xf32>
    %591 = arith.negf %590 : vector<16x128xf32>
    %592 = math.exp %591 : vector<16x128xf32>
    %cst_267 = arith.constant 1.000000e+00 : f32
    %593 = vector.broadcast %cst_267 : f32 to vector<16x128xf32>
    %594 = arith.addf %593, %592 : vector<16x128xf32>
    %595 = arith.divf %593, %594 : vector<16x128xf32>
    %c0_268 = arith.constant 0 : index
    %c0_269 = arith.constant 0 : index
    %596 = vector.load %arg18[%c0_268, %c0_269] : memref<16x128xf32, #tpu.memory_space<vmem>>, vector<16x128xf32>
    %597 = arith.mulf %587, %596 : vector<16x128xf32>
    %598 = arith.mulf %581, %589 : vector<16x128xf32>
    %599 = arith.addf %597, %598 : vector<16x128xf32>
    %c0_270 = arith.constant 0 : index
    %c0_271 = arith.constant 0 : index
    %600 = vector.load %arg18[%c0_270, %c0_271] : memref<16x128xf32, #tpu.memory_space<vmem>>, vector<16x128xf32>
    tpu.vector_store %arg18[%c0_270, %c0_271], %599 {strides = array<i32>} : memref<16x128xf32, #tpu.memory_space<vmem>>, vector<16x128xf32>,
    %601 = math.tanh %599 : vector<16x128xf32>
    %602 = arith.mulf %595, %601 : vector<16x128xf32>
    %c0_272 = arith.constant 0 : index
    %c0_273 = arith.constant 0 : index
    %603 = vector.load %arg20[%c0_272, %c0_273] : memref<16x128xf32, #tpu.memory_space<vmem>>, vector<16x128xf32>
    %604 = arith.maximumf %603, %602 : vector<16x128xf32>
    %c0_274 = arith.constant 0 : index
    %c0_275 = arith.constant 0 : index
    %605 = vector.load %arg20[%c0_274, %c0_275] : memref<16x128xf32, #tpu.memory_space<vmem>>, vector<16x128xf32>
    tpu.vector_store %arg20[%c0_274, %c0_275], %604 {strides = array<i32>} : memref<16x128xf32, #tpu.memory_space<vmem>>, vector<16x128xf32>,
    %606 = arith.addf %568, %574 : vector<16x512xf32>
    %607 = vector.extract_strided_slice %606 {offsets = [0, 0], sizes = [16, 128], strides = [1, 1]} : vector<16x512xf32> to vector<16x128xf32>
    %608 = arith.negf %607 : vector<16x128xf32>
    %609 = math.exp %608 : vector<16x128xf32>
    %cst_276 = arith.constant 1.000000e+00 : f32
    %610 = vector.broadcast %cst_276 : f32 to vector<16x128xf32>
    %611 = arith.addf %610, %609 : vector<16x128xf32>
    %612 = arith.divf %610, %611 : vector<16x128xf32>
    %613 = vector.extract_strided_slice %606 {offsets = [0, 128], sizes = [16, 128], strides = [1, 1]} : vector<16x512xf32> to vector<16x128xf32>
    %614 = arith.negf %613 : vector<16x128xf32>
    %615 = math.exp %614 : vector<16x128xf32>
    %cst_277 = arith.constant 1.000000e+00 : f32
    %616 = vector.broadcast %cst_277 : f32 to vector<16x128xf32>
    %617 = arith.addf %616, %615 : vector<16x128xf32>
    %618 = arith.divf %616, %617 : vector<16x128xf32>
    %619 = vector.extract_strided_slice %606 {offsets = [0, 256], sizes = [16, 128], strides = [1, 1]} : vector<16x512xf32> to vector<16x128xf32>
    %620 = math.tanh %619 : vector<16x128xf32>
    %621 = vector.extract_strided_slice %606 {offsets = [0, 384], sizes = [16, 128], strides = [1, 1]} : vector<16x512xf32> to vector<16x128xf32>
    %622 = arith.negf %621 : vector<16x128xf32>
    %623 = math.exp %622 : vector<16x128xf32>
    %cst_278 = arith.constant 1.000000e+00 : f32
    %624 = vector.broadcast %cst_278 : f32 to vector<16x128xf32>
    %625 = arith.addf %624, %623 : vector<16x128xf32>
    %626 = arith.divf %624, %625 : vector<16x128xf32>
    %c0_279 = arith.constant 0 : index
    %c0_280 = arith.constant 0 : index
    %627 = vector.load %arg19[%c0_279, %c0_280] : memref<16x128xf32, #tpu.memory_space<vmem>>, vector<16x128xf32>
    %628 = arith.mulf %618, %627 : vector<16x128xf32>
    %629 = arith.mulf %612, %620 : vector<16x128xf32>
    %630 = arith.addf %628, %629 : vector<16x128xf32>
    %c0_281 = arith.constant 0 : index
    %c0_282 = arith.constant 0 : index
    %631 = vector.load %arg19[%c0_281, %c0_282] : memref<16x128xf32, #tpu.memory_space<vmem>>, vector<16x128xf32>
    tpu.vector_store %arg19[%c0_281, %c0_282], %630 {strides = array<i32>} : memref<16x128xf32, #tpu.memory_space<vmem>>, vector<16x128xf32>,
    %632 = math.tanh %630 : vector<16x128xf32>
    %633 = arith.mulf %626, %632 : vector<16x128xf32>
    %c0_283 = arith.constant 0 : index
    %c0_284 = arith.constant 0 : index
    %634 = vector.load %arg21[%c0_283, %c0_284] : memref<16x128xf32, #tpu.memory_space<vmem>>, vector<16x128xf32>
    %635 = arith.maximumf %634, %633 : vector<16x128xf32>
    %c0_285 = arith.constant 0 : index
    %c0_286 = arith.constant 0 : index
    %636 = vector.load %arg21[%c0_285, %c0_286] : memref<16x128xf32, #tpu.memory_space<vmem>>, vector<16x128xf32>
    tpu.vector_store %arg21[%c0_285, %c0_286], %635 {strides = array<i32>} : memref<16x128xf32, #tpu.memory_space<vmem>>, vector<16x128xf32>,
    %c8_i32 = arith.constant 8 : i32
    %c0_287 = arith.constant 0 : index
    %c0_288 = arith.constant 0 : index
    %637 = vector.load %arg16[%c0_287, %c0_288] : memref<16x128xf32, #tpu.memory_space<vmem>>, vector<16x128xf32>
    tpu.vector_store %arg16[%c0_287, %c0_288], %602 {strides = array<i32>} : memref<16x128xf32, #tpu.memory_space<vmem>>, vector<16x128xf32>,
    %c0_289 = arith.constant 0 : index
    %c0_290 = arith.constant 0 : index
    %638 = vector.load %arg17[%c0_289, %c0_290] : memref<16x128xf32, #tpu.memory_space<vmem>>, vector<16x128xf32>
    tpu.vector_store %arg17[%c0_289, %c0_290], %633 {strides = array<i32>} : memref<16x128xf32, #tpu.memory_space<vmem>>, vector<16x128xf32>,
    %c0_i32_291 = arith.constant 0 : i32
    %639 = arith.cmpi eq, %arg1, %c0_i32_291 : i32
    %640 = arith.extui %639 : i1 to i32
    %c0_i32_292 = arith.constant 0 : i32
    %641 = arith.cmpi ne, %640, %c0_i32_292 : i32
    scf.if %641 {
      %c0_293 = arith.constant 0 : index
      %c0_294 = arith.constant 0 : index
      %642 = vector.load %arg20[%c0_293, %c0_294] : memref<16x128xf32, #tpu.memory_space<vmem>>, vector<16x128xf32>
      %643 = arith.truncf %642 : vector<16x128xf32> to vector<16x128xbf16>
      %c0_295 = arith.constant 0 : index
      %c0_296 = arith.constant 0 : index
      %644 = vector.load %arg10[%c0_295, %c0_296] : memref<128x128xbf16, #tpu.memory_space<vmem>>, vector<128x128xbf16>
      %cst_297 = arith.constant dense<0.000000e+00> : vector<16x128xf32>
      %645 = tpu.matmul %643, %644, %cst_297 {dimension_numbers = #tpu.dot_dimension_numbers<[1], [0], [0], [1], [0, 0, 1, 1], [], []>} : vector<16x128xbf16>, vector<128x128xbf16>, vector<16x128xf32> -> vector<16x128xf32>
      %c0_298 = arith.constant 0 : index
      %c0_299 = arith.constant 0 : index
      %646 = vector.load %arg21[%c0_298, %c0_299] : memref<16x128xf32, #tpu.memory_space<vmem>>, vector<16x128xf32>
      %647 = arith.truncf %646 : vector<16x128xf32> to vector<16x128xbf16>
      %c0_300 = arith.constant 0 : index
      %c0_301 = arith.constant 0 : index
      %648 = vector.load %arg11[%c0_300, %c0_301] : memref<128x128xbf16, #tpu.memory_space<vmem>>, vector<128x128xbf16>
      %cst_302 = arith.constant dense<0.000000e+00> : vector<16x128xf32>
      %649 = tpu.matmul %647, %648, %cst_302 {dimension_numbers = #tpu.dot_dimension_numbers<[1], [0], [0], [1], [0, 0, 1, 1], [], []>} : vector<16x128xbf16>, vector<128x128xbf16>, vector<16x128xf32> -> vector<16x128xf32>
      %650 = arith.addf %645, %649 : vector<16x128xf32>
      %c0_303 = arith.constant 0 : index
      %c0_304 = arith.constant 0 : index
      %651 = vector.load %arg12[%c0_303, %c0_304] : memref<1x128xf32, #tpu.memory_space<vmem>>, vector<1x128xf32>
      %652 = vector.broadcast %651 : vector<1x128xf32> to vector<16x128xf32>
      %653 = arith.addf %650, %652 : vector<16x128xf32>
      %c0_305 = arith.constant 0 : index
      %c0_306 = arith.constant 0 : index
      %654 = vector.load %arg13[%c0_305, %c0_306] : memref<16x128xf32, #tpu.memory_space<vmem>>, vector<16x128xf32>
      tpu.vector_store %arg13[%c0_305, %c0_306], %653 {strides = array<i32>} : memref<16x128xf32, #tpu.memory_space<vmem>>, vector<16x128xf32>,
    } else {
    }
    return
  }
  func.func @transform_0(%arg0: i32, %arg1: i32) -> (i32, i32, i32) {
    %c0_i32 = arith.constant 0 : i32
    %c0_i32_0 = arith.constant 0 : i32
    return %arg1, %arg0, %c0_i32 : i32, i32, i32
  }
  func.func @transform_1(%arg0: i32, %arg1: i32) -> (i32, i32, i32) {
    %c0_i32 = arith.constant 0 : i32
    %0 = arith.subi %c0_i32, %arg1 : i32
    %c0_i32_0 = arith.constant 0 : i32
    %c0_i32_1 = arith.constant 0 : i32
    return %0, %arg0, %c0_i32_0 : i32, i32, i32
  }
  func.func @transform_2(%arg0: i32, %arg1: i32) -> (i32, i32) {
    %c0_i32 = arith.constant 0 : i32
    %c0_i32_0 = arith.constant 0 : i32
    %c0_i32_1 = arith.constant 0 : i32
    return %c0_i32, %c0_i32_0 : i32, i32
  }
  func.func @transform_3(%arg0: i32, %arg1: i32) -> (i32, i32) {
    %c0_i32 = arith.constant 0 : i32
    %c0_i32_0 = arith.constant 0 : i32
    %c0_i32_1 = arith.constant 0 : i32
    return %c0_i32, %c0_i32_0 : i32, i32
  }
  func.func @transform_4(%arg0: i32, %arg1: i32) -> (i32, i32) {
    %c0_i32 = arith.constant 0 : i32
    %c0_i32_0 = arith.constant 0 : i32
    %c0_i32_1 = arith.constant 0 : i32
    return %c0_i32, %c0_i32_0 : i32, i32
  }
  func.func @transform_5(%arg0: i32, %arg1: i32) -> (i32, i32) {
    %c0_i32 = arith.constant 0 : i32
    %c0_i32_0 = arith.constant 0 : i32
    %c0_i32_1 = arith.constant 0 : i32
    return %c0_i32, %c0_i32_0 : i32, i32
  }
  func.func @transform_6(%arg0: i32, %arg1: i32) -> (i32, i32) {
    %c0_i32 = arith.constant 0 : i32
    %c0_i32_0 = arith.constant 0 : i32
    %c0_i32_1 = arith.constant 0 : i32
    return %c0_i32, %c0_i32_0 : i32, i32
  }
  func.func @transform_7(%arg0: i32, %arg1: i32) -> (i32, i32) {
    %c0_i32 = arith.constant 0 : i32
    %c0_i32_0 = arith.constant 0 : i32
    %c0_i32_1 = arith.constant 0 : i32
    return %c0_i32, %c0_i32_0 : i32, i32
  }
  func.func @transform_8(%arg0: i32, %arg1: i32) -> (i32, i32) {
    %c0_i32 = arith.constant 0 : i32
    %c0_i32_0 = arith.constant 0 : i32
    %c0_i32_1 = arith.constant 0 : i32
    return %c0_i32, %c0_i32_0 : i32, i32
  }
  func.func @transform_9(%arg0: i32, %arg1: i32) -> (i32, i32) {
    %c0_i32 = arith.constant 0 : i32
    %c0_i32_0 = arith.constant 0 : i32
    %c0_i32_1 = arith.constant 0 : i32
    return %c0_i32, %c0_i32_0 : i32, i32
  }
  func.func @transform_10(%arg0: i32, %arg1: i32) -> (i32, i32) {
    %c0_i32 = arith.constant 0 : i32
    %c0_i32_0 = arith.constant 0 : i32
    %c0_i32_1 = arith.constant 0 : i32
    return %c0_i32, %c0_i32_0 : i32, i32
  }
  func.func @transform_11(%arg0: i32, %arg1: i32) -> (i32, i32) {
    %c0_i32 = arith.constant 0 : i32
    %c0_i32_0 = arith.constant 0 : i32
    return %arg0, %c0_i32 : i32, i32
  }
}

</mosaic_0001>

<bundles_post_ra>
// kernel: my_blstm_text_forward.1
= control target key start
LH: loop header
LB: loop body
LE: loop exit
PB: predicated region body
PF: predicated region fallthrough
CT: control target
= control target key end

     0   :  { %v11311_v1 = vmov 0   ;;  %vm182_vm0 = vcmask 130048   ;;  %v11313_v63 = vmov 0.0|0.0   ;;  %vm8805_vm1 = vmmov 0   ;;  %s11299_s2 = inlined_call_operand.vmem [shape: bf16[16,512], index: 2, kind: input, shape index: {}]   ;;  %s11300_s0 = inlined_call_operand.vmem [shape: bf16[8,16,16], index: 0, kind: input, shape index: {}, may-alias: {0,1}]   ;;  %s11301_s3 = inlined_call_operand.vmem [shape: bf16[16,512], index: 3, kind: input, shape index: {}]   ;;  %s11302_s1 = inlined_call_operand.vmem [shape: bf16[8,16,16], index: 1, kind: input, shape index: {}, may-alias: {0,1}]   ;;  %s11303_s6 = inlined_call_operand.vmem [shape: bf16[128,512], index: 6, kind: input, shape index: {}]   ;;  %s11304_s7 = inlined_call_operand.vmem [shape: bf16[128,512], index: 7, kind: input, shape index: {}]   ;;  %s11305_s4 = inlined_call_operand.vmem [shape: f32[1,512], index: 4, kind: input, shape index: {}]   ;;  %s11306_s5 = inlined_call_operand.vmem [shape: f32[1,512], index: 5, kind: input, shape index: {}]   ;;  %s11307_s8 = inlined_call_operand.vmem [shape: bf16[128,128], index: 8, kind: input, shape index: {}]   ;;  %s11308_s9 = inlined_call_operand.vmem [shape: bf16[128,128], index: 9, kind: input, shape index: {}]   ;;  %s11309_s10 = inlined_call_operand.vmem [shape: f32[1,128], index: 10, kind: input, shape index: {}]   ;;  %s11310_s11 = inlined_call_operand.vmem [shape: f32[16,128], index: 11, kind: output, shape index: {}]  }
   0x1   :  { %v7862_v0 = vld [vmem:[%s11299_s2 + $0x4] ss:$16 sps:$4 sm:$0xff]   ;;  %239 = vmatprep.mubr.bf16.mxu0 %v11311_v1  ;;  %352 = vmatprep.mubr.bf16.mxu1 %v11311_v1  ;;  %v7864_v2 = vld [vmem:[%s11299_s2 + $0xc] ss:$16 sps:$4 sm:$0xff]   ;;  %v7866_v3 = vld [vmem:[%s11299_s2] ss:$16 sps:$4 sm:$0xff]  }
   0x2   :  { %207 = vmatprep.subr.bf16.mxu0 %v7862_v0  ;;  %v7867_v4 = vld [vmem:[%s11299_s2 + $0x8] ss:$16 sps:$4 sm:$0xff]   ;;  %320 = vmatprep.subr.bf16.mxu1 %v7864_v2  ;;  %v7868_v5 = vld [vmem:[%s11300_s0] sm:$0xff]   ;;  %v7875_v9 = vld [vmem:[%s11301_s3 + $0xc] ss:$16 sps:$4 sm:$0xff]  }
   0x3   :  { %208 = vmatpush1.bf16.msra.mxu0 %v7866_v3  ;;  %321 = vmatpush1.bf16.msra.mxu1 %v7867_v4  ;;  %v7869_v6 = vld [vmem:[%s11301_s3] ss:$16 sps:$4 sm:$0xff]   ;;  %v7871_v7 = vld [vmem:[%s11301_s3 + $0x4] ss:$16 sps:$4 sm:$0xff]   ;;  %v7873_v8 = vld [vmem:[%s11301_s3 + $0x8] ss:$16 sps:$4 sm:$0xff]  }
   0x4   :  { %623 = vmatprep.subr.bf16.mxu0 %v7871_v7  ;;  %736 = vmatprep.subr.bf16.mxu1 %v7875_v9  ;;  %v7872_v10 = vld [vmem:[%s11300_s0 + $0x8] sm:$0xff]   ;;  %v8907_v11 = vld [vmem:[%s11303_s6 + $0x4] ss:$16 sps:$4 sm:$0xff]   ;;  %v7877_v14 = vld [vmem:[%s11300_s0 + $0x18] sm:$0xff]  }
   0x5   :  { %v7876_v12 = vld [vmem:[%s11300_s0 + $0x10] sm:$0xff]   ;;  %v8918_v13 = vld [vmem:[%s11303_s6 + $0xc] ss:$16 sps:$4 sm:$0xff]   ;;  %v7878_v15 = vld [vmem:[%s11300_s0 + $0x20] sm:$0xff]  }
   0x6   :  { %6875 = vmatmul.mubr.msk.bf16.vlgmr.msra.gmra.mrb[0].mxu0 %vm182_vm0, %v7868_v5  ;;  %6883 = vmatmul.mubr.msk.bf16.vlgmr.msra.gmra.mrb[0].mxu1 %vm182_vm0, %v7868_v5  ;;  %v7879_v16 = vld [vmem:[%s11300_s0 + $0x28] sm:$0xff]   ;;  %v7880_v17 = vld [vmem:[%s11300_s0 + $0x30] sm:$0xff]   ;;  %v7881_v18 = vld [vmem:[%s11300_s0 + $0x38] sm:$0xff]  }
   0x7   :  { %624 = vmatpush1.bf16.msra.mxu0 %v7869_v6  ;;  %249 = vmatprep.mubr.bf16.mxu0 %v11311_v1  ;;  %v7882_v19 = vld [vmem:[%s11302_s1] sm:$0xff]   ;;  %v8976_v22 = vld [vmem:[%s11303_s6 + $0x8] ss:$16 sps:$4 sm:$0xff]   ;;  %v8981_v23 = vld [vmem:[%s11303_s6 + $0x2c] ss:$16 sps:$4 sm:$0xff]  }
   0x8   :  { %362 = vmatprep.mubr.bf16.mxu1 %v11311_v1  ;;  %737 = vmatpush1.bf16.msra.mxu1 %v7873_v8  ;;  %v8966_v20 = vld [vmem:[%s11303_s6] ss:$16 sps:$4 sm:$0xff]   ;;  %v8971_v21 = vld [vmem:[%s11303_s6 + $0x24] ss:$16 sps:$4 sm:$0xff]   ;;  %v9000_v26 = vld [vmem:[%s11303_s6 + $0x28] ss:$16 sps:$4 sm:$0xff]  }
   0x9   :  { %1132 = vmatprep.subr.bf16.mxu0 %v8907_v11  ;;  %1175 = vmatprep.subr.bf16.mxu1 %v8918_v13  ;;  %v8986_v24 = vld [vmem:[%s11303_s6 + $0x20] ss:$16 sps:$4 sm:$0xff]   ;;  %v8993_v25 = vld [vmem:[%s11303_s6 + $0x44] ss:$16 sps:$4 sm:$0xff]   ;;  %v7886_v27 = vld [vmem:[%s11302_s1 + $0x8] sm:$0xff]  }
   0xa   :  { %v9011_v28 = vld [vmem:[%s11303_s6 + $0x40] ss:$16 sps:$4 sm:$0xff]   ;;  %v9017_v29 = vld [vmem:[%s11303_s6 + $0x4c] ss:$16 sps:$4 sm:$0xff]   ;;  %v9023_v30 = vld [vmem:[%s11303_s6 + $0x64] ss:$16 sps:$4 sm:$0xff]  }
   0xb   :  { %v9028_v31 = vld [vmem:[%s11303_s6 + $0x48] ss:$16 sps:$4 sm:$0xff]   ;;  %v9034_v32 = vld [vmem:[%s11303_s6 + $0x6c] ss:$16 sps:$4 sm:$0xff]   ;;  %v9042_v33 = vld [vmem:[%s11303_s6 + $0x60] ss:$16 sps:$4 sm:$0xff]  }
   0xc   :  { %v9049_v34 = vld [vmem:[%s11303_s6 + $0x84] ss:$16 sps:$4 sm:$0xff]   ;;  %v9054_v35 = vld [vmem:[%s11303_s6 + $0x68] ss:$16 sps:$4 sm:$0xff]   ;;  %v9066_v37 = vld [vmem:[%s11303_s6 + $0x80] ss:$16 sps:$4 sm:$0xff]  }
   0xd   :  { %v7893_v36 = vld [vmem:[%s11302_s1 + $0x10] sm:$0xff]   ;;  %v9072_v38 = vld [vmem:[%s11303_s6 + $0x8c] ss:$16 sps:$4 sm:$0xff]   ;;  %v9082_v40 = vld [vmem:[%s11303_s6 + $0x88] ss:$16 sps:$4 sm:$0xff]  }
   0xe   :  { %6876 = vmatmul.mubr.msk.bf16.gmra.mrb[4].mxu0 %vm182_vm0, %v7872_v10  ;;  %6884 = vmatmul.mubr.msk.bf16.gmra.mrb[4].mxu1 %vm182_vm0, %v7872_v10  ;;  %v9077_v39 = vld [vmem:[%s11303_s6 + $0xa4] ss:$16 sps:$4 sm:$0xff]   ;;  %v9088_v41 = vld [vmem:[%s11303_s6 + $0xac] ss:$16 sps:$4 sm:$0xff]   ;;  %v9097_v42 = vld [vmem:[%s11303_s6 + $0xa0] ss:$16 sps:$4 sm:$0xff]  }
   0xf   :  { %259 = vmatprep.mubr.bf16.mxu0 %v11311_v1  ;;  %372 = vmatprep.mubr.bf16.mxu1 %v11311_v1  ;;  %v9104_v43 = vld [vmem:[%s11303_s6 + $0xc4] ss:$16 sps:$4 sm:$0xff]   ;;  %v9109_v44 = vld [vmem:[%s11303_s6 + $0xa8] ss:$16 sps:$4 sm:$0xff]   ;;  %v9121_v46 = vld [vmem:[%s11303_s6 + $0xc0] ss:$16 sps:$4 sm:$0xff]  }
  0x10   :  { %v7900_v45 = vld [vmem:[%s11302_s1 + $0x18] sm:$0xff]   ;;  %v9137_v49 = vld [vmem:[%s11303_s6 + $0xe4] ss:$16 sps:$4 sm:$0xff]   ;;  %v9152_v51 = vld [vmem:[%s11303_s6 + $0xe0] ss:$16 sps:$4 sm:$0xff]  }
  0x11   :  { %v9127_v47 = vld [vmem:[%s11303_s6 + $0xcc] ss:$16 sps:$4 sm:$0xff]   ;;  %v9132_v48 = vld [vmem:[%s11303_s6 + $0xc8] ss:$16 sps:$4 sm:$0xff]   ;;  %v9164_v53 = vld [vmem:[%s11304_s7 + $0x4] ss:$16 sps:$4 sm:$0xff]  }
  0x12   :  { %v9143_v50 = vld [vmem:[%s11303_s6 + $0xec] ss:$16 sps:$4 sm:$0xff]   ;;  %v9159_v52 = vld [vmem:[%s11303_s6 + $0xe8] ss:$16 sps:$4 sm:$0xff]   ;;  %v7907_v54 = vld [vmem:[%s11302_s1 + $0x20] sm:$0xff]  }
  0x13   :  { %v9177_v55 = vld [vmem:[%s11304_s7 + $0xc] ss:$16 sps:$4 sm:$0xff]   ;;  %v7921_v57 = vld [vmem:[%s11302_s1 + $0x30] sm:$0xff]   ;;  %v9216_v60 = vld [vmem:[%s11304_s7 + $0x8] ss:$16 sps:$4 sm:$0xff]  }
  0x14   :  { %v7914_v56 = vld [vmem:[%s11302_s1 + $0x28] sm:$0xff]   ;;  %v7931_v58 = vld [vmem:[%s11302_s1 + $0x38] sm:$0xff]   ;;  %v9211_v59 = vld [vmem:[%s11304_s7] ss:$16 sps:$4 sm:$0xff]  }
  0x15   :  { %v9221_v61 = vld [vmem:[%s11304_s7 + $0x24] ss:$16 sps:$4 sm:$0xff]   ;;  %v9226_v62 = vld [vmem:[%s11304_s7 + $0x2c] ss:$16 sps:$4 sm:$0xff]   ;;  %v9235_v0 = vld [vmem:[%s11304_s7 + $0x20] ss:$16 sps:$4 sm:$0xff]  }
  0x16   :  { %6877 = vmatmul.mubr.msk.bf16.gmra.mrb[8].mxu0 %vm182_vm0, %v7876_v12  ;;  %6885 = vmatmul.mubr.msk.bf16.gmra.mrb[8].mxu1 %vm182_vm0, %v7876_v12  ;;  %v9240_v2 = vld [vmem:[%s11304_s7 + $0x28] ss:$16 sps:$4 sm:$0xff]   ;;  %v9247_v3 = vld [vmem:[%s11304_s7 + $0x44] ss:$16 sps:$4 sm:$0xff]   ;;  %v9252_v4 = vld [vmem:[%s11304_s7 + $0x4c] ss:$16 sps:$4 sm:$0xff]  }
  0x17   :  { %269 = vmatprep.mubr.bf16.mxu0 %v11311_v1  ;;  %382 = vmatprep.mubr.bf16.mxu1 %v11311_v1  ;;  %v9261_v5 = vld [vmem:[%s11304_s7 + $0x40] ss:$16 sps:$4 sm:$0xff]   ;;  %v9266_v6 = vld [vmem:[%s11304_s7 + $0x48] ss:$16 sps:$4 sm:$0xff]   ;;  %v9273_v7 = vld [vmem:[%s11304_s7 + $0x64] ss:$16 sps:$4 sm:$0xff]  }
  0x18   :  { %v9278_v8 = vld [vmem:[%s11304_s7 + $0x6c] ss:$16 sps:$4 sm:$0xff]   ;;  %v9285_v9 = vld [vmem:[%s11304_s7 + $0x60] ss:$16 sps:$4 sm:$0xff]   ;;  %v9290_v10 = vld [vmem:[%s11304_s7 + $0x68] ss:$16 sps:$4 sm:$0xff]  }
  0x19   :  { %v9297_v12 = vld [vmem:[%s11304_s7 + $0x84] ss:$16 sps:$4 sm:$0xff]  }
  0x1e   :  { %6878 = vmatmul.mubr.msk.bf16.gmra.mrb[12].mxu0 %vm182_vm0, %v7877_v14  ;;  %6886 = vmatmul.mubr.msk.bf16.gmra.mrb[12].mxu1 %vm182_vm0, %v7877_v14  ;;  %v9302_v14 = vld [vmem:[%s11304_s7 + $0x8c] ss:$16 sps:$4 sm:$0xff]  }
  0x1f   :  { %279 = vmatprep.mubr.bf16.mxu0 %v11311_v1  ;;  %392 = vmatprep.mubr.bf16.mxu1 %v11311_v1 }
  0x26   :  { %6879 = vmatmul.mubr.msk.bf16.gmra.mrb[16].mxu0 %vm182_vm0, %v7878_v15  ;;  %6887 = vmatmul.mubr.msk.bf16.gmra.mrb[16].mxu1 %vm182_vm0, %v7878_v15  ;;  %v9309_v15 = vld [vmem:[%s11304_s7 + $0x80] ss:$16 sps:$4 sm:$0xff]  }
  0x27   :  { %289 = vmatprep.mubr.bf16.mxu0 %v11311_v1  ;;  %402 = vmatprep.mubr.bf16.mxu1 %v11311_v1 }
  0x2e   :  { %6880 = vmatmul.mubr.msk.bf16.gmra.mrb[20].mxu0 %vm182_vm0, %v7879_v16  ;;  %6888 = vmatmul.mubr.msk.bf16.gmra.mrb[20].mxu1 %vm182_vm0, %v7879_v16  ;;  %v9314_v16 = vld [vmem:[%s11304_s7 + $0x88] ss:$16 sps:$4 sm:$0xff]  }
  0x2f   :  { %299 = vmatprep.mubr.bf16.mxu0 %v11311_v1  ;;  %412 = vmatprep.mubr.bf16.mxu1 %v11311_v1 }
  0x36   :  { %6881 = vmatmul.mubr.msk.bf16.gmra.mrb[24].mxu0 %vm182_vm0, %v7880_v17  ;;  %6889 = vmatmul.mubr.msk.bf16.gmra.mrb[24].mxu1 %vm182_vm0, %v7880_v17  ;;  %v9321_v17 = vld [vmem:[%s11304_s7 + $0xa4] ss:$16 sps:$4 sm:$0xff]  }
  0x37   :  { %309 = vmatprep.mubr.bf16.mxu0 %v11311_v1  ;;  %422 = vmatprep.mubr.bf16.mxu1 %v11311_v1 }
  0x3e   :  { %6882 = vmatmul.mubr.msk.bf16.gmra.mrb[28].mxu0 %vm182_vm0, %v7881_v18  ;;  %6890 = vmatmul.mubr.msk.bf16.gmra.mrb[28].mxu1 %vm182_vm0, %v7881_v18  ;;  %v9326_v18 = vld [vmem:[%s11304_s7 + $0xac] ss:$16 sps:$4 sm:$0xff]  }
  0x3f   :  { %655 = vmatprep.mubr.bf16.mxu0 %v11311_v1  ;;  %768 = vmatprep.mubr.bf16.mxu1 %v11311_v1 }
  0x46   :  { %6903 = vmatmul.mubr.msk.bf16.vlgmr.msra.gmra.mrb[32].mxu0 %vm182_vm0, %v7882_v19  ;;  %6911 = vmatmul.mubr.msk.bf16.vlgmr.msra.gmra.mrb[32].mxu1 %vm182_vm0, %v7882_v19  ;;  %v9333_v19 = vld [vmem:[%s11304_s7 + $0xa0] ss:$16 sps:$4 sm:$0xff]  }
  0x47   :  { %1133 = vmatpush1.bf16.msra.mxu0 %v8966_v20  ;;  %665 = vmatprep.mubr.bf16.mxu0 %v11311_v1 }
  0x48   :  { %778 = vmatprep.mubr.bf16.mxu1 %v11311_v1  ;;  %1134 = vmatprep.subr.bf16.mxu0 %v8971_v21 }
  0x49   :  { %1176 = vmatpush1.bf16.msra.mxu1 %v8976_v22 }
  0x4a   :  { %1177 = vmatprep.subr.bf16.mxu1 %v8981_v23 }
  0x4b   :  { %1135 = vmatpush1.bf16.msra.mxu0 %v8986_v24 }
  0x4c   :  { %1136 = vmatprep.subr.bf16.mxu0 %v8993_v25 }
  0x4d   :  { %1178 = vmatpush1.bf16.msra.mxu1 %v9000_v26 }
  0x4e   :  { %6904 = vmatmul.mubr.msk.bf16.gmra.mrb[36].mxu0 %vm182_vm0, %v7886_v27  ;;  %6912 = vmatmul.mubr.msk.bf16.gmra.mrb[36].mxu1 %vm182_vm0, %v7886_v27  ;;  %v9338_v27 = vld [vmem:[%s11304_s7 + $0xa8] ss:$16 sps:$4 sm:$0xff]  }
  0x4f   :  { %675 = vmatprep.mubr.bf16.mxu0 %v11311_v1  ;;  %788 = vmatprep.mubr.bf16.mxu1 %v11311_v1 }
  0x50   :  { %1137 = vmatpush1.bf16.msra.mxu0 %v9011_v28  ;;  %1179 = vmatprep.subr.bf16.mxu1 %v9017_v29 }
  0x51   :  { %1138 = vmatprep.subr.bf16.mxu0 %v9023_v30  ;;  %1180 = vmatpush1.bf16.msra.mxu1 %v9028_v31 }
  0x52   :  { %1181 = vmatprep.subr.bf16.mxu1 %v9034_v32 }
  0x54   :  { %1139 = vmatpush1.bf16.msra.mxu0 %v9042_v33 }
  0x55   :  { %1140 = vmatprep.subr.bf16.mxu0 %v9049_v34  ;;  %1182 = vmatpush1.bf16.msra.mxu1 %v9054_v35 }
  0x56   :  { %6905 = vmatmul.mubr.msk.bf16.gmra.mrb[40].mxu0 %vm182_vm0, %v7893_v36  ;;  %6913 = vmatmul.mubr.msk.bf16.gmra.mrb[40].mxu1 %vm182_vm0, %v7893_v36  ;;  %v9345_v36 = vld [vmem:[%s11304_s7 + $0xc4] ss:$16 sps:$4 sm:$0xff]  }
  0x57   :  { %685 = vmatprep.mubr.bf16.mxu0 %v11311_v1  ;;  %798 = vmatprep.mubr.bf16.mxu1 %v11311_v1 }
  0x58   :  { %1141 = vmatpush1.bf16.msra.mxu0 %v9066_v37  ;;  %1183 = vmatprep.subr.bf16.mxu1 %v9072_v38 }
  0x59   :  { %1142 = vmatprep.subr.bf16.mxu0 %v9077_v39  ;;  %1184 = vmatpush1.bf16.msra.mxu1 %v9082_v40 }
  0x5a   :  { %1185 = vmatprep.subr.bf16.mxu1 %v9088_v41 }
  0x5c   :  { %1143 = vmatpush1.bf16.msra.mxu0 %v9097_v42 }
  0x5d   :  { %1144 = vmatprep.subr.bf16.mxu0 %v9104_v43  ;;  %1186 = vmatpush1.bf16.msra.mxu1 %v9109_v44 }
  0x5e   :  { %6906 = vmatmul.mubr.msk.bf16.gmra.mrb[44].mxu0 %vm182_vm0, %v7900_v45  ;;  %6914 = vmatmul.mubr.msk.bf16.gmra.mrb[44].mxu1 %vm182_vm0, %v7900_v45  ;;  %v9350_v45 = vld [vmem:[%s11304_s7 + $0xcc] ss:$16 sps:$4 sm:$0xff]  }
  0x5f   :  { %695 = vmatprep.mubr.bf16.mxu0 %v11311_v1  ;;  %808 = vmatprep.mubr.bf16.mxu1 %v11311_v1 }
  0x60   :  { %1145 = vmatpush1.bf16.msra.mxu0 %v9121_v46  ;;  %1187 = vmatprep.subr.bf16.mxu1 %v9127_v47 }
  0x61   :  { %1146 = vmatprep.subr.bf16.mxu0 %v9137_v49  ;;  %1188 = vmatpush1.bf16.msra.mxu1 %v9132_v48 }
  0x62   :  { %1189 = vmatprep.subr.bf16.mxu1 %v9143_v50 }
  0x64   :  { %1147 = vmatpush1.bf16.msra.mxu0 %v9152_v51 }
  0x65   :  { %1190 = vmatpush1.bf16.msra.mxu1 %v9159_v52  ;;  %1411 = vmatprep.subr.bf16.mxu0 %v9164_v53 }
  0x66   :  { %6907 = vmatmul.mubr.msk.bf16.gmra.mrb[48].mxu0 %vm182_vm0, %v7907_v54  ;;  %6915 = vmatmul.mubr.msk.bf16.gmra.mrb[48].mxu1 %vm182_vm0, %v7907_v54  ;;  %v9357_v54 = vld [vmem:[%s11304_s7 + $0xc0] ss:$16 sps:$4 sm:$0xff]  }
  0x67   :  { %705 = vmatprep.mubr.bf16.mxu0 %v11311_v1  ;;  %818 = vmatprep.mubr.bf16.mxu1 %v11311_v1 }
  0x68   :  { %1454 = vmatprep.subr.bf16.mxu1 %v9177_v55 }
  0x6e   :  { %6908 = vmatmul.mubr.msk.bf16.gmra.mrb[52].mxu0 %vm182_vm0, %v7914_v56  ;;  %6916 = vmatmul.mubr.msk.bf16.gmra.mrb[52].mxu1 %vm182_vm0, %v7914_v56  ;;  %v9362_v56 = vld [vmem:[%s11304_s7 + $0xc8] ss:$16 sps:$4 sm:$0xff]  }
  0x6f   :  { %715 = vmatprep.mubr.bf16.mxu0 %v11311_v1  ;;  %828 = vmatprep.mubr.bf16.mxu1 %v11311_v1  ;;  %11402 = vst [vmem:[#allocation10_spill] sm:$0xff] %v9362_v56 }
  0x76   :  { %6909 = vmatmul.mubr.msk.bf16.gmra.mrb[56].mxu0 %vm182_vm0, %v7921_v57  ;;  %6917 = vmatmul.mubr.msk.bf16.gmra.mrb[56].mxu1 %vm182_vm0, %v7921_v57  ;;  %v9369_v57 = vld [vmem:[%s11304_s7 + $0xe4] ss:$16 sps:$4 sm:$0xff]  }
  0x77   :  { %725 = vmatprep.mubr.bf16.mxu0 %v11311_v1  ;;  %838 = vmatprep.mubr.bf16.mxu1 %v11311_v1 }
  0x7e   :  { %6910 = vmatmul.mubr.msk.bf16.gmra.mrb[60].mxu0 %vm182_vm0, %v7931_v58  ;;  %6918 = vmatmul.mubr.msk.bf16.gmra.mrb[60].mxu1 %vm182_vm0, %v7931_v58  ;;  %v9374_v58 = vld [vmem:[%s11304_s7 + $0xec] ss:$16 sps:$4 sm:$0xff]  }
  0x7f   :  { %1164 = vmatprep.mubr.bf16.mxu0 %v11311_v1  ;;  %1207 = vmatprep.mubr.bf16.mxu1 %v11311_v1  ;;  %11403 = vst [vmem:[#allocation11_spill] sm:$0xff] %v9374_v58 }
  0x86   :  { %1165 = vmatmul.mubr.bf16.vlgmr.msra.gmra.mrb[0].mxu0 %v11313_v63  ;;  %1208 = vmatmul.mubr.bf16.vlgmr.msra.gmra.mrb[0].mxu1 %v11313_v63  ;;  %v9386_v63 = vld [vmem:[%s11304_s7 + $0xe8] ss:$16 sps:$4 sm:$0xff]  }
  0x87   :  { %1412 = vmatpush1.bf16.msra.mxu0 %v9211_v59  ;;  %1455 = vmatpush1.bf16.msra.mxu1 %v9216_v60 }
  0x88   :  { %1413 = vmatprep.subr.bf16.mxu0 %v9221_v61  ;;  %1456 = vmatprep.subr.bf16.mxu1 %v9226_v62 }
  0x89   :  { %1443 = vmatprep.mubr.bf16.mxu0 %v11311_v1  ;;  %1486 = vmatprep.mubr.bf16.mxu1 %v11311_v1  ;;  %v9381_v1 = vld [vmem:[%s11304_s7 + $0xe0] ss:$16 sps:$4 sm:$0xff]  }
  0x8b   :  { %1414 = vmatpush1.bf16.msra.mxu0 %v9235_v0  ;;  %1457 = vmatpush1.bf16.msra.mxu1 %v9240_v2 }
  0x8c   :  { %1415 = vmatprep.subr.bf16.mxu0 %v9247_v3  ;;  %1458 = vmatprep.subr.bf16.mxu1 %v9252_v4 }
  0x8f   :  { %1416 = vmatpush1.bf16.msra.mxu0 %v9261_v5  ;;  %1459 = vmatpush1.bf16.msra.mxu1 %v9266_v6 }
  0x90   :  { %1417 = vmatprep.subr.bf16.mxu0 %v9273_v7  ;;  %1460 = vmatprep.subr.bf16.mxu1 %v9278_v8 }
  0x93   :  { %1418 = vmatpush1.bf16.msra.mxu0 %v9285_v9  ;;  %1461 = vmatpush1.bf16.msra.mxu1 %v9290_v10 }
  0x94   :  { %1419 = vmatprep.subr.bf16.mxu0 %v9297_v12  ;;  %1462 = vmatprep.subr.bf16.mxu1 %v9302_v14 }
  0x97   :  { %1420 = vmatpush1.bf16.msra.mxu0 %v9309_v15  ;;  %1463 = vmatpush1.bf16.msra.mxu1 %v9314_v16 }
  0x98   :  { %1421 = vmatprep.subr.bf16.mxu0 %v9321_v17  ;;  %1464 = vmatprep.subr.bf16.mxu1 %v9326_v18 }
  0x9b   :  { %1422 = vmatpush1.bf16.msra.mxu0 %v9333_v19  ;;  %1465 = vmatpush1.bf16.msra.mxu1 %v9338_v27 }
  0x9c   :  { %1423 = vmatprep.subr.bf16.mxu0 %v9345_v36  ;;  %1466 = vmatprep.subr.bf16.mxu1 %v9350_v45 }
  0x9f   :  { %1424 = vmatpush1.bf16.msra.mxu0 %v9357_v54  ;;  %1467 = vmatpush1.bf16.msra.mxu1 %v9362_v56  ;;  %v11404_v56 = vmov 0.0|0.0  }
  0xa0   :  { %1425 = vmatprep.subr.bf16.mxu0 %v9369_v57  ;;  %1468 = vmatprep.subr.bf16.mxu1 %v9374_v58  ;;  %v11405_v58 = vmov 0  }
  0xa3   :  { %1426 = vmatpush1.bf16.msra.mxu0 %v9381_v1  ;;  %1469 = vmatpush1.bf16.msra.mxu1 %v9386_v63 }
  0xa4   :  { %1844 = vmatprep.subr.bf16.mxu0 %v8907_v11  ;;  %1887 = vmatprep.subr.bf16.mxu1 %v8918_v13  ;;  %v102_v11 = vlaneseq }
  0xa6   :  { %1444 = vmatmul.mubr.bf16.vlgmr.msra.gmra.mrb[60].mxu0 %v11404_v56  ;;  %1487 = vmatmul.mubr.bf16.vlgmr.msra.gmra.mrb[60].mxu1 %v11404_v56  ;;  %v9430_v13 = vshrl.u32 %v102_v11, 7 }
  0xa7   :  { %1845 = vmatpush1.bf16.msra.mxu0 %v8966_v20  ;;  %1888 = vmatpush1.bf16.msra.mxu1 %v8976_v22 }
  0xa8   :  { %1846 = vmatprep.subr.bf16.mxu0 %v8971_v21  ;;  %1889 = vmatprep.subr.bf16.mxu1 %v8981_v23  ;;  %v104_v20 = vsub.s32 0, %v9430_v13  ;;  %v100_v21 = vld [vmem:[%s11305_s4] sm:$0xf]  ;;  %v108_v22 = vsub.s32 1, %v9430_v13 }
  0xa9   :  { %1876 = vmatprep.mubr.bf16.mxu0 %v11405_v58  ;;  %1919 = vmatprep.mubr.bf16.mxu1 %v11405_v58 }
  0xaa   :  { %v9437_v23 = vrot.slane %v100_v21, %v104_v20 }
  0xab   :  { %1847 = vmatpush1.bf16.msra.mxu0 %v8986_v24  ;;  %1890 = vmatpush1.bf16.msra.mxu1 %v9000_v26  ;;  %v9439_v24 = vrot.slane %v100_v21, %v108_v22 }
  0xac   :  { %1848 = vmatprep.subr.bf16.mxu0 %v8993_v25  ;;  %1891 = vmatprep.subr.bf16.mxu1 %v9017_v29  ;;  %11406 = vst [vmem:[#allocation12_spill] sm:$0xff] %v9437_v23 }
  0xaf   :  { %1849 = vmatpush1.bf16.msra.mxu0 %v9011_v28  ;;  %1892 = vmatpush1.bf16.msra.mxu1 %v9028_v31  ;;  %v116_v28 = vsub.s32 3, %v9430_v13 }
  0xb0   :  { %1850 = vmatprep.subr.bf16.mxu0 %v9023_v30  ;;  %1893 = vmatprep.subr.bf16.mxu1 %v9034_v32 }
  0xb3   :  { %1851 = vmatpush1.bf16.msra.mxu0 %v9042_v33  ;;  %1894 = vmatpush1.bf16.msra.mxu1 %v9054_v35 }
  0xb4   :  { %1852 = vmatprep.subr.bf16.mxu0 %v9049_v34  ;;  %1895 = vmatprep.subr.bf16.mxu1 %v9072_v38 }
  0xb7   :  { %1853 = vmatpush1.bf16.msra.mxu0 %v9066_v37  ;;  %1896 = vmatpush1.bf16.msra.mxu1 %v9082_v40  ;;  %v112_v37 = vsub.s32 2, %v9430_v13 }
  0xb8   :  { %1854 = vmatprep.subr.bf16.mxu0 %v9077_v39  ;;  %1897 = vmatprep.subr.bf16.mxu1 %v9088_v41 }
  0xbb   :  { %1855 = vmatpush1.bf16.msra.mxu0 %v9097_v42  ;;  %1898 = vmatpush1.bf16.msra.mxu1 %v9109_v44  ;;  %v9448_v42 = vrot.slane %v100_v21, %v116_v28 }
  0xbc   :  { %1856 = vmatprep.subr.bf16.mxu0 %v9104_v43  ;;  %1899 = vmatprep.subr.bf16.mxu1 %v9127_v47  ;;  %v9453_v47 = vrot.slane %v100_v21, %v112_v37 }
  0xbf   :  { %1857 = vmatpush1.bf16.msra.mxu0 %v9121_v46  ;;  %1900 = vmatpush1.bf16.msra.mxu1 %v9132_v48 }
  0xc0   :  { %1858 = vmatprep.subr.bf16.mxu0 %v9137_v49  ;;  %1901 = vmatprep.subr.bf16.mxu1 %v9143_v50 }
  0xc3   :  { %1859 = vmatpush1.bf16.msra.mxu0 %v9152_v51  ;;  %1902 = vmatpush1.bf16.msra.mxu1 %v9159_v52 }
  0xc4   :  { %2123 = vmatprep.subr.bf16.mxu0 %v9164_v53  ;;  %2166 = vmatprep.subr.bf16.mxu1 %v9177_v55 }
 0x159   :  { %v1166_v25 = vpop.f32.mrb[0].mxu0  ;;  %v1209_v26 = vpop.f32.mrb[0].mxu1 }
 0x15a   :  { %v7602_v29 = vadd.f32 %v1166_v25, %v9437_v23  ;;  %v1168_v30 = vpop.f32.mrb[1].mxu0  ;;  %v1211_v31 = vpop.f32.mrb[1].mxu1  ;;  %v7634_v50 = vadd.f32 %v1209_v26, %v9453_v47 }
 0x15b   :  { %v7603_v32 = vadd.f32 %v1168_v30, %v9439_v24  ;;  %v1170_v33 = vpop.f32.mrb[2].mxu0  ;;  %v1213_v34 = vpop.f32.mrb[2].mxu1  ;;  %v7635_v48 = vadd.f32 %v1211_v31, %v9448_v42 }
 0x15c   :  { %v6983_v35 = vmul.f32 -1.442695, %v7602_v29  ;;  %v7604_v38 = vadd.f32 %v1170_v33, %v9437_v23  ;;  %v1172_v39 = vpop.f32.mrb[3].mxu0  ;;  %v1215_v40 = vpop.f32.mrb[3].mxu1  ;;  %v7636_v11 = vadd.f32 %v1213_v34, %v9453_v47  ;;  %v517_v33 = vld [vmem:[%s11306_s5] sm:$0xf] }
 0x15d   :  { %v6985_v41 = vmul.f32 -1.442695, %v7603_v32  ;;  %v7605_v43 = vadd.f32 %v1172_v39, %v9439_v24  ;;  %v7637_v49 = vadd.f32 %v1215_v40, %v9448_v42  ;;  %v6987_v51 = vmul.f32 -1.442695, %v7635_v48 }
 0x15e   :  { %8290 = vpow2.f32 %v6983_v35  ;;  %v6984_v44 = vmul.f32 -1.442695, %v7604_v38  ;;  %v9462_v40 = vrot.slane %v517_v33, %v104_v20 }
 0x15f   :  { %8292 = vpow2.f32 %v6985_v41  ;;  %v6986_v46 = vmul.f32 -1.442695, %v7605_v43  ;;  %v6988_v52 = vmul.f32 -1.442695, %v7637_v49 }
 0x160   :  { %8294 = vpow2.f32 %v6984_v44  ;;  %11407 = vst [vmem:[#allocation13_spill] sm:$0xff] %v9462_v40 }
 0x161   :  { %8296 = vpow2.f32 %v6986_v46  ;;  %v9464_v46 = vrot.slane %v517_v33, %v108_v22 }
 0x162   :  { %8298 = vtanh.f32 %v7634_v50 }
 0x163   :  { %8300 = vpow2.f32 %v6987_v51 }
 0x164   :  { %8302 = vpow2.f32 %v6988_v52 }
 0x168   :  { %v8291_v53 = vpop.eup %8290 }
 0x169   :  { %v8293_v55 = vpop.eup %8292  ;;  %v1511_v56 = vadd.f32 1.0, %v8291_v53 }
 0x16a   :  { %v1523_v25 = vadd.f32 1.0, %v8293_v55  ;;  %v8295_v21 = vpop.eup %8294 }
 0x16b   :  { %8304 = vrcp.f32 %v1511_v56  ;;  %v1512_v29 = vadd.f32 1.0, %v8295_v21  ;;  %v8297_v30 = vpop.eup %8296 }
 0x16c   :  { %8306 = vrcp.f32 %v1523_v25  ;;  %v1524_v31 = vadd.f32 1.0, %v8297_v30  ;;  %v8299_v26 = vpop.eup %8298 }
 0x16d   :  { %8308 = vtanh.f32 %v7636_v11  ;;  %v8301_v32 = vpop.eup %8300 }
 0x16e   :  { %8310 = vrcp.f32 %v1512_v29  ;;  %v8303_v35 = vpop.eup %8302  ;;  %v1537_v44 = vadd.f32 1.0, %v8301_v32 }
 0x16f   :  { %8312 = vrcp.f32 %v1524_v31  ;;  %v1538_v49 = vadd.f32 1.0, %v8303_v35 }
 0x170   :  { %8314 = vrcp.f32 %v1537_v44  ;;  %v9482_v44 = vrot.slane %v517_v33, %v112_v37 }
 0x171   :  { %8316 = vrcp.f32 %v1538_v49 }
 0x175   :  { %v8305_v38 = vpop.eup %8304 }
 0x176   :  { %v8307_v34 = vpop.eup %8306  ;;  %v1547_v39 = vmul.f32 %v8305_v38, %v8299_v26 }
 0x177   :  { %v8309_v41 = vpop.eup %8308  ;;  %v1545_v43 = vmul.f32 0.0, %v8307_v34 }
 0x178   :  { %v8311_v48 = vpop.eup %8310 }
 0x179   :  { %v9466_v50 = vadd.f32 %v1547_v39, %v1545_v43  ;;  %v1548_v51 = vmul.f32 %v8311_v48, %v8309_v41  ;;  %v1445_v52 = vpop.f32.mrb[60].mxu0  ;;  %v1488_v53 = vpop.f32.mrb[60].mxu1  ;;  %v9477_v39 = vrot.slane %v517_v33, %v116_v28 }
 0x17a   :  { %v8313_v55 = vpop.eup %8312  ;;  %v7694_v56 = vadd.f32 %v1445_v52, %v9462_v40  ;;  %v1447_v11 = vpop.f32.mrb[61].mxu0 }
 0x17b   :  { %v1490_v25 = vpop.f32.mrb[61].mxu1  ;;  %v1546_v20 = vmul.f32 0.0, %v8313_v55  ;;  %v7695_v21 = vadd.f32 %v1447_v11, %v9464_v46  ;;  %v1449_v29 = vpop.f32.mrb[62].mxu0  ;;  %8318 = vtanh.f32 %v9466_v50 }
 0x17c   :  { %v1492_v30 = vpop.f32.mrb[62].mxu1  ;;  %v6989_v22 = vmul.f32 -1.442695, %v7694_v56  ;;  %v7696_v31 = vadd.f32 %v1449_v29, %v9462_v40  ;;  %v1451_v26 = vpop.f32.mrb[63].mxu0  ;;  %v7727_v48 = vadd.f32 %v1490_v25, %v9477_v39 }
 0x17d   :  { %v1494_v32 = vpop.f32.mrb[63].mxu1  ;;  %v9472_v35 = vadd.f32 %v1548_v51, %v1546_v20  ;;  %v6991_v38 = vmul.f32 -1.442695, %v7695_v21  ;;  %v7697_v34 = vadd.f32 %v1451_v26, %v9464_v46  ;;  %v8315_v49 = vpop.eup %8314  ;;  %v7726_v51 = vadd.f32 %v1488_v53, %v9482_v44 }
 0x17e   :  { %8320 = vpow2.f32 %v6989_v22  ;;  %v6990_v41 = vmul.f32 -1.442695, %v7696_v31  ;;  %v8317_v52 = vpop.eup %8316  ;;  %v6993_v55 = vmul.f32 -1.442695, %v7727_v48  ;;  %v7729_v28 = vadd.f32 %v1494_v32, %v9477_v39 }
 0x17f   :  { %8322 = vtanh.f32 %v9472_v35  ;;  %v6992_v43 = vmul.f32 -1.442695, %v7697_v34  ;;  %v7728_v20 = vadd.f32 %v1492_v30, %v9482_v44 }
 0x180   :  { %8324 = vpow2.f32 %v6991_v38  ;;  %v6994_v37 = vmul.f32 -1.442695, %v7729_v28  ;;  %v9615_v28 = vld [vmem:[%s11303_s6 + $0x64] ss:$16 sps:$4 sm:$0xff]  }
 0x181   :  { %8326 = vpow2.f32 %v6990_v41 }
 0x182   :  { %8328 = vpow2.f32 %v6992_v43 }
 0x183   :  { %8330 = vtanh.f32 %v7726_v51  ;;  %v9596_v51 = vld [vmem:[%s11303_s6 + $0x4c] ss:$16 sps:$4 sm:$0xff]  }
 0x184   :  { %8332 = vpow2.f32 %v6993_v55  ;;  %v9606_v55 = vld [vmem:[%s11303_s6 + $0x48] ss:$16 sps:$4 sm:$0xff]  }
 0x185   :  { %v8319_v56 = vpop.eup %8318 }
 0x186   :  { %v9488_v33 = vmul.f32 %v8319_v56, %v8315_v49  ;;  %v9620_v56 = vld [vmem:[%s11303_s6 + $0x6c] ss:$16 sps:$4 sm:$0xff]  }
 0x188   :  { %v8321_v11 = vpop.eup %8320 }
 0x189   :  { %v8323_v21 = vpop.eup %8322  ;;  %v1577_v29 = vadd.f32 1.0, %v8321_v11  ;;  %v9625_v11 = vld [vmem:[%s11303_s6 + $0x60] ss:$16 sps:$4 sm:$0xff]  }
 0x18a   :  { %v8325_v13 = vpop.eup %8324  ;;  %v9490_v25 = vmul.f32 %v8323_v21, %v8317_v52  ;;  %v9601_v52 = vld [vmem:[%s11303_s6 + $0x40] ss:$16 sps:$4 sm:$0xff]   ;;  %v9639_v21 = vld [vmem:[%s11303_s6 + $0x84] ss:$16 sps:$4 sm:$0xff]  }
 0x18b   :  { %8334 = vrcp.f32 %v1577_v29  ;;  %v1589_v53 = vadd.f32 1.0, %v8325_v13  ;;  %v8327_v22 = vpop.eup %8326  ;;  %v9644_v29 = vld [vmem:[%s11303_s6 + $0x8c] ss:$16 sps:$4 sm:$0xff]   ;;  %v9649_v13 = vld [vmem:[%s11303_s6 + $0x80] ss:$16 sps:$4 sm:$0xff]  }
 0x18c   :  { %8336 = vtanh.f32 %v7728_v20  ;;  %v1651_v31 = vpack.c.bf16 %v9490_v25, %v9488_v33  ;;  %v1578_v26 = vadd.f32 1.0, %v8327_v22  ;;  %v8329_v30 = vpop.eup %8328  ;;  %v9630_v20 = vld [vmem:[%s11303_s6 + $0x68] ss:$16 sps:$4 sm:$0xff]   ;;  %v9668_v22 = vld [vmem:[%s11303_s6 + $0xac] ss:$16 sps:$4 sm:$0xff]  }
 0x18d   :  { %8338 = vrcp.f32 %v1589_v53  ;;  %v1590_v32 = vadd.f32 1.0, %v8329_v30  ;;  %v8331_v38 = vpop.eup %8330  ;;  %v9663_v53 = vld [vmem:[%s11303_s6 + $0xa4] ss:$16 sps:$4 sm:$0xff]  }
 0x18e   :  { %8340 = vpow2.f32 %v6994_v37  ;;  %1877 = vmatmul.mubr.bf16.vlgmr.msra.gmra.mrb[4].mxu0 %v1651_v31  ;;  %1920 = vmatmul.mubr.bf16.vlgmr.msra.gmra.mrb[4].mxu1 %v1651_v31  ;;  %v8333_v34 = vpop.eup %8332  ;;  %v9654_v37 = vld [vmem:[%s11303_s6 + $0x88] ss:$16 sps:$4 sm:$0xff]   ;;  %v9673_v31 = vld [vmem:[%s11303_s6 + $0xa0] ss:$16 sps:$4 sm:$0xff]   ;;  %v9687_v30 = vld [vmem:[%s11303_s6 + $0xc4] ss:$16 sps:$4 sm:$0xff]  }
 0x18f   :  { %8342 = vrcp.f32 %v1578_v26  ;;  %2124 = vmatpush1.bf16.msra.mxu0 %v9211_v59  ;;  %2167 = vmatpush1.bf16.msra.mxu1 %v9216_v60  ;;  %v9678_v26 = vld [vmem:[%s11303_s6 + $0xa8] ss:$16 sps:$4 sm:$0xff]  }
 0x190   :  { %2125 = vmatprep.subr.bf16.mxu0 %v9221_v61  ;;  %2168 = vmatprep.subr.bf16.mxu1 %v9226_v62  ;;  %8344 = vrcp.f32 %v1590_v32  ;;  %v9692_v32 = vld [vmem:[%s11303_s6 + $0xcc] ss:$16 sps:$4 sm:$0xff]  }
 0x191   :  { %2155 = vmatprep.mubr.bf16.mxu0 %v11405_v58  ;;  %2198 = vmatprep.mubr.bf16.mxu1 %v11405_v58 }
 0x193   :  { %2126 = vmatpush1.bf16.msra.mxu0 %v9235_v0  ;;  %2169 = vmatpush1.bf16.msra.mxu1 %v9240_v2  ;;  %v1603_v2 = vadd.f32 1.0, %v8333_v34  ;;  %v9702_v34 = vld [vmem:[%s11303_s6 + $0xc8] ss:$16 sps:$4 sm:$0xff]  }
 0x194   :  { %2127 = vmatprep.subr.bf16.mxu0 %v9247_v3  ;;  %2170 = vmatprep.subr.bf16.mxu1 %v9252_v4 }
 0x195   :  { %v8335_v59 = vpop.eup %8334  ;;  %8346 = vrcp.f32 %v1603_v2 }
 0x196   :  { %v8337_v60 = vpop.eup %8336  ;;  %v1613_v61 = vmul.f32 %v8335_v59, %v8331_v38  ;;  %v9697_v38 = vld [vmem:[%s11303_s6 + $0xc0] ss:$16 sps:$4 sm:$0xff]   ;;  %v9711_v59 = vld [vmem:[%s11303_s6 + $0xe4] ss:$16 sps:$4 sm:$0xff]  }
 0x197   :  { %v8339_v41 = vpop.eup %8338  ;;  %2128 = vmatpush1.bf16.msra.mxu0 %v9261_v5  ;;  %2171 = vmatpush1.bf16.msra.mxu1 %v9266_v6 }
 0x198   :  { %v8341_v62 = vpop.eup %8340  ;;  %v1611_v43 = vmul.f32 0.0, %v8339_v41  ;;  %2129 = vmatprep.subr.bf16.mxu0 %v9273_v7  ;;  %2172 = vmatprep.subr.bf16.mxu1 %v9278_v8  ;;  %v11408_v8 = vld [vmem:[#allocation10_spill] sm:$0xff]  ;;  %v9726_v41 = vld [vmem:[%s11303_s6 + $0xe8] ss:$16 sps:$4 sm:$0xff]  }
 0x199   :  { %v8343_v0 = vpop.eup %8342  ;;  %v1604_v49 = vadd.f32 1.0, %v8341_v62  ;;  %11412 = vst [vmem:[#allocation14_spill] sm:$0xff] %v9726_v41  ;;  %v9735_v62 = vld [vmem:[%s11304_s7 + $0x4] ss:$16 sps:$4 sm:$0xff]  }
 0x19a   :  { %v9508_v48 = vadd.f32 %v1613_v61, %v1611_v43  ;;  %v1614_v3 = vmul.f32 %v8343_v0, %v8337_v60  ;;  %v8345_v4 = vpop.eup %8344  ;;  %v9716_v60 = vld [vmem:[%s11303_s6 + $0xec] ss:$16 sps:$4 sm:$0xff]   ;;  %v9721_v61 = vld [vmem:[%s11303_s6 + $0xe0] ss:$16 sps:$4 sm:$0xff]   ;;  %11413 = vst [vmem:[#allocation15_spill] sm:$0xff] %v9735_v62 }
 0x19b   :  { %2130 = vmatpush1.bf16.msra.mxu0 %v9285_v9  ;;  %2173 = vmatpush1.bf16.msra.mxu1 %v9290_v10  ;;  %v1612_v5 = vmul.f32 0.0, %v8345_v4  ;;  %v11409_v10 = vld [vmem:[#allocation11_spill] sm:$0xff]  ;;  %11410 = vst [vmem:[#allocation10_spill] sm:$0xff] %v9716_v60 }
 0x19c   :  { %2131 = vmatprep.subr.bf16.mxu0 %v9297_v12  ;;  %2174 = vmatprep.subr.bf16.mxu1 %v9302_v14  ;;  %8348 = vtanh.f32 %v9508_v48  ;;  %11411 = vst [vmem:[#allocation11_spill] sm:$0xff] %v9721_v61  ;;  %v9740_v43 = vld [vmem:[%s11304_s7 + $0xc] ss:$16 sps:$4 sm:$0xff]  }
 0x19d   :  { %v9515_v6 = vadd.f32 %v1614_v3, %v1612_v5  ;;  %8350 = vrcp.f32 %v1604_v49  ;;  %11414 = vst [vmem:[#allocation16_spill] sm:$0xff] %v9740_v43 }
 0x19f   :  { %2132 = vmatpush1.bf16.msra.mxu0 %v9309_v15  ;;  %2175 = vmatpush1.bf16.msra.mxu1 %v9314_v16  ;;  %8352 = vtanh.f32 %v9515_v6  ;;  %v8347_v7 = vpop.eup %8346 }
 0x1a0   :  { %2133 = vmatprep.subr.bf16.mxu0 %v9321_v17  ;;  %2176 = vmatprep.subr.bf16.mxu1 %v9326_v18  ;;  %v9543_v18 = vld [vmem:[%s11303_s6 + $0x4] ss:$16 sps:$4 sm:$0xff]  }
 0x1a3   :  { %2134 = vmatpush1.bf16.msra.mxu0 %v9333_v19  ;;  %2177 = vmatpush1.bf16.msra.mxu1 %v9338_v27  ;;  %v9558_v19 = vld [vmem:[%s11303_s6 + $0x8] ss:$16 sps:$4 sm:$0xff]   ;;  %v9567_v27 = vld [vmem:[%s11303_s6 + $0x24] ss:$16 sps:$4 sm:$0xff]  }
 0x1a4   :  { %2135 = vmatprep.subr.bf16.mxu0 %v9345_v36  ;;  %2178 = vmatprep.subr.bf16.mxu1 %v9350_v45  ;;  %v9572_v36 = vld [vmem:[%s11303_s6 + $0x2c] ss:$16 sps:$4 sm:$0xff]   ;;  %v9577_v45 = vld [vmem:[%s11303_s6 + $0x20] ss:$16 sps:$4 sm:$0xff]  }
 0x1a6   :  { %v8349_v9 = vpop.eup %8348 }
 0x1a7   :  { %2136 = vmatpush1.bf16.msra.mxu0 %v9357_v54  ;;  %2179 = vmatpush1.bf16.msra.mxu1 %v11408_v8  ;;  %v8351_v12 = vpop.eup %8350  ;;  %v9532_v15 = vmul.f32 %v8349_v9, %v8347_v7  ;;  %v9582_v54 = vld [vmem:[%s11303_s6 + $0x28] ss:$16 sps:$4 sm:$0xff]  }
 0x1a8   :  { %2137 = vmatprep.subr.bf16.mxu0 %v9369_v57  ;;  %2180 = vmatprep.subr.bf16.mxu1 %v11409_v10  ;;  %v9591_v57 = vld [vmem:[%s11303_s6 + $0x44] ss:$16 sps:$4 sm:$0xff]  }
 0x1a9   :  { %v8353_v14 = vpop.eup %8352 }
 0x1aa   :  { %v9534_v16 = vmul.f32 %v8353_v14, %v8351_v12 }
 0x1ab   :  { %2138 = vmatpush1.bf16.msra.mxu0 %v9381_v1  ;;  %2181 = vmatpush1.bf16.msra.mxu1 %v9386_v63  ;;  %v9548_v1 = vld [vmem:[%s11303_s6 + $0xc] ss:$16 sps:$4 sm:$0xff]   ;;  %v9553_v63 = vld [vmem:[%s11303_s6] ss:$16 sps:$4 sm:$0xff]  }
 0x1ac   :  { %v1930_v17 = vpack.c.bf16 %v9534_v16, %v9532_v15  ;;  %2556 = vmatprep.subr.bf16.mxu0 %v9543_v18  ;;  %2599 = vmatprep.subr.bf16.mxu1 %v9548_v1 }
 0x1ae   :  { %2156 = vmatmul.mubr.bf16.vlgmr.msra.gmra.mrb[56].mxu0 %v1930_v17  ;;  %2199 = vmatmul.mubr.bf16.vlgmr.msra.gmra.mrb[56].mxu1 %v1930_v17 }
 0x1af   :  { %2588 = vmatprep.mubr.bf16.mxu0 %v11405_v58  ;;  %2631 = vmatprep.mubr.bf16.mxu1 %v11405_v58 }
 0x1b0   :  { %2557 = vmatpush1.bf16.msra.mxu0 %v9553_v63  ;;  %2600 = vmatpush1.bf16.msra.mxu1 %v9558_v19 }
 0x1b1   :  { %2558 = vmatprep.subr.bf16.mxu0 %v9567_v27  ;;  %2601 = vmatprep.subr.bf16.mxu1 %v9572_v36 }
 0x1b4   :  { %2559 = vmatpush1.bf16.msra.mxu0 %v9577_v45  ;;  %2602 = vmatpush1.bf16.msra.mxu1 %v9582_v54 }
 0x1b5   :  { %2560 = vmatprep.subr.bf16.mxu0 %v9591_v57  ;;  %2603 = vmatprep.subr.bf16.mxu1 %v9596_v51 }
 0x1b8   :  { %2561 = vmatpush1.bf16.msra.mxu0 %v9601_v52  ;;  %2604 = vmatpush1.bf16.msra.mxu1 %v9606_v55 }
 0x1b9   :  { %2562 = vmatprep.subr.bf16.mxu0 %v9615_v28  ;;  %2605 = vmatprep.subr.bf16.mxu1 %v9620_v56 }
 0x1bc   :  { %2563 = vmatpush1.bf16.msra.mxu0 %v9625_v11  ;;  %2606 = vmatpush1.bf16.msra.mxu1 %v9630_v20 }
 0x1bd   :  { %2564 = vmatprep.subr.bf16.mxu0 %v9639_v21  ;;  %2607 = vmatprep.subr.bf16.mxu1 %v9644_v29 }
 0x1c0   :  { %2565 = vmatpush1.bf16.msra.mxu0 %v9649_v13  ;;  %2608 = vmatpush1.bf16.msra.mxu1 %v9654_v37 }
 0x1c1   :  { %2566 = vmatprep.subr.bf16.mxu0 %v9663_v53  ;;  %2609 = vmatprep.subr.bf16.mxu1 %v9668_v22 }
 0x1c4   :  { %2567 = vmatpush1.bf16.msra.mxu0 %v9673_v31  ;;  %2610 = vmatpush1.bf16.msra.mxu1 %v9678_v26 }
 0x1c5   :  { %2568 = vmatprep.subr.bf16.mxu0 %v9687_v30  ;;  %2611 = vmatprep.subr.bf16.mxu1 %v9692_v32 }
 0x1c8   :  { %2569 = vmatpush1.bf16.msra.mxu0 %v9697_v38  ;;  %2612 = vmatpush1.bf16.msra.mxu1 %v9702_v34 }
 0x1c9   :  { %2570 = vmatprep.subr.bf16.mxu0 %v9711_v59  ;;  %2613 = vmatprep.subr.bf16.mxu1 %v9716_v60 }
 0x1cc   :  { %2571 = vmatpush1.bf16.msra.mxu0 %v9721_v61  ;;  %2614 = vmatpush1.bf16.msra.mxu1 %v9726_v41 }
 0x1cd   :  { %2835 = vmatprep.subr.bf16.mxu0 %v9735_v62  ;;  %2878 = vmatprep.subr.bf16.mxu1 %v9740_v43 }
 0x261   :  { %v1878_v0 = vpop.f32.mrb[4].mxu0  ;;  %v1921_v2 = vpop.f32.mrb[4].mxu1 }
 0x262   :  { %v7606_v3 = vadd.f32 %v1878_v0, %v9437_v23  ;;  %v1880_v4 = vpop.f32.mrb[5].mxu0  ;;  %v1923_v49 = vpop.f32.mrb[5].mxu1 }
 0x263   :  { %v7607_v5 = vadd.f32 %v1880_v4, %v9439_v24  ;;  %v1882_v7 = vpop.f32.mrb[6].mxu0  ;;  %v1925_v8 = vpop.f32.mrb[6].mxu1  ;;  %v7639_v0 = vadd.f32 %v1923_v49, %v9448_v42  ;;  %v7638_v4 = vadd.f32 %v1921_v2, %v9453_v47 }
 0x264   :  { %v7059_v9 = vmul.f32 -1.442695, %v7606_v3  ;;  %v7608_v10 = vadd.f32 %v1882_v7, %v9437_v23  ;;  %v1884_v12 = vpop.f32.mrb[7].mxu0  ;;  %v1927_v14 = vpop.f32.mrb[7].mxu1  ;;  %v7640_v7 = vadd.f32 %v1925_v8, %v9453_v47 }
 0x265   :  { %v7061_v17 = vmul.f32 -1.442695, %v7607_v5  ;;  %v7609_v62 = vadd.f32 %v1884_v12, %v9439_v24  ;;  %v7063_v61 = vmul.f32 -1.442695, %v7639_v0  ;;  %v7641_v3 = vadd.f32 %v1927_v14, %v9448_v42 }
 0x266   :  { %8354 = vpow2.f32 %v7059_v9  ;;  %v7060_v43 = vmul.f32 -1.442695, %v7608_v10 }
 0x267   :  { %8356 = vpow2.f32 %v7061_v17  ;;  %v7062_v41 = vmul.f32 -1.442695, %v7609_v62  ;;  %v7064_v9 = vmul.f32 -1.442695, %v7641_v3 }
 0x268   :  { %8358 = vpow2.f32 %v7060_v43 }
 0x269   :  { %8360 = vpow2.f32 %v7062_v41 }
 0x26a   :  { %8362 = vtanh.f32 %v7638_v4 }
 0x26b   :  { %8364 = vpow2.f32 %v7063_v61 }
 0x26c   :  { %8366 = vtanh.f32 %v7640_v7 }
 0x270   :  { %v8355_v23 = vpop.eup %8354 }
 0x271   :  { %v8357_v5 = vpop.eup %8356  ;;  %v2223_v60 = vadd.f32 1.0, %v8355_v23 }
 0x272   :  { %v2235_v10 = vadd.f32 1.0, %v8357_v5  ;;  %v8359_v62 = vpop.eup %8358 }
 0x273   :  { %8368 = vrcp.f32 %v2223_v60  ;;  %v2224_v43 = vadd.f32 1.0, %v8359_v62  ;;  %v8361_v41 = vpop.eup %8360 }
 0x274   :  { %8370 = vrcp.f32 %v2235_v10  ;;  %v2236_v2 = vadd.f32 1.0, %v8361_v41  ;;  %v8363_v49 = vpop.eup %8362 }
 0x275   :  { %8372 = vpow2.f32 %v7064_v9  ;;  %v8365_v12 = vpop.eup %8364 }
 0x276   :  { %8374 = vrcp.f32 %v2224_v43  ;;  %v8367_v8 = vpop.eup %8366  ;;  %v2249_v23 = vadd.f32 1.0, %v8365_v12 }
 0x277   :  { %8376 = vrcp.f32 %v2236_v2 }
 0x278   :  { %8378 = vrcp.f32 %v2249_v23 }
 0x27d   :  { %v8369_v14 = vpop.eup %8368 }
 0x27e   :  { %v8371_v17 = vpop.eup %8370  ;;  %v2259_v0 = vmul.f32 %v8369_v14, %v8363_v49 }
 0x27f   :  { %v8373_v61 = vpop.eup %8372  ;;  %v2257_v4 = vmul.f32 %v8371_v17, %v9466_v50 }
 0x280   :  { %v8375_v3 = vpop.eup %8374  ;;  %v2250_v9 = vadd.f32 1.0, %v8373_v61 }
 0x281   :  { %v9753_v7 = vadd.f32 %v2259_v0, %v2257_v4  ;;  %v2260_v60 = vmul.f32 %v8375_v3, %v8367_v8  ;;  %v8377_v5 = vpop.eup %8376  ;;  %v2157_v10 = vpop.f32.mrb[56].mxu0 }
 0x282   :  { %v2200_v62 = vpop.f32.mrb[56].mxu1  ;;  %v2258_v43 = vmul.f32 %v8377_v5, %v9472_v35  ;;  %v7690_v41 = vadd.f32 %v2157_v10, %v9462_v40  ;;  %v2159_v2 = vpop.f32.mrb[57].mxu0 }
 0x283   :  { %8380 = vtanh.f32 %v9753_v7  ;;  %v2202_v49 = vpop.f32.mrb[57].mxu1  ;;  %v7691_v12 = vadd.f32 %v2159_v2, %v9464_v46  ;;  %v2161_v50 = vpop.f32.mrb[58].mxu0  ;;  %v7722_v2 = vadd.f32 %v2200_v62, %v9482_v44 }
 0x284   :  { %v2204_v14 = vpop.f32.mrb[58].mxu1  ;;  %v9759_v17 = vadd.f32 %v2260_v60, %v2258_v43  ;;  %v7065_v8 = vmul.f32 -1.442695, %v7690_v41  ;;  %v7692_v0 = vadd.f32 %v2161_v50, %v9462_v40  ;;  %v2163_v23 = vpop.f32.mrb[59].mxu0  ;;  %8382 = vrcp.f32 %v2250_v9 }
 0x285   :  { %v2206_v61 = vpop.f32.mrb[59].mxu1  ;;  %v7067_v4 = vmul.f32 -1.442695, %v7691_v12  ;;  %v7693_v3 = vadd.f32 %v2163_v23, %v9464_v46  ;;  %v7723_v10 = vadd.f32 %v2202_v49, %v9477_v39  ;;  %v8379_v60 = vpop.eup %8378  ;;  %v1559_v41 = vmax.f32 %v9488_v33, -3.4028235e+38 }
 0x286   :  { %8384 = vtanh.f32 %v9759_v17  ;;  %v7066_v35 = vmul.f32 -1.442695, %v7692_v0  ;;  %v7725_v50 = vadd.f32 %v2206_v61, %v9477_v39  ;;  %v7724_v0 = vadd.f32 %v2204_v14, %v9482_v44  ;;  %v9775_v33 = vld [vmem:[%s11304_s7] ss:$16 sps:$4 sm:$0xff]   ;;  %v9780_v14 = vld [vmem:[%s11304_s7 + $0x8] ss:$16 sps:$4 sm:$0xff]  }
 0x287   :  { %8386 = vpow2.f32 %v7065_v8  ;;  %v7068_v5 = vmul.f32 -1.442695, %v7693_v3  ;;  %v7069_v12 = vmul.f32 -1.442695, %v7723_v10  ;;  %v1560_v49 = vmax.f32 %v9490_v25, -3.4028235e+38 }
 0x288   :  { %8388 = vpow2.f32 %v7067_v4  ;;  %v7070_v61 = vmul.f32 -1.442695, %v7725_v50 }
 0x289   :  { %8390 = vpow2.f32 %v7066_v35 }
 0x28a   :  { %8392 = vpow2.f32 %v7068_v5 }
 0x28b   :  { %8394 = vtanh.f32 %v7722_v2 }
 0x28c   :  { %8396 = vpow2.f32 %v7069_v12 }
 0x28d   :  { %v8381_v43 = vpop.eup %8380  ;;  %8398 = vtanh.f32 %v7724_v0 }
 0x28e   :  { %v2267_v9 = vmul.f32 %v8381_v43, %v8379_v60  ;;  %v8383_v23 = vpop.eup %8382  ;;  %v9787_v43 = vld [vmem:[%s11304_s7 + $0x24] ss:$16 sps:$4 sm:$0xff]  }
 0x290   :  { %v9769_v8 = vmax.f32 %v1559_v41, %v2267_v9  ;;  %v8385_v4 = vpop.eup %8384  ;;  %v9792_v41 = vld [vmem:[%s11304_s7 + $0x2c] ss:$16 sps:$4 sm:$0xff]  }
 0x291   :  { %v8387_v3 = vpop.eup %8386  ;;  %v2268_v62 = vmul.f32 %v8385_v4, %v8383_v23  ;;  %11415 = vst [vmem:[#allocation17_spill] sm:$0xff] %v9792_v41  ;;  %v9804_v23 = vld [vmem:[%s11304_s7 + $0x28] ss:$16 sps:$4 sm:$0xff]   ;;  %v9811_v4 = vld [vmem:[%s11304_s7 + $0x44] ss:$16 sps:$4 sm:$0xff]  }
 0x292   :  { %v8389_v35 = vpop.eup %8388  ;;  %v2289_v5 = vadd.f32 1.0, %v8387_v3  ;;  %11417 = vst [vmem:[#allocation19_spill] sm:$0xff] %v9804_v23  ;;  %11418 = vst [vmem:[#allocation20_spill] sm:$0xff] %v9811_v4  ;;  %v9816_v3 = vld [vmem:[%s11304_s7 + $0x4c] ss:$16 sps:$4 sm:$0xff]  }
 0x293   :  { %v2301_v10 = vadd.f32 1.0, %v8389_v35  ;;  %v9782_v60 = vmax.f32 %v1560_v49, %v2268_v62  ;;  %v2363_v25 = vpack.c.bf16 %v2268_v62, %v2267_v9  ;;  %v8391_v2 = vpop.eup %8390  ;;  %v9799_v9 = vld [vmem:[%s11304_s7 + $0x20] ss:$16 sps:$4 sm:$0xff]   ;;  %11419 = vst [vmem:[#allocation21_spill] sm:$0xff] %v9816_v3  ;;  %v9830_v62 = vld [vmem:[%s11304_s7 + $0x48] ss:$16 sps:$4 sm:$0xff]  }
 0x294   :  { %8400 = vrcp.f32 %v2289_v5  ;;  %v2290_v12 = vadd.f32 1.0, %v8391_v2  ;;  %v8393_v50 = vpop.eup %8392  ;;  %11416 = vst [vmem:[#allocation18_spill] sm:$0xff] %v9799_v9  ;;  %v9825_v49 = vld [vmem:[%s11304_s7 + $0x40] ss:$16 sps:$4 sm:$0xff]   ;;  %11421 = vst [vmem:[#allocation23_spill] sm:$0xff] %v9830_v62 }
 0x295   :  { %8402 = vrcp.f32 %v2301_v10  ;;  %2589 = vmatmul.mubr.bf16.vlgmr.msra.gmra.mrb[8].mxu0 %v2363_v25  ;;  %2632 = vmatmul.mubr.bf16.vlgmr.msra.gmra.mrb[8].mxu1 %v2363_v25  ;;  %v2302_v0 = vadd.f32 1.0, %v8393_v50  ;;  %11420 = vst [vmem:[#allocation22_spill] sm:$0xff] %v9825_v49  ;;  %v8395_v35 = vpop.eup %8394  ;;  %v9837_v5 = vld [vmem:[%s11304_s7 + $0x64] ss:$16 sps:$4 sm:$0xff]   ;;  %v9854_v50 = vld [vmem:[%s11304_s7 + $0x68] ss:$16 sps:$4 sm:$0xff]  }
 0x296   :  { %8404 = vpow2.f32 %v7070_v61  ;;  %2836 = vmatpush1.bf16.msra.mxu0 %v9775_v33  ;;  %2879 = vmatpush1.bf16.msra.mxu1 %v9780_v14  ;;  %11422 = vst [vmem:[#allocation24_spill] sm:$0xff] %v9837_v5  ;;  %v9842_v61 = vld [vmem:[%s11304_s7 + $0x6c] ss:$16 sps:$4 sm:$0xff]   ;;  %v8397_v10 = vpop.eup %8396 }
 0x297   :  { %8406 = vrcp.f32 %v2290_v12  ;;  %2837 = vmatprep.subr.bf16.mxu0 %v9787_v43  ;;  %2880 = vmatprep.subr.bf16.mxu1 %v9792_v41  ;;  %11423 = vst [vmem:[#allocation25_spill] sm:$0xff] %v9842_v61  ;;  %v8399_v25 = vpop.eup %8398  ;;  %v9849_v12 = vld [vmem:[%s11304_s7 + $0x60] ss:$16 sps:$4 sm:$0xff]  }
 0x298   :  { %2867 = vmatprep.mubr.bf16.mxu0 %v11405_v58  ;;  %2910 = vmatprep.mubr.bf16.mxu1 %v11405_v58  ;;  %8408 = vrcp.f32 %v2302_v0 }
 0x29a   :  { %2838 = vmatpush1.bf16.msra.mxu0 %v9799_v9  ;;  %2881 = vmatpush1.bf16.msra.mxu1 %v9804_v23 }
 0x29b   :  { %2839 = vmatprep.subr.bf16.mxu0 %v9811_v4  ;;  %2882 = vmatprep.subr.bf16.mxu1 %v9816_v3  ;;  %v2315_v4 = vadd.f32 1.0, %v8397_v10 }
 0x29d   :  { %8410 = vrcp.f32 %v2315_v4 }
 0x29e   :  { %v8401_v2 = vpop.eup %8400  ;;  %2840 = vmatpush1.bf16.msra.mxu0 %v9825_v49  ;;  %2883 = vmatpush1.bf16.msra.mxu1 %v9830_v62  ;;  %v9861_v62 = vld [vmem:[%s11304_s7 + $0x84] ss:$16 sps:$4 sm:$0xff]   ;;  %v9866_v49 = vld [vmem:[%s11304_s7 + $0x8c] ss:$16 sps:$4 sm:$0xff]  }
 0x29f   :  { %v8403_v0 = vpop.eup %8402  ;;  %v2325_v3 = vmul.f32 %v8401_v2, %v8395_v35  ;;  %2841 = vmatprep.subr.bf16.mxu0 %v9837_v5  ;;  %2884 = vmatprep.subr.bf16.mxu1 %v9842_v61  ;;  %v9876_v2 = vld [vmem:[%s11304_s7 + $0x80] ss:$16 sps:$4 sm:$0xff]   ;;  %v9881_v61 = vld [vmem:[%s11304_s7 + $0x88] ss:$16 sps:$4 sm:$0xff]  }
 0x2a0   :  { %v8405_v23 = vpop.eup %8404  ;;  %v2323_v9 = vmul.f32 %v8403_v0, %v9508_v48  ;;  %11424 = vst [vmem:[#allocation26_spill] sm:$0xff] %v9876_v2  ;;  %11425 = vst [vmem:[#allocation27_spill] sm:$0xff] %v9881_v61  ;;  %v9929_v0 = vld [vmem:[%s11304_s7 + $0xc0] ss:$16 sps:$4 sm:$0xff]  }
 0x2a1   :  { %v8407_v41 = vpop.eup %8406  ;;  %v2316_v48 = vadd.f32 1.0, %v8405_v23  ;;  %v9904_v23 = vld [vmem:[%s11304_s7 + $0xa0] ss:$16 sps:$4 sm:$0xff]   ;;  %11433 = vst [vmem:[#allocation35_spill] sm:$0xff] %v9929_v0 }
 0x2a2   :  { %v9869_v35 = vadd.f32 %v2325_v3, %v2323_v9  ;;  %v2326_v10 = vmul.f32 %v8407_v41, %v8399_v25  ;;  %2842 = vmatpush1.bf16.msra.mxu0 %v9849_v12  ;;  %2885 = vmatpush1.bf16.msra.mxu1 %v9854_v50  ;;  %v8409_v5 = vpop.eup %8408  ;;  %v9888_v41 = vld [vmem:[%s11304_s7 + $0xa4] ss:$16 sps:$4 sm:$0xff]   ;;  %v9893_v9 = vld [vmem:[%s11304_s7 + $0xac] ss:$16 sps:$4 sm:$0xff]   ;;  %11429 = vst [vmem:[#allocation31_spill] sm:$0xff] %v9904_v23 }
 0x2a3   :  { %2843 = vmatprep.subr.bf16.mxu0 %v9861_v62  ;;  %2886 = vmatprep.subr.bf16.mxu1 %v9866_v49  ;;  %11426 = vst [vmem:[#allocation28_spill] sm:$0xff] %v9888_v41  ;;  %11427 = vst [vmem:[#allocation29_spill] sm:$0xff] %v9893_v9  ;;  %v2324_v3 = vmul.f32 %v8409_v5, %v9515_v6  ;;  %v9909_v25 = vld [vmem:[%s11304_s7 + $0xa8] ss:$16 sps:$4 sm:$0xff]   ;;  %v9916_v6 = vld [vmem:[%s11304_s7 + $0xc4] ss:$16 sps:$4 sm:$0xff]  }
 0x2a4   :  { %8412 = vtanh.f32 %v9869_v35  ;;  %11430 = vst [vmem:[#allocation32_spill] sm:$0xff] %v9909_v25  ;;  %11431 = vst [vmem:[#allocation33_spill] sm:$0xff] %v9916_v6  ;;  %v9921_v5 = vld [vmem:[%s11304_s7 + $0xcc] ss:$16 sps:$4 sm:$0xff]  }
 0x2a5   :  { %v9897_v4 = vadd.f32 %v2326_v10, %v2324_v3  ;;  %8414 = vrcp.f32 %v2316_v48  ;;  %11432 = vst [vmem:[#allocation34_spill] sm:$0xff] %v9921_v5  ;;  %v9934_v10 = vld [vmem:[%s11304_s7 + $0xc8] ss:$16 sps:$4 sm:$0xff]   ;;  %v9941_v48 = vld [vmem:[%s11304_s7 + $0xe4] ss:$16 sps:$4 sm:$0xff]  }
 0x2a6   :  { %2844 = vmatpush1.bf16.msra.mxu0 %v9876_v2  ;;  %2887 = vmatpush1.bf16.msra.mxu1 %v9881_v61  ;;  %11434 = vst [vmem:[#allocation36_spill] sm:$0xff] %v9934_v10  ;;  %11435 = vst [vmem:[#allocation37_spill] sm:$0xff] %v9941_v48  ;;  %v9946_v3 = vld [vmem:[%s11304_s7 + $0xec] ss:$16 sps:$4 sm:$0xff]   ;;  %v1626_v2 = vmax.f32 %v9534_v16, -3.4028235e+38 }
 0x2a7   :  { %11428 = vst [vmem:[#allocation30_spill] sm:$0xff] %v9897_v4  ;;  %2845 = vmatprep.subr.bf16.mxu0 %v9888_v41  ;;  %2888 = vmatprep.subr.bf16.mxu1 %v9893_v9  ;;  %8416 = vtanh.f32 %v9897_v4  ;;  %v1625_v9 = vmax.f32 %v9532_v15, -3.4028235e+38  ;;  %v11436_v16 = vld [vmem:[#allocation10_spill] sm:$0xff] }
 0x2aa   :  { %2846 = vmatpush1.bf16.msra.mxu0 %v9904_v23  ;;  %2889 = vmatpush1.bf16.msra.mxu1 %v9909_v25  ;;  %v8411_v25 = vpop.eup %8410 }
 0x2ab   :  { %2847 = vmatprep.subr.bf16.mxu0 %v9916_v6  ;;  %2890 = vmatprep.subr.bf16.mxu1 %v9921_v5  ;;  %v9953_v5 = vld [vmem:[%s11304_s7 + $0xe0] ss:$16 sps:$4 sm:$0xff]   ;;  %v9958_v6 = vld [vmem:[%s11304_s7 + $0xe8] ss:$16 sps:$4 sm:$0xff]  }
 0x2ae   :  { %v8413_v23 = vpop.eup %8412  ;;  %2848 = vmatpush1.bf16.msra.mxu0 %v9929_v0  ;;  %2891 = vmatpush1.bf16.msra.mxu1 %v9934_v10 }
 0x2af   :  { %2849 = vmatprep.subr.bf16.mxu0 %v9941_v48  ;;  %2892 = vmatprep.subr.bf16.mxu1 %v9946_v3  ;;  %v2333_v41 = vmul.f32 %v8413_v23, %v8411_v25  ;;  %v8415_v0 = vpop.eup %8414 }
 0x2b1   :  { %v9963_v61 = vmax.f32 %v1625_v9, %v2333_v41  ;;  %v8417_v10 = vpop.eup %8416 }
 0x2b2   :  { %2850 = vmatpush1.bf16.msra.mxu0 %v9953_v5  ;;  %2893 = vmatpush1.bf16.msra.mxu1 %v9958_v6  ;;  %v2334_v4 = vmul.f32 %v8417_v10, %v8415_v0 }
 0x2b3   :  { %3268 = vmatprep.subr.bf16.mxu0 %v9543_v18  ;;  %3311 = vmatprep.subr.bf16.mxu1 %v9548_v1  ;;  %v11437_v18 = vld [vmem:[#allocation11_spill] sm:$0xff]  ;;  %v11438_v1 = vld [vmem:[#allocation14_spill] sm:$0xff] }
 0x2b4   :  { %v9970_v15 = vmax.f32 %v1626_v2, %v2334_v4  ;;  %v2642_v48 = vpack.c.bf16 %v2334_v4, %v2333_v41 }
 0x2b6   :  { %2868 = vmatmul.mubr.bf16.vlgmr.msra.gmra.mrb[52].mxu0 %v2642_v48  ;;  %2911 = vmatmul.mubr.bf16.vlgmr.msra.gmra.mrb[52].mxu1 %v2642_v48 }
 0x2b7   :  { %3269 = vmatpush1.bf16.msra.mxu0 %v9553_v63  ;;  %3312 = vmatpush1.bf16.msra.mxu1 %v9558_v19  ;;  %v11439_v63 = vld [vmem:[#allocation15_spill] sm:$0xff]  ;;  %v11440_v19 = vld [vmem:[#allocation16_spill] sm:$0xff] }
 0x2b8   :  { %3270 = vmatprep.subr.bf16.mxu0 %v9567_v27  ;;  %3313 = vmatprep.subr.bf16.mxu1 %v9572_v36 }
 0x2b9   :  { %3300 = vmatprep.mubr.bf16.mxu0 %v11405_v58  ;;  %3343 = vmatprep.mubr.bf16.mxu1 %v11405_v58 }
 0x2bb   :  { %3271 = vmatpush1.bf16.msra.mxu0 %v9577_v45  ;;  %3314 = vmatpush1.bf16.msra.mxu1 %v9582_v54  ;;  %v11441_v45 = vld [vmem:[#allocation12_spill] sm:$0xff] }
 0x2bc   :  { %3272 = vmatprep.subr.bf16.mxu0 %v9591_v57  ;;  %3315 = vmatprep.subr.bf16.mxu1 %v9596_v51 }
 0x2bf   :  { %3273 = vmatpush1.bf16.msra.mxu0 %v9601_v52  ;;  %3316 = vmatpush1.bf16.msra.mxu1 %v9606_v55 }
 0x2c0   :  { %3274 = vmatprep.subr.bf16.mxu0 %v9615_v28  ;;  %3317 = vmatprep.subr.bf16.mxu1 %v9620_v56 }
 0x2c3   :  { %3275 = vmatpush1.bf16.msra.mxu0 %v9625_v11  ;;  %3318 = vmatpush1.bf16.msra.mxu1 %v9630_v20 }
 0x2c4   :  { %3276 = vmatprep.subr.bf16.mxu0 %v9639_v21  ;;  %3319 = vmatprep.subr.bf16.mxu1 %v9644_v29 }
 0x2c7   :  { %3277 = vmatpush1.bf16.msra.mxu0 %v9649_v13  ;;  %3320 = vmatpush1.bf16.msra.mxu1 %v9654_v37 }
 0x2c8   :  { %3278 = vmatprep.subr.bf16.mxu0 %v9663_v53  ;;  %3321 = vmatprep.subr.bf16.mxu1 %v9668_v22 }
 0x2cb   :  { %3279 = vmatpush1.bf16.msra.mxu0 %v9673_v31  ;;  %3322 = vmatpush1.bf16.msra.mxu1 %v9678_v26 }
 0x2cc   :  { %3280 = vmatprep.subr.bf16.mxu0 %v9687_v30  ;;  %3323 = vmatprep.subr.bf16.mxu1 %v9692_v32 }
 0x2cf   :  { %3281 = vmatpush1.bf16.msra.mxu0 %v9697_v38  ;;  %3324 = vmatpush1.bf16.msra.mxu1 %v9702_v34 }
 0x2d0   :  { %3282 = vmatprep.subr.bf16.mxu0 %v9711_v59  ;;  %3325 = vmatprep.subr.bf16.mxu1 %v11436_v16 }
 0x2d3   :  { %3283 = vmatpush1.bf16.msra.mxu0 %v11437_v18  ;;  %3326 = vmatpush1.bf16.msra.mxu1 %v11438_v1 }
 0x2d4   :  { %3547 = vmatprep.subr.bf16.mxu0 %v11439_v63  ;;  %3590 = vmatprep.subr.bf16.mxu1 %v11440_v19 }
 0x368   :  { %v2590_v27 = vpop.f32.mrb[8].mxu0  ;;  %v2633_v36 = vpop.f32.mrb[8].mxu1 }
 0x369   :  { %v7610_v54 = vadd.f32 %v2590_v27, %v11441_v45  ;;  %v2592_v57 = vpop.f32.mrb[9].mxu0  ;;  %v2635_v51 = vpop.f32.mrb[9].mxu1  ;;  %v7642_v31 = vadd.f32 %v2633_v36, %v9453_v47 }
 0x36a   :  { %v7611_v52 = vadd.f32 %v2592_v57, %v9439_v24  ;;  %v2594_v55 = vpop.f32.mrb[10].mxu0  ;;  %v2637_v28 = vpop.f32.mrb[10].mxu1  ;;  %v7643_v22 = vadd.f32 %v2635_v51, %v9448_v42 }
 0x36b   :  { %v7135_v56 = vmul.f32 -1.442695, %v7610_v54  ;;  %v7612_v11 = vadd.f32 %v2594_v55, %v11441_v45  ;;  %v2596_v20 = vpop.f32.mrb[11].mxu0  ;;  %v2639_v21 = vpop.f32.mrb[11].mxu1  ;;  %v7644_v32 = vadd.f32 %v2637_v28, %v9453_v47 }
 0x36c   :  { %v7137_v29 = vmul.f32 -1.442695, %v7611_v52  ;;  %v7613_v13 = vadd.f32 %v2596_v20, %v9439_v24  ;;  %v7139_v26 = vmul.f32 -1.442695, %v7643_v22  ;;  %v7645_v30 = vadd.f32 %v2639_v21, %v9448_v42 }
 0x36d   :  { %8418 = vpow2.f32 %v7135_v56  ;;  %v7136_v37 = vmul.f32 -1.442695, %v7612_v11 }
 0x36e   :  { %8420 = vpow2.f32 %v7137_v29  ;;  %v7138_v53 = vmul.f32 -1.442695, %v7613_v13  ;;  %v7140_v2 = vmul.f32 -1.442695, %v7645_v30 }
 0x36f   :  { %8422 = vpow2.f32 %v7136_v37 }
 0x370   :  { %8424 = vpow2.f32 %v7138_v53 }
 0x371   :  { %8426 = vtanh.f32 %v7642_v31 }
 0x372   :  { %8428 = vpow2.f32 %v7139_v26 }
 0x373   :  { %8430 = vtanh.f32 %v7644_v32 }
 0x377   :  { %v8419_v38 = vpop.eup %8418 }
 0x378   :  { %v8421_v34 = vpop.eup %8420  ;;  %v2935_v59 = vadd.f32 1.0, %v8419_v38 }
 0x379   :  { %v2947_v41 = vadd.f32 1.0, %v8421_v34  ;;  %v8423_v9 = vpop.eup %8422 }
 0x37a   :  { %8432 = vrcp.f32 %v2935_v59  ;;  %v2936_v4 = vadd.f32 1.0, %v8423_v9  ;;  %v8425_v23 = vpop.eup %8424 }
 0x37b   :  { %8434 = vrcp.f32 %v2947_v41  ;;  %v2948_v25 = vadd.f32 1.0, %v8425_v23  ;;  %v8427_v0 = vpop.eup %8426 }
 0x37c   :  { %8436 = vpow2.f32 %v7140_v2  ;;  %v8429_v10 = vpop.eup %8428 }
 0x37d   :  { %8438 = vrcp.f32 %v2936_v4  ;;  %v8431_v48 = vpop.eup %8430  ;;  %v2961_v63 = vadd.f32 1.0, %v8429_v10 }
 0x37e   :  { %8440 = vrcp.f32 %v2948_v25 }
 0x37f   :  { %8442 = vrcp.f32 %v2961_v63 }
 0x384   :  { %v8433_v16 = vpop.eup %8432 }
 0x385   :  { %v8435_v18 = vpop.eup %8434  ;;  %v2971_v1 = vmul.f32 %v8433_v16, %v8427_v0 }
 0x386   :  { %v8437_v19 = vpop.eup %8436  ;;  %v2969_v27 = vmul.f32 %v8435_v18, %v9753_v7 }
 0x387   :  { %v8439_v36 = vpop.eup %8438  ;;  %v2962_v52 = vadd.f32 1.0, %v8437_v19 }
 0x388   :  { %v10015_v54 = vadd.f32 %v2971_v1, %v2969_v27  ;;  %v2972_v57 = vmul.f32 %v8439_v36, %v8431_v48  ;;  %v8441_v51 = vpop.eup %8440 }
 0x389   :  { %v2970_v55 = vmul.f32 %v8441_v51, %v9759_v17  ;;  %v2869_v28 = vpop.f32.mrb[52].mxu0  ;;  %v2912_v56 = vpop.f32.mrb[52].mxu1 }
 0x38a   :  { %8444 = vtanh.f32 %v10015_v54  ;;  %v7686_v11 = vadd.f32 %v2869_v28, %v9462_v40  ;;  %v2871_v20 = vpop.f32.mrb[53].mxu0  ;;  %v2914_v21 = vpop.f32.mrb[53].mxu1  ;;  %v7718_v41 = vadd.f32 %v2912_v56, %v9482_v44  ;;  %v11442_v56 = vld [vmem:[#allocation17_spill] sm:$0xff] }
 0x38b   :  { %v10020_v29 = vadd.f32 %v2972_v57, %v2970_v55  ;;  %v7687_v7 = vadd.f32 %v2871_v20, %v9464_v46  ;;  %v2873_v13 = vpop.f32.mrb[54].mxu0  ;;  %v2916_v37 = vpop.f32.mrb[54].mxu1  ;;  %8446 = vrcp.f32 %v2962_v52  ;;  %v7719_v34 = vadd.f32 %v2914_v21, %v9477_v39  ;;  %v11444_v20 = vld [vmem:[#allocation19_spill] sm:$0xff] }
 0x38c   :  { %v7141_v53 = vmul.f32 -1.442695, %v7686_v11  ;;  %v7688_v22 = vadd.f32 %v2873_v13, %v9462_v40  ;;  %v2875_v31 = vpop.f32.mrb[55].mxu0  ;;  %v2918_v26 = vpop.f32.mrb[55].mxu1  ;;  %v7720_v0 = vadd.f32 %v2916_v37, %v9482_v44  ;;  %v11443_v11 = vld [vmem:[#allocation18_spill] sm:$0xff] }
 0x38d   :  { %8448 = vtanh.f32 %v10020_v29  ;;  %v7143_v17 = vmul.f32 -1.442695, %v7687_v7  ;;  %v7689_v30 = vadd.f32 %v2875_v31, %v9464_v46  ;;  %v8443_v59 = vpop.eup %8442  ;;  %v7145_v4 = vmul.f32 -1.442695, %v7719_v34  ;;  %v11445_v7 = vld [vmem:[#allocation20_spill] sm:$0xff] }
 0x38e   :  { %8450 = vpow2.f32 %v7141_v53  ;;  %v7142_v32 = vmul.f32 -1.442695, %v7688_v22  ;;  %v7721_v23 = vadd.f32 %v2918_v26, %v9477_v39  ;;  %v11448_v53 = vld [vmem:[#allocation23_spill] sm:$0xff] }
 0x38f   :  { %8452 = vpow2.f32 %v7143_v17  ;;  %v7144_v38 = vmul.f32 -1.442695, %v7689_v30  ;;  %v11449_v17 = vld [vmem:[#allocation24_spill] sm:$0xff]  ;;  %v11450_v30 = vld [vmem:[#allocation25_spill] sm:$0xff] }
 0x390   :  { %8454 = vpow2.f32 %v7142_v32  ;;  %v7146_v19 = vmul.f32 -1.442695, %v7721_v23  ;;  %v11451_v23 = vld [vmem:[#allocation30_spill] sm:$0xff] }
 0x391   :  { %8456 = vpow2.f32 %v7144_v38 }
 0x392   :  { %8458 = vtanh.f32 %v7718_v41 }
 0x393   :  { %8460 = vpow2.f32 %v7145_v4 }
 0x394   :  { %v8445_v2 = vpop.eup %8444  ;;  %8462 = vtanh.f32 %v7720_v0  ;;  %v11452_v0 = vld [vmem:[#allocation26_spill] sm:$0xff] }
 0x395   :  { %v10028_v9 = vmul.f32 %v8445_v2, %v8443_v59  ;;  %v8447_v25 = vpop.eup %8446 }
 0x397   :  { %v8449_v48 = vpop.eup %8448 }
 0x398   :  { %v8451_v16 = vpop.eup %8450  ;;  %v10034_v18 = vmul.f32 %v8449_v48, %v8447_v25  ;;  %v11453_v48 = vld [vmem:[#allocation27_spill] sm:$0xff] }
 0x399   :  { %v8453_v1 = vpop.eup %8452  ;;  %v3001_v63 = vadd.f32 1.0, %v8451_v16  ;;  %v11458_v16 = vld [vmem:[#allocation33_spill] sm:$0xff] }
 0x39a   :  { %v3013_v27 = vadd.f32 1.0, %v8453_v1  ;;  %v3075_v57 = vpack.c.bf16 %v10034_v18, %v10028_v9  ;;  %v8455_v51 = vpop.eup %8454  ;;  %v11459_v1 = vld [vmem:[#allocation34_spill] sm:$0xff] }
 0x39b   :  { %8464 = vrcp.f32 %v3001_v63  ;;  %v3002_v52 = vadd.f32 1.0, %v8455_v51  ;;  %v8457_v55 = vpop.eup %8456  ;;  %v11462_v51 = vld [vmem:[#allocation37_spill] sm:$0xff] }
 0x39c   :  { %8466 = vrcp.f32 %v3013_v27  ;;  %3301 = vmatmul.mubr.bf16.vlgmr.msra.gmra.mrb[12].mxu0 %v3075_v57  ;;  %3344 = vmatmul.mubr.bf16.vlgmr.msra.gmra.mrb[12].mxu1 %v3075_v57  ;;  %v3014_v28 = vadd.f32 1.0, %v8457_v55  ;;  %v8459_v21 = vpop.eup %8458  ;;  %v11460_v27 = vld [vmem:[#allocation35_spill] sm:$0xff]  ;;  %v11461_v57 = vld [vmem:[#allocation36_spill] sm:$0xff] }
 0x39d   :  { %8468 = vpow2.f32 %v7146_v19  ;;  %3548 = vmatpush1.bf16.msra.mxu0 %v9775_v33  ;;  %3591 = vmatpush1.bf16.msra.mxu1 %v9780_v14  ;;  %v11446_v33 = vld [vmem:[#allocation21_spill] sm:$0xff]  ;;  %v8461_v14 = vpop.eup %8460 }
 0x39e   :  { %8470 = vrcp.f32 %v3002_v52  ;;  %3549 = vmatprep.subr.bf16.mxu0 %v9787_v43  ;;  %3592 = vmatprep.subr.bf16.mxu1 %v11442_v56  ;;  %v8463_v13 = vpop.eup %8462  ;;  %v11447_v43 = vld [vmem:[#allocation22_spill] sm:$0xff]  ;;  %v3027_v26 = vadd.f32 1.0, %v8461_v14  ;;  %v10124_v14 = vld [vmem:[%s11303_s6 + $0x2c] ss:$16 sps:$4 sm:$0xff]  }
 0x39f   :  { %3579 = vmatprep.mubr.bf16.mxu0 %v11405_v58  ;;  %3622 = vmatprep.mubr.bf16.mxu1 %v11405_v58  ;;  %8472 = vrcp.f32 %v3014_v28 }
 0x3a0   :  { %8474 = vrcp.f32 %v3027_v26  ;;  %v10167_v26 = vld [vmem:[%s11303_s6 + $0x64] ss:$16 sps:$4 sm:$0xff]  }
 0x3a1   :  { %3550 = vmatpush1.bf16.msra.mxu0 %v11443_v11  ;;  %3593 = vmatpush1.bf16.msra.mxu1 %v11444_v20 }
 0x3a2   :  { %3551 = vmatprep.subr.bf16.mxu0 %v11445_v7  ;;  %3594 = vmatprep.subr.bf16.mxu1 %v11446_v33  ;;  %v10110_v7 = vld [vmem:[%s11303_s6 + $0x8] ss:$16 sps:$4 sm:$0xff]   ;;  %v10119_v33 = vld [vmem:[%s11303_s6 + $0x24] ss:$16 sps:$4 sm:$0xff]  }
 0x3a5   :  { %v8465_v37 = vpop.eup %8464  ;;  %3552 = vmatpush1.bf16.msra.mxu0 %v11447_v43  ;;  %3595 = vmatpush1.bf16.msra.mxu1 %v11448_v53  ;;  %v10143_v43 = vld [vmem:[%s11303_s6 + $0x44] ss:$16 sps:$4 sm:$0xff]   ;;  %v10148_v53 = vld [vmem:[%s11303_s6 + $0x4c] ss:$16 sps:$4 sm:$0xff]  }
 0x3a6   :  { %v8467_v22 = vpop.eup %8466  ;;  %v3037_v31 = vmul.f32 %v8465_v37, %v8459_v21  ;;  %3553 = vmatprep.subr.bf16.mxu0 %v11449_v17  ;;  %3596 = vmatprep.subr.bf16.mxu1 %v11450_v30  ;;  %v10134_v37 = vld [vmem:[%s11303_s6 + $0x28] ss:$16 sps:$4 sm:$0xff]   ;;  %v10172_v17 = vld [vmem:[%s11303_s6 + $0x6c] ss:$16 sps:$4 sm:$0xff]   ;;  %v10177_v30 = vld [vmem:[%s11303_s6 + $0x60] ss:$16 sps:$4 sm:$0xff]  }
 0x3a7   :  { %v8469_v32 = vpop.eup %8468  ;;  %v3035_v38 = vmul.f32 %v8467_v22, %v9869_v35  ;;  %v10153_v22 = vld [vmem:[%s11303_s6 + $0x40] ss:$16 sps:$4 sm:$0xff]  }
 0x3a8   :  { %v8471_v34 = vpop.eup %8470  ;;  %v3028_v4 = vadd.f32 1.0, %v8469_v32  ;;  %v10182_v32 = vld [vmem:[%s11303_s6 + $0x68] ss:$16 sps:$4 sm:$0xff]  }
 0x3a9   :  { %v10055_v59 = vadd.f32 %v3037_v31, %v3035_v38  ;;  %v3038_v2 = vmul.f32 %v8471_v34, %v8463_v13  ;;  %3554 = vmatpush1.bf16.msra.mxu0 %v9849_v12  ;;  %3597 = vmatpush1.bf16.msra.mxu1 %v9854_v50  ;;  %v8473_v41 = vpop.eup %8472  ;;  %v11454_v12 = vld [vmem:[#allocation28_spill] sm:$0xff]  ;;  %v11455_v50 = vld [vmem:[#allocation29_spill] sm:$0xff] }
 0x3aa   :  { %3555 = vmatprep.subr.bf16.mxu0 %v9861_v62  ;;  %3598 = vmatprep.subr.bf16.mxu1 %v9866_v49  ;;  %v3036_v25 = vmul.f32 %v8473_v41, %v11451_v23  ;;  %v11456_v62 = vld [vmem:[#allocation31_spill] sm:$0xff]  ;;  %v11457_v49 = vld [vmem:[#allocation32_spill] sm:$0xff]  ;;  %v8475_v63 = vpop.eup %8474 }
 0x3ab   :  { %8476 = vtanh.f32 %v10055_v59  ;;  %v10129_v13 = vld [vmem:[%s11303_s6 + $0x20] ss:$16 sps:$4 sm:$0xff]   ;;  %v10158_v31 = vld [vmem:[%s11303_s6 + $0x48] ss:$16 sps:$4 sm:$0xff]   ;;  %v10191_v38 = vld [vmem:[%s11303_s6 + $0x84] ss:$16 sps:$4 sm:$0xff]  }
 0x3ac   :  { %v10063_v35 = vadd.f32 %v3038_v2, %v3036_v25  ;;  %8478 = vrcp.f32 %v3028_v4  ;;  %v10196_v34 = vld [vmem:[%s11303_s6 + $0x8c] ss:$16 sps:$4 sm:$0xff]   ;;  %v10201_v2 = vld [vmem:[%s11303_s6 + $0x80] ss:$16 sps:$4 sm:$0xff]   ;;  %v10206_v41 = vld [vmem:[%s11303_s6 + $0x88] ss:$16 sps:$4 sm:$0xff]  }
 0x3ad   :  { %3556 = vmatpush1.bf16.msra.mxu0 %v11452_v0  ;;  %3599 = vmatpush1.bf16.msra.mxu1 %v11453_v48  ;;  %v10215_v4 = vld [vmem:[%s11303_s6 + $0xa4] ss:$16 sps:$4 sm:$0xff]   ;;  %v10220_v23 = vld [vmem:[%s11303_s6 + $0xac] ss:$16 sps:$4 sm:$0xff]   ;;  %v10225_v25 = vld [vmem:[%s11303_s6 + $0xa0] ss:$16 sps:$4 sm:$0xff]  }
 0x3ae   :  { %3557 = vmatprep.subr.bf16.mxu0 %v11454_v12  ;;  %3600 = vmatprep.subr.bf16.mxu1 %v11455_v50  ;;  %8480 = vtanh.f32 %v10063_v35  ;;  %v10230_v0 = vld [vmem:[%s11303_s6 + $0xa8] ss:$16 sps:$4 sm:$0xff]   ;;  %v10239_v48 = vld [vmem:[%s11303_s6 + $0xc4] ss:$16 sps:$4 sm:$0xff]   ;;  %v10244_v12 = vld [vmem:[%s11303_s6 + $0xcc] ss:$16 sps:$4 sm:$0xff]  }
 0x3af   :  { %11463 = vst [vmem:[#allocation10_spill] sm:$0xff] %v10244_v12  ;;  %v10249_v50 = vld [vmem:[%s11303_s6 + $0xc0] ss:$16 sps:$4 sm:$0xff]  }
 0x3b0   :  { %11464 = vst [vmem:[#allocation11_spill] sm:$0xff] %v10249_v50 }
 0x3b1   :  { %3558 = vmatpush1.bf16.msra.mxu0 %v11456_v62  ;;  %3601 = vmatpush1.bf16.msra.mxu1 %v11457_v49  ;;  %v10254_v62 = vld [vmem:[%s11303_s6 + $0xc8] ss:$16 sps:$4 sm:$0xff]   ;;  %v10263_v49 = vld [vmem:[%s11303_s6 + $0xe4] ss:$16 sps:$4 sm:$0xff]  }
 0x3b2   :  { %3559 = vmatprep.subr.bf16.mxu0 %v11458_v16  ;;  %3602 = vmatprep.subr.bf16.mxu1 %v11459_v1  ;;  %11465 = vst [vmem:[#allocation14_spill] sm:$0xff] %v10254_v62  ;;  %11466 = vst [vmem:[#allocation15_spill] sm:$0xff] %v10263_v49  ;;  %v10268_v16 = vld [vmem:[%s11303_s6 + $0xec] ss:$16 sps:$4 sm:$0xff]   ;;  %v10273_v1 = vld [vmem:[%s11303_s6 + $0xe0] ss:$16 sps:$4 sm:$0xff]  }
 0x3b3   :  { %11467 = vst [vmem:[#allocation16_spill] sm:$0xff] %v10268_v16  ;;  %11468 = vst [vmem:[#allocation17_spill] sm:$0xff] %v10273_v1 }
 0x3b5   :  { %v8477_v19 = vpop.eup %8476  ;;  %3560 = vmatpush1.bf16.msra.mxu0 %v11460_v27  ;;  %3603 = vmatpush1.bf16.msra.mxu1 %v11461_v57  ;;  %v10292_v27 = vld [vmem:[%s11304_s7 + $0xc] ss:$16 sps:$4 sm:$0xff]  }
 0x3b6   :  { %3561 = vmatprep.subr.bf16.mxu0 %v11462_v51  ;;  %3604 = vmatprep.subr.bf16.mxu1 %v9946_v3  ;;  %v10078_v52 = vmul.f32 %v8477_v19, %v8475_v63  ;;  %v8479_v55 = vpop.eup %8478  ;;  %v10105_v3 = vld [vmem:[%s11303_s6] ss:$16 sps:$4 sm:$0xff]   ;;  %v10278_v63 = vld [vmem:[%s11303_s6 + $0xe8] ss:$16 sps:$4 sm:$0xff]   ;;  %v10287_v19 = vld [vmem:[%s11304_s7 + $0x4] ss:$16 sps:$4 sm:$0xff]  }
 0x3b7   :  { %11469 = vst [vmem:[#allocation18_spill] sm:$0xff] %v10278_v63  ;;  %11470 = vst [vmem:[#allocation19_spill] sm:$0xff] %v10287_v19 }
 0x3b8   :  { %v8481_v56 = vpop.eup %8480  ;;  %11471 = vst [vmem:[#allocation20_spill] sm:$0xff] %v10292_v27 }
 0x3b9   :  { %3562 = vmatpush1.bf16.msra.mxu0 %v9953_v5  ;;  %3605 = vmatpush1.bf16.msra.mxu1 %v9958_v6  ;;  %v10084_v11 = vmul.f32 %v8481_v56, %v8479_v55  ;;  %v10095_v5 = vld [vmem:[%s11303_s6 + $0x4] ss:$16 sps:$4 sm:$0xff]   ;;  %v10100_v6 = vld [vmem:[%s11303_s6 + $0xc] ss:$16 sps:$4 sm:$0xff]  }
 0x3ba   :  { %3978 = vmatprep.subr.bf16.mxu0 %v10095_v5  ;;  %4021 = vmatprep.subr.bf16.mxu1 %v10100_v6 }
 0x3bb   :  { %v3354_v21 = vpack.c.bf16 %v10084_v11, %v10078_v52 }
 0x3bd   :  { %3580 = vmatmul.mubr.bf16.vlgmr.msra.gmra.mrb[48].mxu0 %v3354_v21  ;;  %3623 = vmatmul.mubr.bf16.vlgmr.msra.gmra.mrb[48].mxu1 %v3354_v21 }
 0x3be   :  { %4010 = vmatprep.mubr.bf16.mxu0 %v11405_v58  ;;  %4053 = vmatprep.mubr.bf16.mxu1 %v11405_v58 }
 0x3bf   :  { %3979 = vmatpush1.bf16.msra.mxu0 %v10105_v3  ;;  %4022 = vmatpush1.bf16.msra.mxu1 %v10110_v7 }
 0x3c0   :  { %3980 = vmatprep.subr.bf16.mxu0 %v10119_v33  ;;  %4023 = vmatprep.subr.bf16.mxu1 %v10124_v14 }
 0x3c3   :  { %3981 = vmatpush1.bf16.msra.mxu0 %v10129_v13  ;;  %4024 = vmatpush1.bf16.msra.mxu1 %v10134_v37 }
 0x3c4   :  { %3982 = vmatprep.subr.bf16.mxu0 %v10143_v43  ;;  %4025 = vmatprep.subr.bf16.mxu1 %v10148_v53 }
 0x3c7   :  { %3983 = vmatpush1.bf16.msra.mxu0 %v10153_v22  ;;  %4026 = vmatpush1.bf16.msra.mxu1 %v10158_v31 }
 0x3c8   :  { %3984 = vmatprep.subr.bf16.mxu0 %v10167_v26  ;;  %4027 = vmatprep.subr.bf16.mxu1 %v10172_v17 }
 0x3cb   :  { %3985 = vmatpush1.bf16.msra.mxu0 %v10177_v30  ;;  %4028 = vmatpush1.bf16.msra.mxu1 %v10182_v32 }
 0x3cc   :  { %3986 = vmatprep.subr.bf16.mxu0 %v10191_v38  ;;  %4029 = vmatprep.subr.bf16.mxu1 %v10196_v34 }
 0x3cf   :  { %3987 = vmatpush1.bf16.msra.mxu0 %v10201_v2  ;;  %4030 = vmatpush1.bf16.msra.mxu1 %v10206_v41 }
 0x3d0   :  { %3988 = vmatprep.subr.bf16.mxu0 %v10215_v4  ;;  %4031 = vmatprep.subr.bf16.mxu1 %v10220_v23 }
 0x3d3   :  { %3989 = vmatpush1.bf16.msra.mxu0 %v10225_v25  ;;  %4032 = vmatpush1.bf16.msra.mxu1 %v10230_v0 }
 0x3d4   :  { %3990 = vmatprep.subr.bf16.mxu0 %v10239_v48  ;;  %4033 = vmatprep.subr.bf16.mxu1 %v10244_v12 }
 0x3d7   :  { %3991 = vmatpush1.bf16.msra.mxu0 %v10249_v50  ;;  %4034 = vmatpush1.bf16.msra.mxu1 %v10254_v62 }
 0x3d8   :  { %3992 = vmatprep.subr.bf16.mxu0 %v10263_v49  ;;  %4035 = vmatprep.subr.bf16.mxu1 %v10268_v16 }
 0x3db   :  { %3993 = vmatpush1.bf16.msra.mxu0 %v10273_v1  ;;  %4036 = vmatpush1.bf16.msra.mxu1 %v10278_v63 }
 0x3dc   :  { %4257 = vmatprep.subr.bf16.mxu0 %v10287_v19  ;;  %4300 = vmatprep.subr.bf16.mxu1 %v10292_v27 }
 0x46f   :  { %v3302_v57 = vpop.f32.mrb[12].mxu0  ;;  %v3345_v51 = vpop.f32.mrb[12].mxu1 }
 0x470   :  { %v7614_v55 = vadd.f32 %v3302_v57, %v11441_v45  ;;  %v3304_v56 = vpop.f32.mrb[13].mxu0  ;;  %v3347_v21 = vpop.f32.mrb[13].mxu1 }
 0x471   :  { %v7615_v20 = vadd.f32 %v3304_v56, %v9439_v24  ;;  %v3306_v28 = vpop.f32.mrb[14].mxu0  ;;  %v3349_v36 = vpop.f32.mrb[14].mxu1  ;;  %v7647_v57 = vadd.f32 %v3347_v21, %v9448_v42  ;;  %v7646_v56 = vadd.f32 %v3345_v51, %v9453_v47 }
 0x472   :  { %v7211_v10 = vmul.f32 -1.442695, %v7614_v55  ;;  %v7616_v63 = vadd.f32 %v3306_v28, %v11441_v45  ;;  %v3308_v1 = vpop.f32.mrb[15].mxu0  ;;  %v3351_v16 = vpop.f32.mrb[15].mxu1  ;;  %v7648_v28 = vadd.f32 %v3349_v36, %v9453_v47 }
 0x473   :  { %v7213_v49 = vmul.f32 -1.442695, %v7615_v20  ;;  %v7617_v19 = vadd.f32 %v3308_v1, %v9439_v24  ;;  %v7215_v50 = vmul.f32 -1.442695, %v7647_v57  ;;  %v7649_v55 = vadd.f32 %v3351_v16, %v9448_v42 }
 0x474   :  { %8482 = vpow2.f32 %v7211_v10  ;;  %v7212_v27 = vmul.f32 -1.442695, %v7616_v63 }
 0x475   :  { %8484 = vpow2.f32 %v7213_v49  ;;  %v7214_v62 = vmul.f32 -1.442695, %v7617_v19  ;;  %v7216_v10 = vmul.f32 -1.442695, %v7649_v55 }
 0x476   :  { %8486 = vpow2.f32 %v7212_v27 }
 0x477   :  { %8488 = vpow2.f32 %v7214_v62 }
 0x478   :  { %8490 = vtanh.f32 %v7646_v56 }
 0x479   :  { %8492 = vpow2.f32 %v7215_v50 }
 0x47a   :  { %8494 = vtanh.f32 %v7648_v28 }
 0x47e   :  { %v8483_v45 = vpop.eup %8482 }
 0x47f   :  { %v8485_v20 = vpop.eup %8484  ;;  %v3647_v12 = vadd.f32 1.0, %v8483_v45 }
 0x480   :  { %v3659_v1 = vadd.f32 1.0, %v8485_v20  ;;  %v8487_v49 = vpop.eup %8486 }
 0x481   :  { %8496 = vrcp.f32 %v3647_v12  ;;  %v3648_v63 = vadd.f32 1.0, %v8487_v49  ;;  %v8489_v62 = vpop.eup %8488 }
 0x482   :  { %8498 = vrcp.f32 %v3659_v1  ;;  %v3660_v19 = vadd.f32 1.0, %v8489_v62  ;;  %v8491_v16 = vpop.eup %8490 }
 0x483   :  { %8500 = vpow2.f32 %v7216_v10  ;;  %v8493_v27 = vpop.eup %8492 }
 0x484   :  { %8502 = vrcp.f32 %v3648_v63  ;;  %v8495_v36 = vpop.eup %8494  ;;  %v3673_v45 = vadd.f32 1.0, %v8493_v27 }
 0x485   :  { %8504 = vrcp.f32 %v3660_v19 }
 0x486   :  { %8506 = vrcp.f32 %v3673_v45 }
 0x48b   :  { %v8497_v51 = vpop.eup %8496 }
 0x48c   :  { %v8499_v21 = vpop.eup %8498  ;;  %v3683_v57 = vmul.f32 %v8497_v51, %v8491_v16 }
 0x48d   :  { %v8501_v50 = vpop.eup %8500  ;;  %v3681_v56 = vmul.f32 %v8499_v21, %v10015_v54 }
 0x48e   :  { %v8503_v55 = vpop.eup %8502  ;;  %v3674_v10 = vadd.f32 1.0, %v8501_v50 }
 0x48f   :  { %v10305_v28 = vadd.f32 %v3683_v57, %v3681_v56  ;;  %v3684_v12 = vmul.f32 %v8503_v55, %v8495_v36  ;;  %v8505_v20 = vpop.eup %8504 }
 0x490   :  { %v3682_v1 = vmul.f32 %v8505_v20, %v10020_v29  ;;  %v3581_v49 = vpop.f32.mrb[48].mxu0  ;;  %v3624_v63 = vpop.f32.mrb[48].mxu1 }
 0x491   :  { %8508 = vtanh.f32 %v10305_v28  ;;  %v7682_v62 = vadd.f32 %v3581_v49, %v9462_v40  ;;  %v3583_v19 = vpop.f32.mrb[49].mxu0  ;;  %v3626_v16 = vpop.f32.mrb[49].mxu1 }
 0x492   :  { %v10310_v27 = vadd.f32 %v3684_v12, %v3682_v1  ;;  %v7683_v54 = vadd.f32 %v3583_v19, %v9464_v46  ;;  %v3585_v51 = vpop.f32.mrb[50].mxu0  ;;  %v3628_v21 = vpop.f32.mrb[50].mxu1  ;;  %8510 = vrcp.f32 %v3674_v10  ;;  %v7715_v20 = vadd.f32 %v3626_v16, %v9477_v39 }
 0x493   :  { %v7217_v36 = vmul.f32 -1.442695, %v7682_v62  ;;  %v7684_v57 = vadd.f32 %v3585_v51, %v9462_v40  ;;  %v3587_v45 = vpop.f32.mrb[51].mxu0  ;;  %v3630_v50 = vpop.f32.mrb[51].mxu1  ;;  %v7714_v10 = vadd.f32 %v3624_v63, %v9482_v44 }
 0x494   :  { %8512 = vtanh.f32 %v10310_v27  ;;  %v7219_v29 = vmul.f32 -1.442695, %v7683_v54  ;;  %v7685_v56 = vadd.f32 %v3587_v45, %v9464_v46  ;;  %v8507_v1 = vpop.eup %8506  ;;  %v7221_v19 = vmul.f32 -1.442695, %v7715_v20 }
 0x495   :  { %8514 = vpow2.f32 %v7217_v36  ;;  %v7218_v55 = vmul.f32 -1.442695, %v7684_v57  ;;  %v7717_v51 = vadd.f32 %v3630_v50, %v9477_v39  ;;  %v7716_v54 = vadd.f32 %v3628_v21, %v9482_v44  ;;  %v10333_v21 = vld [vmem:[%s11304_s7 + $0x8] ss:$16 sps:$4 sm:$0xff]  }
 0x496   :  { %8516 = vpow2.f32 %v7219_v29  ;;  %v7220_v12 = vmul.f32 -1.442695, %v7685_v56  ;;  %v11472_v36 = vmax.f32 %v9769_v8, %v10028_v9  ;;  %v10328_v29 = vld [vmem:[%s11304_s7] ss:$16 sps:$4 sm:$0xff]   ;;  %v11473_v9 = vmax.f32 %v9782_v60, %v10034_v18 }
 0x497   :  { %8518 = vpow2.f32 %v7218_v55  ;;  %v7222_v50 = vmul.f32 -1.442695, %v7717_v51  ;;  %v10355_v18 = vld [vmem:[%s11304_s7 + $0x20] ss:$16 sps:$4 sm:$0xff]   ;;  %v10367_v51 = vld [vmem:[%s11304_s7 + $0x44] ss:$16 sps:$4 sm:$0xff]  }
 0x498   :  { %8520 = vpow2.f32 %v7220_v12  ;;  %11474 = vst [vmem:[#allocation21_spill] sm:$0xff] %v10367_v51 }
 0x499   :  { %8522 = vtanh.f32 %v7714_v10 }
 0x49a   :  { %8524 = vpow2.f32 %v7221_v19 }
 0x49b   :  { %v8509_v49 = vpop.eup %8508  ;;  %8526 = vtanh.f32 %v7716_v54  ;;  %v10372_v54 = vld [vmem:[%s11304_s7 + $0x4c] ss:$16 sps:$4 sm:$0xff]  }
 0x49c   :  { %v3691_v62 = vmul.f32 %v8509_v49, %v8507_v1  ;;  %v8511_v40 = vpop.eup %8510  ;;  %v10348_v1 = vld [vmem:[%s11304_s7 + $0x2c] ss:$16 sps:$4 sm:$0xff]   ;;  %11475 = vst [vmem:[#allocation22_spill] sm:$0xff] %v10372_v54 }
 0x49e   :  { %v10323_v57 = vmax.f32 %v11472_v36, %v3691_v62  ;;  %v8513_v45 = vpop.eup %8512  ;;  %v10381_v36 = vld [vmem:[%s11304_s7 + $0x40] ss:$16 sps:$4 sm:$0xff]  }
 0x49f   :  { %v8515_v16 = vpop.eup %8514  ;;  %v3692_v63 = vmul.f32 %v8513_v45, %v8511_v40  ;;  %v10343_v40 = vld [vmem:[%s11304_s7 + $0x24] ss:$16 sps:$4 sm:$0xff]   ;;  %11476 = vst [vmem:[#allocation23_spill] sm:$0xff] %v10381_v36  ;;  %v10386_v45 = vld [vmem:[%s11304_s7 + $0x48] ss:$16 sps:$4 sm:$0xff]  }
 0x4a0   :  { %v8517_v56 = vpop.eup %8516  ;;  %v3713_v55 = vadd.f32 1.0, %v8515_v16  ;;  %11477 = vst [vmem:[#allocation24_spill] sm:$0xff] %v10386_v45 }
 0x4a1   :  { %v3725_v8 = vadd.f32 1.0, %v8517_v56  ;;  %v10338_v12 = vmax.f32 %v11473_v9, %v3692_v63  ;;  %v3785_v20 = vpack.c.bf16 %v3692_v63, %v3691_v62  ;;  %v8519_v49 = vpop.eup %8518  ;;  %v10360_v62 = vld [vmem:[%s11304_s7 + $0x28] ss:$16 sps:$4 sm:$0xff]   ;;  %v10393_v63 = vld [vmem:[%s11304_s7 + $0x64] ss:$16 sps:$4 sm:$0xff]  }
 0x4a2   :  { %8528 = vrcp.f32 %v3713_v55  ;;  %v3714_v10 = vadd.f32 1.0, %v8519_v49  ;;  %v8521_v60 = vpop.eup %8520  ;;  %11478 = vst [vmem:[#allocation25_spill] sm:$0xff] %v10393_v63  ;;  %v10398_v56 = vld [vmem:[%s11304_s7 + $0x6c] ss:$16 sps:$4 sm:$0xff]   ;;  %v10405_v9 = vld [vmem:[%s11304_s7 + $0x60] ss:$16 sps:$4 sm:$0xff]  }
 0x4a3   :  { %8530 = vrcp.f32 %v3725_v8  ;;  %4011 = vmatmul.mubr.bf16.vlgmr.msra.gmra.mrb[16].mxu0 %v3785_v20  ;;  %4054 = vmatmul.mubr.bf16.vlgmr.msra.gmra.mrb[16].mxu1 %v3785_v20  ;;  %v3726_v19 = vadd.f32 1.0, %v8521_v60  ;;  %v8523_v16 = vpop.eup %8522  ;;  %11479 = vst [vmem:[#allocation30_spill] sm:$0xff] %v10398_v56  ;;  %v10410_v20 = vld [vmem:[%s11304_s7 + $0x68] ss:$16 sps:$4 sm:$0xff]  }
 0x4a4   :  { %8532 = vpow2.f32 %v7222_v50  ;;  %4258 = vmatpush1.bf16.msra.mxu0 %v10328_v29  ;;  %4301 = vmatpush1.bf16.msra.mxu1 %v10333_v21  ;;  %v8525_v55 = vpop.eup %8524 }
 0x4a5   :  { %8534 = vrcp.f32 %v3714_v10  ;;  %4259 = vmatprep.subr.bf16.mxu0 %v10343_v40  ;;  %4302 = vmatprep.subr.bf16.mxu1 %v10348_v1  ;;  %v8527_v50 = vpop.eup %8526  ;;  %v3739_v60 = vadd.f32 1.0, %v8525_v55 }
 0x4a6   :  { %4289 = vmatprep.mubr.bf16.mxu0 %v11405_v58  ;;  %4332 = vmatprep.mubr.bf16.mxu1 %v11405_v58  ;;  %8536 = vrcp.f32 %v3726_v19  ;;  %v10417_v19 = vld [vmem:[%s11304_s7 + $0x84] ss:$16 sps:$4 sm:$0xff]  }
 0x4a7   :  { %8538 = vrcp.f32 %v3739_v60  ;;  %v10485_v60 = vld [vmem:[%s11304_s7 + $0xc0] ss:$16 sps:$4 sm:$0xff]  }
 0x4a8   :  { %4260 = vmatpush1.bf16.msra.mxu0 %v10355_v18  ;;  %4303 = vmatpush1.bf16.msra.mxu1 %v10360_v62  ;;  %11488 = vst [vmem:[#allocation35_spill] sm:$0xff] %v10485_v60 }
 0x4a9   :  { %4261 = vmatprep.subr.bf16.mxu0 %v10367_v51  ;;  %4304 = vmatprep.subr.bf16.mxu1 %v10372_v54 }
 0x4ac   :  { %v8529_v8 = vpop.eup %8528  ;;  %4262 = vmatpush1.bf16.msra.mxu0 %v10381_v36  ;;  %4305 = vmatpush1.bf16.msra.mxu1 %v10386_v45  ;;  %v10422_v45 = vld [vmem:[%s11304_s7 + $0x8c] ss:$16 sps:$4 sm:$0xff]  }
 0x4ad   :  { %v8531_v49 = vpop.eup %8530  ;;  %v3749_v10 = vmul.f32 %v8529_v8, %v8523_v16  ;;  %4263 = vmatprep.subr.bf16.mxu0 %v10393_v63  ;;  %4306 = vmatprep.subr.bf16.mxu1 %v10398_v56  ;;  %v10432_v8 = vld [vmem:[%s11304_s7 + $0x80] ss:$16 sps:$4 sm:$0xff]   ;;  %v10437_v56 = vld [vmem:[%s11304_s7 + $0x88] ss:$16 sps:$4 sm:$0xff]  }
 0x4ae   :  { %v8533_v36 = vpop.eup %8532  ;;  %v3747_v54 = vmul.f32 %v8531_v49, %v10055_v59  ;;  %11480 = vst [vmem:[#allocation26_spill] sm:$0xff] %v10432_v8  ;;  %11481 = vst [vmem:[#allocation27_spill] sm:$0xff] %v10437_v56 }
 0x4af   :  { %v8535_v51 = vpop.eup %8534  ;;  %v3740_v59 = vadd.f32 1.0, %v8533_v36  ;;  %v10460_v36 = vld [vmem:[%s11304_s7 + $0xa0] ss:$16 sps:$4 sm:$0xff]  }
 0x4b0   :  { %v10425_v16 = vadd.f32 %v3749_v10, %v3747_v54  ;;  %v3750_v55 = vmul.f32 %v8535_v51, %v8527_v50  ;;  %4264 = vmatpush1.bf16.msra.mxu0 %v10405_v9  ;;  %4307 = vmatpush1.bf16.msra.mxu1 %v10410_v20  ;;  %v8537_v63 = vpop.eup %8536  ;;  %v10444_v51 = vld [vmem:[%s11304_s7 + $0xa4] ss:$16 sps:$4 sm:$0xff]   ;;  %v10449_v54 = vld [vmem:[%s11304_s7 + $0xac] ss:$16 sps:$4 sm:$0xff]   ;;  %11484 = vst [vmem:[#allocation31_spill] sm:$0xff] %v10460_v36 }
 0x4b1   :  { %4265 = vmatprep.subr.bf16.mxu0 %v10417_v19  ;;  %4308 = vmatprep.subr.bf16.mxu1 %v10422_v45  ;;  %11482 = vst [vmem:[#allocation28_spill] sm:$0xff] %v10444_v51  ;;  %11483 = vst [vmem:[#allocation29_spill] sm:$0xff] %v10449_v54  ;;  %v3748_v50 = vmul.f32 %v8537_v63, %v10063_v35  ;;  %v10465_v10 = vld [vmem:[%s11304_s7 + $0xa8] ss:$16 sps:$4 sm:$0xff]   ;;  %v10472_v35 = vld [vmem:[%s11304_s7 + $0xc4] ss:$16 sps:$4 sm:$0xff]  }
 0x4b2   :  { %8540 = vtanh.f32 %v10425_v16  ;;  %11485 = vst [vmem:[#allocation32_spill] sm:$0xff] %v10465_v10  ;;  %11486 = vst [vmem:[#allocation33_spill] sm:$0xff] %v10472_v35  ;;  %v10477_v63 = vld [vmem:[%s11304_s7 + $0xcc] ss:$16 sps:$4 sm:$0xff]  }
 0x4b3   :  { %v10453_v49 = vadd.f32 %v3750_v55, %v3748_v50  ;;  %8542 = vrcp.f32 %v3740_v59  ;;  %11487 = vst [vmem:[#allocation34_spill] sm:$0xff] %v10477_v63  ;;  %v10490_v55 = vld [vmem:[%s11304_s7 + $0xc8] ss:$16 sps:$4 sm:$0xff]   ;;  %v10497_v59 = vld [vmem:[%s11304_s7 + $0xe4] ss:$16 sps:$4 sm:$0xff]  }
 0x4b4   :  { %4266 = vmatpush1.bf16.msra.mxu0 %v10432_v8  ;;  %4309 = vmatpush1.bf16.msra.mxu1 %v10437_v56  ;;  %11489 = vst [vmem:[#allocation36_spill] sm:$0xff] %v10490_v55  ;;  %v10502_v50 = vld [vmem:[%s11304_s7 + $0xec] ss:$16 sps:$4 sm:$0xff]  }
 0x4b5   :  { %4267 = vmatprep.subr.bf16.mxu0 %v10444_v51  ;;  %4310 = vmatprep.subr.bf16.mxu1 %v10449_v54  ;;  %8544 = vtanh.f32 %v10453_v49  ;;  %11490 = vst [vmem:[#allocation37_spill] sm:$0xff] %v10502_v50 }
 0x4b8   :  { %4268 = vmatpush1.bf16.msra.mxu0 %v10460_v36  ;;  %4311 = vmatpush1.bf16.msra.mxu1 %v10465_v10  ;;  %v8539_v10 = vpop.eup %8538 }
 0x4b9   :  { %4269 = vmatprep.subr.bf16.mxu0 %v10472_v35  ;;  %4312 = vmatprep.subr.bf16.mxu1 %v10477_v63  ;;  %v10509_v63 = vld [vmem:[%s11304_s7 + $0xe0] ss:$16 sps:$4 sm:$0xff]   ;;  %v10514_v35 = vld [vmem:[%s11304_s7 + $0xe8] ss:$16 sps:$4 sm:$0xff]  }
 0x4bc   :  { %v8541_v36 = vpop.eup %8540  ;;  %4270 = vmatpush1.bf16.msra.mxu0 %v10485_v60  ;;  %4313 = vmatpush1.bf16.msra.mxu1 %v10490_v55  ;;  %v11491_v60 = vmax.f32 %v9963_v61, %v10078_v52  ;;  %v11493_v61 = vld [vmem:[#allocation10_spill] sm:$0xff] }
 0x4bd   :  { %4271 = vmatprep.subr.bf16.mxu0 %v10497_v59  ;;  %4314 = vmatprep.subr.bf16.mxu1 %v10502_v50  ;;  %v3757_v54 = vmul.f32 %v8541_v36, %v8539_v10  ;;  %v8543_v51 = vpop.eup %8542  ;;  %v11492_v50 = vmax.f32 %v9970_v15, %v10084_v11  ;;  %v11494_v15 = vld [vmem:[#allocation11_spill] sm:$0xff]  ;;  %v11495_v52 = vld [vmem:[#allocation14_spill] sm:$0xff] }
 0x4be   :  { %v11496_v11 = vld [vmem:[#allocation15_spill] sm:$0xff] }
 0x4bf   :  { %v10521_v55 = vmax.f32 %v11491_v60, %v3757_v54  ;;  %v8545_v56 = vpop.eup %8544 }
 0x4c0   :  { %4272 = vmatpush1.bf16.msra.mxu0 %v10509_v63  ;;  %4315 = vmatpush1.bf16.msra.mxu1 %v10514_v35  ;;  %v3758_v8 = vmul.f32 %v8545_v56, %v8543_v51 }
 0x4c1   :  { %4688 = vmatprep.subr.bf16.mxu0 %v10095_v5  ;;  %4731 = vmatprep.subr.bf16.mxu1 %v10100_v6  ;;  %v11497_v5 = vld [vmem:[#allocation16_spill] sm:$0xff]  ;;  %v11498_v6 = vld [vmem:[#allocation17_spill] sm:$0xff] }
 0x4c2   :  { %v10530_v36 = vmax.f32 %v11492_v50, %v3758_v8  ;;  %v4064_v10 = vpack.c.bf16 %v3758_v8, %v3757_v54 }
 0x4c4   :  { %4290 = vmatmul.mubr.bf16.vlgmr.msra.gmra.mrb[44].mxu0 %v4064_v10  ;;  %4333 = vmatmul.mubr.bf16.vlgmr.msra.gmra.mrb[44].mxu1 %v4064_v10 }
 0x4c5   :  { %4689 = vmatpush1.bf16.msra.mxu0 %v10105_v3  ;;  %4732 = vmatpush1.bf16.msra.mxu1 %v10110_v7  ;;  %v11499_v3 = vld [vmem:[#allocation18_spill] sm:$0xff]  ;;  %v11500_v7 = vld [vmem:[#allocation19_spill] sm:$0xff] }
 0x4c6   :  { %4690 = vmatprep.subr.bf16.mxu0 %v10119_v33  ;;  %4733 = vmatprep.subr.bf16.mxu1 %v10124_v14  ;;  %v11501_v33 = vld [vmem:[#allocation20_spill] sm:$0xff] }
 0x4c7   :  { %4720 = vmatprep.mubr.bf16.mxu0 %v11405_v58  ;;  %4763 = vmatprep.mubr.bf16.mxu1 %v11405_v58 }
 0x4c9   :  { %4691 = vmatpush1.bf16.msra.mxu0 %v10129_v13  ;;  %4734 = vmatpush1.bf16.msra.mxu1 %v10134_v37  ;;  %v11502_v37 = vld [vmem:[#allocation12_spill] sm:$0xff] }
 0x4ca   :  { %4692 = vmatprep.subr.bf16.mxu0 %v10143_v43  ;;  %4735 = vmatprep.subr.bf16.mxu1 %v10148_v53 }
 0x4cd   :  { %4693 = vmatpush1.bf16.msra.mxu0 %v10153_v22  ;;  %4736 = vmatpush1.bf16.msra.mxu1 %v10158_v31 }
 0x4ce   :  { %4694 = vmatprep.subr.bf16.mxu0 %v10167_v26  ;;  %4737 = vmatprep.subr.bf16.mxu1 %v10172_v17 }
 0x4d1   :  { %4695 = vmatpush1.bf16.msra.mxu0 %v10177_v30  ;;  %4738 = vmatpush1.bf16.msra.mxu1 %v10182_v32 }
 0x4d2   :  { %4696 = vmatprep.subr.bf16.mxu0 %v10191_v38  ;;  %4739 = vmatprep.subr.bf16.mxu1 %v10196_v34 }
 0x4d5   :  { %4697 = vmatpush1.bf16.msra.mxu0 %v10201_v2  ;;  %4740 = vmatpush1.bf16.msra.mxu1 %v10206_v41 }
 0x4d6   :  { %4698 = vmatprep.subr.bf16.mxu0 %v10215_v4  ;;  %4741 = vmatprep.subr.bf16.mxu1 %v10220_v23 }
 0x4d9   :  { %4699 = vmatpush1.bf16.msra.mxu0 %v10225_v25  ;;  %4742 = vmatpush1.bf16.msra.mxu1 %v10230_v0 }
 0x4da   :  { %4700 = vmatprep.subr.bf16.mxu0 %v10239_v48  ;;  %4743 = vmatprep.subr.bf16.mxu1 %v11493_v61 }
 0x4dd   :  { %4701 = vmatpush1.bf16.msra.mxu0 %v11494_v15  ;;  %4744 = vmatpush1.bf16.msra.mxu1 %v11495_v52 }
 0x4de   :  { %4702 = vmatprep.subr.bf16.mxu0 %v11496_v11  ;;  %4745 = vmatprep.subr.bf16.mxu1 %v11497_v5 }
 0x4e1   :  { %4703 = vmatpush1.bf16.msra.mxu0 %v11498_v6  ;;  %4746 = vmatpush1.bf16.msra.mxu1 %v11499_v3 }
 0x4e2   :  { %4967 = vmatprep.subr.bf16.mxu0 %v11500_v7  ;;  %5010 = vmatprep.subr.bf16.mxu1 %v11501_v33 }
 0x576   :  { %v4012_v14 = vpop.f32.mrb[16].mxu0  ;;  %v4055_v13 = vpop.f32.mrb[16].mxu1 }
 0x577   :  { %v7618_v43 = vadd.f32 %v4012_v14, %v11502_v37  ;;  %v4014_v53 = vpop.f32.mrb[17].mxu0  ;;  %v4057_v22 = vpop.f32.mrb[17].mxu1  ;;  %v7650_v0 = vadd.f32 %v4055_v13, %v9453_v47 }
 0x578   :  { %v7619_v31 = vadd.f32 %v4014_v53, %v9439_v24  ;;  %v4016_v26 = vpop.f32.mrb[18].mxu0  ;;  %v4059_v17 = vpop.f32.mrb[18].mxu1  ;;  %v7651_v25 = vadd.f32 %v4057_v22, %v9448_v42 }
 0x579   :  { %v7287_v30 = vmul.f32 -1.442695, %v7618_v43  ;;  %v7620_v32 = vadd.f32 %v4016_v26, %v11502_v37  ;;  %v4018_v38 = vpop.f32.mrb[19].mxu0  ;;  %v4061_v34 = vpop.f32.mrb[19].mxu1  ;;  %v7652_v8 = vadd.f32 %v4059_v17, %v9453_v47 }
 0x57a   :  { %v7289_v2 = vmul.f32 -1.442695, %v7619_v31  ;;  %v7621_v41 = vadd.f32 %v4018_v38, %v9439_v24  ;;  %v7291_v48 = vmul.f32 -1.442695, %v7651_v25  ;;  %v7653_v56 = vadd.f32 %v4061_v34, %v9448_v42 }
 0x57b   :  { %8546 = vpow2.f32 %v7287_v30  ;;  %v7288_v4 = vmul.f32 -1.442695, %v7620_v32 }
 0x57c   :  { %8548 = vpow2.f32 %v7289_v2  ;;  %v7290_v23 = vmul.f32 -1.442695, %v7621_v41  ;;  %v7292_v50 = vmul.f32 -1.442695, %v7653_v56  ;;  %v11503_v2 = vld [vmem:[#allocation13_spill] sm:$0xff] }
 0x57d   :  { %8550 = vpow2.f32 %v7288_v4 }
 0x57e   :  { %8552 = vpow2.f32 %v7290_v23 }
 0x57f   :  { %8554 = vtanh.f32 %v7650_v0 }
 0x580   :  { %8556 = vpow2.f32 %v7291_v48 }
 0x581   :  { %8558 = vtanh.f32 %v7652_v8 }
 0x585   :  { %v8547_v51 = vpop.eup %8546 }
 0x586   :  { %v8549_v54 = vpop.eup %8548  ;;  %v4357_v60 = vadd.f32 1.0, %v8547_v51 }
 0x587   :  { %v4369_v10 = vadd.f32 1.0, %v8549_v54  ;;  %v8551_v61 = vpop.eup %8550 }
 0x588   :  { %8560 = vrcp.f32 %v4357_v60  ;;  %v4358_v15 = vadd.f32 1.0, %v8551_v61  ;;  %v8553_v52 = vpop.eup %8552 }
 0x589   :  { %8562 = vrcp.f32 %v4369_v10  ;;  %v4370_v11 = vadd.f32 1.0, %v8553_v52  ;;  %v8555_v5 = vpop.eup %8554 }
 0x58a   :  { %8564 = vpow2.f32 %v7292_v50  ;;  %v8557_v6 = vpop.eup %8556 }
 0x58b   :  { %8566 = vrcp.f32 %v4358_v15  ;;  %v8559_v3 = vpop.eup %8558  ;;  %v4383_v13 = vadd.f32 1.0, %v8557_v6 }
 0x58c   :  { %8568 = vrcp.f32 %v4370_v11 }
 0x58d   :  { %8570 = vrcp.f32 %v4383_v13 }
 0x592   :  { %v8561_v7 = vpop.eup %8560 }
 0x593   :  { %v8563_v33 = vpop.eup %8562  ;;  %v4393_v14 = vmul.f32 %v8561_v7, %v8555_v5 }
 0x594   :  { %v8565_v43 = vpop.eup %8564  ;;  %v4391_v53 = vmul.f32 %v8563_v33, %v10305_v28 }
 0x595   :  { %v8567_v22 = vpop.eup %8566  ;;  %v4384_v30 = vadd.f32 1.0, %v8565_v43 }
 0x596   :  { %v10575_v31 = vadd.f32 %v4393_v14, %v4391_v53  ;;  %v4394_v26 = vmul.f32 %v8567_v22, %v8559_v3  ;;  %v8569_v17 = vpop.eup %8568 }
 0x597   :  { %v4392_v32 = vmul.f32 %v8569_v17, %v10310_v27  ;;  %v4291_v38 = vpop.f32.mrb[44].mxu0  ;;  %v4334_v34 = vpop.f32.mrb[44].mxu1 }
 0x598   :  { %8572 = vtanh.f32 %v10575_v31  ;;  %v7678_v41 = vadd.f32 %v4291_v38, %v11503_v2  ;;  %v4293_v4 = vpop.f32.mrb[45].mxu0  ;;  %v4336_v23 = vpop.f32.mrb[45].mxu1  ;;  %v7710_v11 = vadd.f32 %v4334_v34, %v9482_v44 }
 0x599   :  { %v10580_v25 = vadd.f32 %v4394_v26, %v4392_v32  ;;  %v7679_v28 = vadd.f32 %v4293_v4, %v9464_v46  ;;  %v4295_v0 = vpop.f32.mrb[46].mxu0  ;;  %v4338_v48 = vpop.f32.mrb[46].mxu1  ;;  %8574 = vrcp.f32 %v4384_v30  ;;  %v7711_v61 = vadd.f32 %v4336_v23, %v9477_v39 }
 0x59a   :  { %v7293_v56 = vmul.f32 -1.442695, %v7678_v41  ;;  %v7680_v8 = vadd.f32 %v4295_v0, %v11503_v2  ;;  %v4297_v51 = vpop.f32.mrb[47].mxu0  ;;  %v4340_v54 = vpop.f32.mrb[47].mxu1  ;;  %v7712_v33 = vadd.f32 %v4338_v48, %v9482_v44  ;;  %v11504_v0 = vld [vmem:[#allocation21_spill] sm:$0xff] }
 0x59b   :  { %8576 = vtanh.f32 %v10580_v25  ;;  %v7295_v27 = vmul.f32 -1.442695, %v7679_v28  ;;  %v7681_v60 = vadd.f32 %v4297_v51, %v9464_v46  ;;  %v8571_v15 = vpop.eup %8570  ;;  %v7297_v6 = vmul.f32 -1.442695, %v7711_v61 }
 0x59c   :  { %8578 = vpow2.f32 %v7293_v56  ;;  %v7294_v50 = vmul.f32 -1.442695, %v7680_v8  ;;  %v7713_v3 = vadd.f32 %v4340_v54, %v9477_v39 }
 0x59d   :  { %8580 = vpow2.f32 %v7295_v27  ;;  %v7296_v10 = vmul.f32 -1.442695, %v7681_v60  ;;  %v11508_v27 = vld [vmem:[#allocation25_spill] sm:$0xff] }
 0x59e   :  { %8582 = vpow2.f32 %v7294_v50  ;;  %v7298_v17 = vmul.f32 -1.442695, %v7713_v3  ;;  %v11511_v3 = vld [vmem:[#allocation27_spill] sm:$0xff] }
 0x59f   :  { %8584 = vpow2.f32 %v7296_v10 }
 0x5a0   :  { %8586 = vtanh.f32 %v7710_v11 }
 0x5a1   :  { %8588 = vpow2.f32 %v7297_v6  ;;  %v11510_v6 = vld [vmem:[#allocation26_spill] sm:$0xff] }
 0x5a2   :  { %v8573_v52 = vpop.eup %8572  ;;  %8590 = vtanh.f32 %v7712_v33 }
 0x5a3   :  { %v10588_v5 = vmul.f32 %v8573_v52, %v8571_v15  ;;  %v8575_v7 = vpop.eup %8574 }
 0x5a5   :  { %v8577_v13 = vpop.eup %8576 }
 0x5a6   :  { %v8579_v43 = vpop.eup %8578  ;;  %v10594_v53 = vmul.f32 %v8577_v13, %v8575_v7  ;;  %v11516_v7 = vld [vmem:[#allocation33_spill] sm:$0xff] }
 0x5a7   :  { %v8581_v22 = vpop.eup %8580  ;;  %v4423_v26 = vadd.f32 1.0, %v8579_v43  ;;  %v11518_v43 = vld [vmem:[#allocation35_spill] sm:$0xff] }
 0x5a8   :  { %v4435_v30 = vadd.f32 1.0, %v8581_v22  ;;  %v4495_v38 = vpack.c.bf16 %v10594_v53, %v10588_v5  ;;  %v8583_v34 = vpop.eup %8582  ;;  %v11519_v22 = vld [vmem:[#allocation36_spill] sm:$0xff] }
 0x5a9   :  { %8592 = vrcp.f32 %v4423_v26  ;;  %v4424_v41 = vadd.f32 1.0, %v8583_v34  ;;  %v8585_v4 = vpop.eup %8584  ;;  %v11520_v26 = vld [vmem:[#allocation37_spill] sm:$0xff] }
 0x5aa   :  { %8594 = vrcp.f32 %v4435_v30  ;;  %4721 = vmatmul.mubr.bf16.vlgmr.msra.gmra.mrb[20].mxu0 %v4495_v38  ;;  %4764 = vmatmul.mubr.bf16.vlgmr.msra.gmra.mrb[20].mxu1 %v4495_v38  ;;  %v4436_v23 = vadd.f32 1.0, %v8585_v4  ;;  %v8587_v28 = vpop.eup %8586 }
 0x5ab   :  { %8596 = vpow2.f32 %v7298_v17  ;;  %4968 = vmatpush1.bf16.msra.mxu0 %v10328_v29  ;;  %5011 = vmatpush1.bf16.msra.mxu1 %v10333_v21  ;;  %v11505_v29 = vld [vmem:[#allocation22_spill] sm:$0xff]  ;;  %v8589_v21 = vpop.eup %8588 }
 0x5ac   :  { %8598 = vrcp.f32 %v4424_v41  ;;  %4969 = vmatprep.subr.bf16.mxu0 %v10343_v40  ;;  %5012 = vmatprep.subr.bf16.mxu1 %v10348_v1  ;;  %v8591_v48 = vpop.eup %8590  ;;  %v11506_v40 = vld [vmem:[#allocation23_spill] sm:$0xff]  ;;  %v11507_v1 = vld [vmem:[#allocation24_spill] sm:$0xff]  ;;  %v4449_v54 = vadd.f32 1.0, %v8589_v21 }
 0x5ad   :  { %4999 = vmatprep.mubr.bf16.mxu0 %v11405_v58  ;;  %5042 = vmatprep.mubr.bf16.mxu1 %v11405_v58  ;;  %8600 = vrcp.f32 %v4436_v23  ;;  %v10665_v23 = vld [vmem:[%s11303_s6] ss:$16 sps:$4 sm:$0xff]  }
 0x5ae   :  { %8602 = vrcp.f32 %v4449_v54  ;;  %v10689_v21 = vld [vmem:[%s11303_s6 + $0x20] ss:$16 sps:$4 sm:$0xff]   ;;  %v10732_v54 = vld [vmem:[%s11303_s6 + $0x6c] ss:$16 sps:$4 sm:$0xff]  }
 0x5af   :  { %4970 = vmatpush1.bf16.msra.mxu0 %v10355_v18  ;;  %5013 = vmatpush1.bf16.msra.mxu1 %v10360_v62  ;;  %v11509_v18 = vld [vmem:[#allocation30_spill] sm:$0xff] }
 0x5b0   :  { %4971 = vmatprep.subr.bf16.mxu0 %v11504_v0  ;;  %5014 = vmatprep.subr.bf16.mxu1 %v11505_v29  ;;  %v10679_v0 = vld [vmem:[%s11303_s6 + $0x24] ss:$16 sps:$4 sm:$0xff]   ;;  %v10684_v29 = vld [vmem:[%s11303_s6 + $0x2c] ss:$16 sps:$4 sm:$0xff]  }
 0x5b3   :  { %v8593_v56 = vpop.eup %8592  ;;  %4972 = vmatpush1.bf16.msra.mxu0 %v11506_v40  ;;  %5015 = vmatpush1.bf16.msra.mxu1 %v11507_v1  ;;  %v10708_v40 = vld [vmem:[%s11303_s6 + $0x4c] ss:$16 sps:$4 sm:$0xff]   ;;  %v10713_v1 = vld [vmem:[%s11303_s6 + $0x40] ss:$16 sps:$4 sm:$0xff]  }
 0x5b4   :  { %v8595_v8 = vpop.eup %8594  ;;  %v4459_v51 = vmul.f32 %v8593_v56, %v8587_v28  ;;  %4973 = vmatprep.subr.bf16.mxu0 %v11508_v27  ;;  %5016 = vmatprep.subr.bf16.mxu1 %v11509_v18  ;;  %v10670_v28 = vld [vmem:[%s11303_s6 + $0x8] ss:$16 sps:$4 sm:$0xff]   ;;  %v10703_v56 = vld [vmem:[%s11303_s6 + $0x44] ss:$16 sps:$4 sm:$0xff]   ;;  %v10737_v27 = vld [vmem:[%s11303_s6 + $0x60] ss:$16 sps:$4 sm:$0xff]  }
 0x5b5   :  { %v8597_v62 = vpop.eup %8596  ;;  %v4457_v60 = vmul.f32 %v8595_v8, %v10425_v16  ;;  %v10718_v8 = vld [vmem:[%s11303_s6 + $0x48] ss:$16 sps:$4 sm:$0xff]  }
 0x5b6   :  { %v8599_v50 = vpop.eup %8598  ;;  %v4450_v52 = vadd.f32 1.0, %v8597_v62  ;;  %v10742_v18 = vld [vmem:[%s11303_s6 + $0x68] ss:$16 sps:$4 sm:$0xff]   ;;  %v10751_v62 = vld [vmem:[%s11303_s6 + $0x84] ss:$16 sps:$4 sm:$0xff]  }
 0x5b7   :  { %v10615_v10 = vadd.f32 %v4459_v51, %v4457_v60  ;;  %v4460_v61 = vmul.f32 %v8599_v50, %v8591_v48  ;;  %4974 = vmatpush1.bf16.msra.mxu0 %v10405_v9  ;;  %5017 = vmatpush1.bf16.msra.mxu1 %v10410_v20  ;;  %v8601_v15 = vpop.eup %8600  ;;  %v11512_v9 = vld [vmem:[#allocation28_spill] sm:$0xff]  ;;  %v11513_v20 = vld [vmem:[#allocation29_spill] sm:$0xff] }
 0x5b8   :  { %4975 = vmatprep.subr.bf16.mxu0 %v10417_v19  ;;  %5018 = vmatprep.subr.bf16.mxu1 %v10422_v45  ;;  %v4458_v11 = vmul.f32 %v8601_v15, %v10453_v49  ;;  %v11514_v19 = vld [vmem:[#allocation31_spill] sm:$0xff]  ;;  %v11515_v45 = vld [vmem:[#allocation32_spill] sm:$0xff]  ;;  %v11517_v49 = vld [vmem:[#allocation34_spill] sm:$0xff]  ;;  %v8603_v33 = vpop.eup %8602 }
 0x5b9   :  { %8604 = vtanh.f32 %v10615_v10  ;;  %v10694_v48 = vld [vmem:[%s11303_s6 + $0x28] ss:$16 sps:$4 sm:$0xff]   ;;  %v10727_v51 = vld [vmem:[%s11303_s6 + $0x64] ss:$16 sps:$4 sm:$0xff]   ;;  %v10756_v60 = vld [vmem:[%s11303_s6 + $0x8c] ss:$16 sps:$4 sm:$0xff]  }
 0x5ba   :  { %v10623_v16 = vadd.f32 %v4460_v61, %v4458_v11  ;;  %8606 = vrcp.f32 %v4450_v52  ;;  %v10761_v50 = vld [vmem:[%s11303_s6 + $0x80] ss:$16 sps:$4 sm:$0xff]   ;;  %v10766_v61 = vld [vmem:[%s11303_s6 + $0x88] ss:$16 sps:$4 sm:$0xff]   ;;  %v10775_v15 = vld [vmem:[%s11303_s6 + $0xa4] ss:$16 sps:$4 sm:$0xff]  }
 0x5bb   :  { %4976 = vmatpush1.bf16.msra.mxu0 %v11510_v6  ;;  %5019 = vmatpush1.bf16.msra.mxu1 %v11511_v3  ;;  %v10780_v52 = vld [vmem:[%s11303_s6 + $0xac] ss:$16 sps:$4 sm:$0xff]   ;;  %v10785_v11 = vld [vmem:[%s11303_s6 + $0xa0] ss:$16 sps:$4 sm:$0xff]   ;;  %v10790_v6 = vld [vmem:[%s11303_s6 + $0xa8] ss:$16 sps:$4 sm:$0xff]  }
 0x5bc   :  { %4977 = vmatprep.subr.bf16.mxu0 %v11512_v9  ;;  %5020 = vmatprep.subr.bf16.mxu1 %v11513_v20  ;;  %8608 = vtanh.f32 %v10623_v16  ;;  %v10799_v3 = vld [vmem:[%s11303_s6 + $0xc4] ss:$16 sps:$4 sm:$0xff]   ;;  %v10804_v9 = vld [vmem:[%s11303_s6 + $0xcc] ss:$16 sps:$4 sm:$0xff]   ;;  %v10809_v20 = vld [vmem:[%s11303_s6 + $0xc0] ss:$16 sps:$4 sm:$0xff]  }
 0x5bd   :  { %11521 = vst [vmem:[#allocation10_spill] sm:$0xff] %v10804_v9  ;;  %11522 = vst [vmem:[#allocation11_spill] sm:$0xff] %v10809_v20 }
 0x5bf   :  { %4978 = vmatpush1.bf16.msra.mxu0 %v11514_v19  ;;  %5021 = vmatpush1.bf16.msra.mxu1 %v11515_v45  ;;  %v10814_v19 = vld [vmem:[%s11303_s6 + $0xc8] ss:$16 sps:$4 sm:$0xff]   ;;  %v10823_v45 = vld [vmem:[%s11303_s6 + $0xe4] ss:$16 sps:$4 sm:$0xff]  }
 0x5c0   :  { %4979 = vmatprep.subr.bf16.mxu0 %v11516_v7  ;;  %5022 = vmatprep.subr.bf16.mxu1 %v11517_v49  ;;  %11523 = vst [vmem:[#allocation14_spill] sm:$0xff] %v10814_v19  ;;  %11524 = vst [vmem:[#allocation15_spill] sm:$0xff] %v10823_v45  ;;  %v10828_v7 = vld [vmem:[%s11303_s6 + $0xec] ss:$16 sps:$4 sm:$0xff]   ;;  %v10833_v49 = vld [vmem:[%s11303_s6 + $0xe0] ss:$16 sps:$4 sm:$0xff]  }
 0x5c1   :  { %11525 = vst [vmem:[#allocation16_spill] sm:$0xff] %v10828_v7  ;;  %11526 = vst [vmem:[#allocation17_spill] sm:$0xff] %v10833_v49 }
 0x5c3   :  { %v8605_v13 = vpop.eup %8604  ;;  %4980 = vmatpush1.bf16.msra.mxu0 %v11518_v43  ;;  %5023 = vmatpush1.bf16.msra.mxu1 %v11519_v22  ;;  %v10852_v43 = vld [vmem:[%s11304_s7 + $0xc] ss:$16 sps:$4 sm:$0xff]  }
 0x5c4   :  { %4981 = vmatprep.subr.bf16.mxu0 %v10497_v59  ;;  %5024 = vmatprep.subr.bf16.mxu1 %v11520_v26  ;;  %v10638_v17 = vmul.f32 %v8605_v13, %v8603_v33  ;;  %v8607_v30 = vpop.eup %8606  ;;  %v10838_v33 = vld [vmem:[%s11303_s6 + $0xe8] ss:$16 sps:$4 sm:$0xff]   ;;  %v10847_v13 = vld [vmem:[%s11304_s7 + $0x4] ss:$16 sps:$4 sm:$0xff]   ;;  %11529 = vst [vmem:[#allocation20_spill] sm:$0xff] %v10852_v43 }
 0x5c5   :  { %11527 = vst [vmem:[#allocation18_spill] sm:$0xff] %v10838_v33  ;;  %11528 = vst [vmem:[#allocation19_spill] sm:$0xff] %v10847_v13 }
 0x5c6   :  { %v8609_v34 = vpop.eup %8608 }
 0x5c7   :  { %4982 = vmatpush1.bf16.msra.mxu0 %v10509_v63  ;;  %5025 = vmatpush1.bf16.msra.mxu1 %v10514_v35  ;;  %v10644_v41 = vmul.f32 %v8609_v34, %v8607_v30  ;;  %v10655_v63 = vld [vmem:[%s11303_s6 + $0x4] ss:$16 sps:$4 sm:$0xff]   ;;  %v10660_v35 = vld [vmem:[%s11303_s6 + $0xc] ss:$16 sps:$4 sm:$0xff]  }
 0x5c8   :  { %5398 = vmatprep.subr.bf16.mxu0 %v10655_v63  ;;  %5441 = vmatprep.subr.bf16.mxu1 %v10660_v35 }
 0x5c9   :  { %v4774_v59 = vpack.c.bf16 %v10644_v41, %v10638_v17 }
 0x5cb   :  { %5000 = vmatmul.mubr.bf16.vlgmr.msra.gmra.mrb[40].mxu0 %v4774_v59  ;;  %5043 = vmatmul.mubr.bf16.vlgmr.msra.gmra.mrb[40].mxu1 %v4774_v59 }
 0x5cc   :  { %5430 = vmatprep.mubr.bf16.mxu0 %v11405_v58  ;;  %5473 = vmatprep.mubr.bf16.mxu1 %v11405_v58 }
 0x5cd   :  { %5399 = vmatpush1.bf16.msra.mxu0 %v10665_v23  ;;  %5442 = vmatpush1.bf16.msra.mxu1 %v10670_v28 }
 0x5ce   :  { %5400 = vmatprep.subr.bf16.mxu0 %v10679_v0  ;;  %5443 = vmatprep.subr.bf16.mxu1 %v10684_v29 }
 0x5d1   :  { %5401 = vmatpush1.bf16.msra.mxu0 %v10689_v21  ;;  %5444 = vmatpush1.bf16.msra.mxu1 %v10694_v48 }
 0x5d2   :  { %5402 = vmatprep.subr.bf16.mxu0 %v10703_v56  ;;  %5445 = vmatprep.subr.bf16.mxu1 %v10708_v40 }
 0x5d5   :  { %5403 = vmatpush1.bf16.msra.mxu0 %v10713_v1  ;;  %5446 = vmatpush1.bf16.msra.mxu1 %v10718_v8 }
 0x5d6   :  { %5404 = vmatprep.subr.bf16.mxu0 %v10727_v51  ;;  %5447 = vmatprep.subr.bf16.mxu1 %v10732_v54 }
 0x5d9   :  { %5405 = vmatpush1.bf16.msra.mxu0 %v10737_v27  ;;  %5448 = vmatpush1.bf16.msra.mxu1 %v10742_v18 }
 0x5da   :  { %5406 = vmatprep.subr.bf16.mxu0 %v10751_v62  ;;  %5449 = vmatprep.subr.bf16.mxu1 %v10756_v60 }
 0x5dd   :  { %5407 = vmatpush1.bf16.msra.mxu0 %v10761_v50  ;;  %5450 = vmatpush1.bf16.msra.mxu1 %v10766_v61 }
 0x5de   :  { %5408 = vmatprep.subr.bf16.mxu0 %v10775_v15  ;;  %5451 = vmatprep.subr.bf16.mxu1 %v10780_v52 }
 0x5e1   :  { %5409 = vmatpush1.bf16.msra.mxu0 %v10785_v11  ;;  %5452 = vmatpush1.bf16.msra.mxu1 %v10790_v6 }
 0x5e2   :  { %5410 = vmatprep.subr.bf16.mxu0 %v10799_v3  ;;  %5453 = vmatprep.subr.bf16.mxu1 %v10804_v9 }
 0x5e5   :  { %5411 = vmatpush1.bf16.msra.mxu0 %v10809_v20  ;;  %5454 = vmatpush1.bf16.msra.mxu1 %v10814_v19 }
 0x5e6   :  { %5412 = vmatprep.subr.bf16.mxu0 %v10823_v45  ;;  %5455 = vmatprep.subr.bf16.mxu1 %v10828_v7 }
 0x5e9   :  { %5413 = vmatpush1.bf16.msra.mxu0 %v10833_v49  ;;  %5456 = vmatpush1.bf16.msra.mxu1 %v10838_v33 }
 0x5ea   :  { %5677 = vmatprep.subr.bf16.mxu0 %v10847_v13  ;;  %5720 = vmatprep.subr.bf16.mxu1 %v10852_v43 }
 0x67d   :  { %v4722_v22 = vpop.f32.mrb[20].mxu0  ;;  %v4765_v26 = vpop.f32.mrb[20].mxu1 }
 0x67e   :  { %v7622_v30 = vadd.f32 %v4722_v22, %v11502_v37  ;;  %v4724_v34 = vpop.f32.mrb[21].mxu0  ;;  %v4767_v59 = vpop.f32.mrb[21].mxu1 }
 0x67f   :  { %v7623_v4 = vadd.f32 %v4724_v34, %v9439_v24  ;;  %v4726_v38 = vpop.f32.mrb[22].mxu0  ;;  %v4769_v32 = vpop.f32.mrb[22].mxu1  ;;  %v7655_v22 = vadd.f32 %v4767_v59, %v9448_v42  ;;  %v7654_v34 = vadd.f32 %v4765_v26, %v9453_v47 }
 0x680   :  { %v7363_v14 = vmul.f32 -1.442695, %v7622_v30  ;;  %v7624_v33 = vadd.f32 %v4726_v38, %v11502_v37  ;;  %v4728_v49 = vpop.f32.mrb[23].mxu0  ;;  %v4771_v7 = vpop.f32.mrb[23].mxu1  ;;  %v7656_v38 = vadd.f32 %v4769_v32, %v9453_v47 }
 0x681   :  { %v7365_v45 = vmul.f32 -1.442695, %v7623_v4  ;;  %v7625_v13 = vadd.f32 %v4728_v49, %v9439_v24  ;;  %v7367_v20 = vmul.f32 -1.442695, %v7655_v22  ;;  %v7657_v30 = vadd.f32 %v4771_v7, %v9448_v42 }
 0x682   :  { %8610 = vpow2.f32 %v7363_v14  ;;  %v7364_v43 = vmul.f32 -1.442695, %v7624_v33 }
 0x683   :  { %8612 = vpow2.f32 %v7365_v45  ;;  %v7366_v19 = vmul.f32 -1.442695, %v7625_v13  ;;  %v7368_v14 = vmul.f32 -1.442695, %v7657_v30 }
 0x684   :  { %8614 = vpow2.f32 %v7364_v43 }
 0x685   :  { %8616 = vpow2.f32 %v7366_v19 }
 0x686   :  { %8618 = vtanh.f32 %v7654_v34 }
 0x687   :  { %8620 = vpow2.f32 %v7367_v20 }
 0x688   :  { %8622 = vtanh.f32 %v7656_v38 }
 0x68c   :  { %v8611_v37 = vpop.eup %8610 }
 0x68d   :  { %v8613_v4 = vpop.eup %8612  ;;  %v5067_v9 = vadd.f32 1.0, %v8611_v37 }
 0x68e   :  { %v5079_v49 = vadd.f32 1.0, %v8613_v4  ;;  %v8615_v45 = vpop.eup %8614 }
 0x68f   :  { %8624 = vrcp.f32 %v5067_v9  ;;  %v5068_v33 = vadd.f32 1.0, %v8615_v45  ;;  %v8617_v19 = vpop.eup %8616 }
 0x690   :  { %8626 = vrcp.f32 %v5079_v49  ;;  %v5080_v13 = vadd.f32 1.0, %v8617_v19  ;;  %v8619_v7 = vpop.eup %8618 }
 0x691   :  { %8628 = vpow2.f32 %v7368_v14  ;;  %v8621_v43 = vpop.eup %8620 }
 0x692   :  { %8630 = vrcp.f32 %v5068_v33  ;;  %v8623_v32 = vpop.eup %8622  ;;  %v5093_v37 = vadd.f32 1.0, %v8621_v43 }
 0x693   :  { %8632 = vrcp.f32 %v5080_v13 }
 0x694   :  { %8634 = vrcp.f32 %v5093_v37 }
 0x699   :  { %v8625_v26 = vpop.eup %8624 }
 0x69a   :  { %v8627_v59 = vpop.eup %8626  ;;  %v5103_v22 = vmul.f32 %v8625_v26, %v8619_v7 }
 0x69b   :  { %v8629_v20 = vpop.eup %8628  ;;  %v5101_v34 = vmul.f32 %v8627_v59, %v10575_v31 }
 0x69c   :  { %v8631_v30 = vpop.eup %8630  ;;  %v5094_v14 = vadd.f32 1.0, %v8629_v20 }
 0x69d   :  { %v10865_v38 = vadd.f32 %v5103_v22, %v5101_v34  ;;  %v5104_v9 = vmul.f32 %v8631_v30, %v8623_v32  ;;  %v8633_v4 = vpop.eup %8632 }
 0x69e   :  { %v5102_v49 = vmul.f32 %v8633_v4, %v10580_v25  ;;  %v5001_v45 = vpop.f32.mrb[40].mxu0  ;;  %v5044_v33 = vpop.f32.mrb[40].mxu1 }
 0x69f   :  { %8636 = vtanh.f32 %v10865_v38  ;;  %v7674_v19 = vadd.f32 %v5001_v45, %v11503_v2  ;;  %v5003_v13 = vpop.f32.mrb[41].mxu0  ;;  %v5046_v7 = vpop.f32.mrb[41].mxu1 }
 0x6a0   :  { %v10870_v43 = vadd.f32 %v5104_v9, %v5102_v49  ;;  %v7675_v31 = vadd.f32 %v5003_v13, %v9464_v46  ;;  %v5005_v26 = vpop.f32.mrb[42].mxu0  ;;  %v5048_v59 = vpop.f32.mrb[42].mxu1  ;;  %8638 = vrcp.f32 %v5094_v14  ;;  %v7707_v4 = vadd.f32 %v5046_v7, %v9477_v39 }
 0x6a1   :  { %v7369_v32 = vmul.f32 -1.442695, %v7674_v19  ;;  %v7676_v22 = vadd.f32 %v5005_v26, %v11503_v2  ;;  %v5007_v37 = vpop.f32.mrb[43].mxu0  ;;  %v5050_v20 = vpop.f32.mrb[43].mxu1  ;;  %v7706_v14 = vadd.f32 %v5044_v33, %v9482_v44 }
 0x6a2   :  { %8640 = vtanh.f32 %v10870_v43  ;;  %v7371_v25 = vmul.f32 -1.442695, %v7675_v31  ;;  %v7677_v34 = vadd.f32 %v5007_v37, %v9464_v46  ;;  %v8635_v49 = vpop.eup %8634  ;;  %v7373_v13 = vmul.f32 -1.442695, %v7707_v4 }
 0x6a3   :  { %8642 = vpow2.f32 %v7369_v32  ;;  %v7370_v30 = vmul.f32 -1.442695, %v7676_v22  ;;  %v7709_v26 = vadd.f32 %v5050_v20, %v9477_v39  ;;  %v7708_v31 = vadd.f32 %v5048_v59, %v9482_v44  ;;  %v10893_v59 = vld [vmem:[%s11304_s7 + $0x8] ss:$16 sps:$4 sm:$0xff]  }
 0x6a4   :  { %8644 = vpow2.f32 %v7371_v25  ;;  %v7372_v9 = vmul.f32 -1.442695, %v7677_v34  ;;  %v11530_v32 = vmax.f32 %v10323_v57, %v10588_v5  ;;  %v10888_v25 = vld [vmem:[%s11304_s7] ss:$16 sps:$4 sm:$0xff]   ;;  %v11531_v5 = vmax.f32 %v10338_v12, %v10594_v53 }
 0x6a5   :  { %8646 = vpow2.f32 %v7370_v30  ;;  %v7374_v20 = vmul.f32 -1.442695, %v7709_v26  ;;  %v10915_v53 = vld [vmem:[%s11304_s7 + $0x20] ss:$16 sps:$4 sm:$0xff]   ;;  %v10927_v26 = vld [vmem:[%s11304_s7 + $0x44] ss:$16 sps:$4 sm:$0xff]  }
 0x6a6   :  { %8648 = vpow2.f32 %v7372_v9  ;;  %11532 = vst [vmem:[#allocation21_spill] sm:$0xff] %v10927_v26 }
 0x6a7   :  { %8650 = vtanh.f32 %v7706_v14 }
 0x6a8   :  { %8652 = vpow2.f32 %v7373_v13 }
 0x6a9   :  { %v8637_v45 = vpop.eup %8636  ;;  %8654 = vtanh.f32 %v7708_v31  ;;  %v10932_v31 = vld [vmem:[%s11304_s7 + $0x4c] ss:$16 sps:$4 sm:$0xff]  }
 0x6aa   :  { %v5111_v19 = vmul.f32 %v8637_v45, %v8635_v49  ;;  %v8639_v2 = vpop.eup %8638  ;;  %v10908_v49 = vld [vmem:[%s11304_s7 + $0x2c] ss:$16 sps:$4 sm:$0xff]   ;;  %11533 = vst [vmem:[#allocation22_spill] sm:$0xff] %v10932_v31 }
 0x6ac   :  { %v10883_v22 = vmax.f32 %v11530_v32, %v5111_v19  ;;  %v8641_v37 = vpop.eup %8640  ;;  %v10941_v32 = vld [vmem:[%s11304_s7 + $0x40] ss:$16 sps:$4 sm:$0xff]  }
 0x6ad   :  { %v8643_v7 = vpop.eup %8642  ;;  %v5112_v33 = vmul.f32 %v8641_v37, %v8639_v2  ;;  %v10903_v2 = vld [vmem:[%s11304_s7 + $0x24] ss:$16 sps:$4 sm:$0xff]   ;;  %11534 = vst [vmem:[#allocation23_spill] sm:$0xff] %v10941_v32  ;;  %v10946_v37 = vld [vmem:[%s11304_s7 + $0x48] ss:$16 sps:$4 sm:$0xff]  }
 0x6ae   :  { %v8645_v34 = vpop.eup %8644  ;;  %v5133_v30 = vadd.f32 1.0, %v8643_v7  ;;  %11535 = vst [vmem:[#allocation24_spill] sm:$0xff] %v10946_v37 }
 0x6af   :  { %v5145_v57 = vadd.f32 1.0, %v8645_v34  ;;  %v10898_v9 = vmax.f32 %v11531_v5, %v5112_v33  ;;  %v5205_v4 = vpack.c.bf16 %v5112_v33, %v5111_v19  ;;  %v8647_v45 = vpop.eup %8646  ;;  %v10920_v19 = vld [vmem:[%s11304_s7 + $0x28] ss:$16 sps:$4 sm:$0xff]   ;;  %v10953_v33 = vld [vmem:[%s11304_s7 + $0x64] ss:$16 sps:$4 sm:$0xff]  }
 0x6b0   :  { %8656 = vrcp.f32 %v5133_v30  ;;  %v5134_v14 = vadd.f32 1.0, %v8647_v45  ;;  %v8649_v12 = vpop.eup %8648  ;;  %11536 = vst [vmem:[#allocation25_spill] sm:$0xff] %v10953_v33  ;;  %v10958_v34 = vld [vmem:[%s11304_s7 + $0x6c] ss:$16 sps:$4 sm:$0xff]   ;;  %v10965_v5 = vld [vmem:[%s11304_s7 + $0x60] ss:$16 sps:$4 sm:$0xff]  }
 0x6b1   :  { %8658 = vrcp.f32 %v5145_v57  ;;  %5431 = vmatmul.mubr.bf16.vlgmr.msra.gmra.mrb[24].mxu0 %v5205_v4  ;;  %5474 = vmatmul.mubr.bf16.vlgmr.msra.gmra.mrb[24].mxu1 %v5205_v4  ;;  %v5146_v13 = vadd.f32 1.0, %v8649_v12  ;;  %v8651_v7 = vpop.eup %8650  ;;  %11537 = vst [vmem:[#allocation30_spill] sm:$0xff] %v10958_v34  ;;  %v10970_v4 = vld [vmem:[%s11304_s7 + $0x68] ss:$16 sps:$4 sm:$0xff]  }
 0x6b2   :  { %8660 = vpow2.f32 %v7374_v20  ;;  %5678 = vmatpush1.bf16.msra.mxu0 %v10888_v25  ;;  %5721 = vmatpush1.bf16.msra.mxu1 %v10893_v59  ;;  %v8653_v30 = vpop.eup %8652 }
 0x6b3   :  { %8662 = vrcp.f32 %v5134_v14  ;;  %5679 = vmatprep.subr.bf16.mxu0 %v10903_v2  ;;  %5722 = vmatprep.subr.bf16.mxu1 %v10908_v49  ;;  %v8655_v20 = vpop.eup %8654  ;;  %v5159_v12 = vadd.f32 1.0, %v8653_v30 }
 0x6b4   :  { %5709 = vmatprep.mubr.bf16.mxu0 %v11405_v58  ;;  %5752 = vmatprep.mubr.bf16.mxu1 %v11405_v58  ;;  %8664 = vrcp.f32 %v5146_v13  ;;  %v10977_v13 = vld [vmem:[%s11304_s7 + $0x84] ss:$16 sps:$4 sm:$0xff]  }
 0x6b5   :  { %8666 = vrcp.f32 %v5159_v12  ;;  %v11045_v12 = vld [vmem:[%s11304_s7 + $0xc0] ss:$16 sps:$4 sm:$0xff]  }
 0x6b6   :  { %5680 = vmatpush1.bf16.msra.mxu0 %v10915_v53  ;;  %5723 = vmatpush1.bf16.msra.mxu1 %v10920_v19  ;;  %11546 = vst [vmem:[#allocation35_spill] sm:$0xff] %v11045_v12 }
 0x6b7   :  { %5681 = vmatprep.subr.bf16.mxu0 %v10927_v26  ;;  %5724 = vmatprep.subr.bf16.mxu1 %v10932_v31 }
 0x6ba   :  { %v8657_v57 = vpop.eup %8656  ;;  %5682 = vmatpush1.bf16.msra.mxu0 %v10941_v32  ;;  %5725 = vmatpush1.bf16.msra.mxu1 %v10946_v37  ;;  %v10982_v37 = vld [vmem:[%s11304_s7 + $0x8c] ss:$16 sps:$4 sm:$0xff]  }
 0x6bb   :  { %v8659_v45 = vpop.eup %8658  ;;  %v5169_v14 = vmul.f32 %v8657_v57, %v8651_v7  ;;  %5683 = vmatprep.subr.bf16.mxu0 %v10953_v33  ;;  %5726 = vmatprep.subr.bf16.mxu1 %v10958_v34  ;;  %v10992_v57 = vld [vmem:[%s11304_s7 + $0x80] ss:$16 sps:$4 sm:$0xff]   ;;  %v10997_v34 = vld [vmem:[%s11304_s7 + $0x88] ss:$16 sps:$4 sm:$0xff]  }
 0x6bc   :  { %v8661_v32 = vpop.eup %8660  ;;  %v5167_v31 = vmul.f32 %v8659_v45, %v10615_v10  ;;  %11538 = vst [vmem:[#allocation26_spill] sm:$0xff] %v10992_v57  ;;  %11539 = vst [vmem:[#allocation27_spill] sm:$0xff] %v10997_v34 }
 0x6bd   :  { %v8663_v26 = vpop.eup %8662  ;;  %v5160_v10 = vadd.f32 1.0, %v8661_v32  ;;  %v11020_v32 = vld [vmem:[%s11304_s7 + $0xa0] ss:$16 sps:$4 sm:$0xff]  }
 0x6be   :  { %v10985_v7 = vadd.f32 %v5169_v14, %v5167_v31  ;;  %v5170_v30 = vmul.f32 %v8663_v26, %v8655_v20  ;;  %5684 = vmatpush1.bf16.msra.mxu0 %v10965_v5  ;;  %5727 = vmatpush1.bf16.msra.mxu1 %v10970_v4  ;;  %v8665_v33 = vpop.eup %8664  ;;  %v11004_v26 = vld [vmem:[%s11304_s7 + $0xa4] ss:$16 sps:$4 sm:$0xff]   ;;  %v11009_v31 = vld [vmem:[%s11304_s7 + $0xac] ss:$16 sps:$4 sm:$0xff]   ;;  %11542 = vst [vmem:[#allocation31_spill] sm:$0xff] %v11020_v32 }
 0x6bf   :  { %5685 = vmatprep.subr.bf16.mxu0 %v10977_v13  ;;  %5728 = vmatprep.subr.bf16.mxu1 %v10982_v37  ;;  %11540 = vst [vmem:[#allocation28_spill] sm:$0xff] %v11004_v26  ;;  %11541 = vst [vmem:[#allocation29_spill] sm:$0xff] %v11009_v31  ;;  %v5168_v20 = vmul.f32 %v8665_v33, %v10623_v16  ;;  %v11025_v14 = vld [vmem:[%s11304_s7 + $0xa8] ss:$16 sps:$4 sm:$0xff]   ;;  %v11032_v16 = vld [vmem:[%s11304_s7 + $0xc4] ss:$16 sps:$4 sm:$0xff]  }
 0x6c0   :  { %8668 = vtanh.f32 %v10985_v7  ;;  %11543 = vst [vmem:[#allocation32_spill] sm:$0xff] %v11025_v14  ;;  %11544 = vst [vmem:[#allocation33_spill] sm:$0xff] %v11032_v16  ;;  %v11037_v33 = vld [vmem:[%s11304_s7 + $0xcc] ss:$16 sps:$4 sm:$0xff]  }
 0x6c1   :  { %v11013_v45 = vadd.f32 %v5170_v30, %v5168_v20  ;;  %8670 = vrcp.f32 %v5160_v10  ;;  %11545 = vst [vmem:[#allocation34_spill] sm:$0xff] %v11037_v33  ;;  %v11050_v30 = vld [vmem:[%s11304_s7 + $0xc8] ss:$16 sps:$4 sm:$0xff]   ;;  %v11057_v10 = vld [vmem:[%s11304_s7 + $0xe4] ss:$16 sps:$4 sm:$0xff]  }
 0x6c2   :  { %5686 = vmatpush1.bf16.msra.mxu0 %v10992_v57  ;;  %5729 = vmatpush1.bf16.msra.mxu1 %v10997_v34  ;;  %11547 = vst [vmem:[#allocation36_spill] sm:$0xff] %v11050_v30  ;;  %v11062_v20 = vld [vmem:[%s11304_s7 + $0xec] ss:$16 sps:$4 sm:$0xff]  }
 0x6c3   :  { %5687 = vmatprep.subr.bf16.mxu0 %v11004_v26  ;;  %5730 = vmatprep.subr.bf16.mxu1 %v11009_v31  ;;  %8672 = vtanh.f32 %v11013_v45  ;;  %11548 = vst [vmem:[#allocation37_spill] sm:$0xff] %v11062_v20 }
 0x6c6   :  { %5688 = vmatpush1.bf16.msra.mxu0 %v11020_v32  ;;  %5731 = vmatpush1.bf16.msra.mxu1 %v11025_v14  ;;  %v8667_v14 = vpop.eup %8666 }
 0x6c7   :  { %5689 = vmatprep.subr.bf16.mxu0 %v11032_v16  ;;  %5732 = vmatprep.subr.bf16.mxu1 %v11037_v33  ;;  %v11069_v33 = vld [vmem:[%s11304_s7 + $0xe0] ss:$16 sps:$4 sm:$0xff]   ;;  %v11074_v16 = vld [vmem:[%s11304_s7 + $0xe8] ss:$16 sps:$4 sm:$0xff]  }
 0x6ca   :  { %v8669_v32 = vpop.eup %8668  ;;  %5690 = vmatpush1.bf16.msra.mxu0 %v11045_v12  ;;  %5733 = vmatpush1.bf16.msra.mxu1 %v11050_v30  ;;  %v11549_v12 = vmax.f32 %v10521_v55, %v10638_v17  ;;  %v11551_v55 = vld [vmem:[#allocation10_spill] sm:$0xff] }
 0x6cb   :  { %5691 = vmatprep.subr.bf16.mxu0 %v11057_v10  ;;  %5734 = vmatprep.subr.bf16.mxu1 %v11062_v20  ;;  %v5177_v31 = vmul.f32 %v8669_v32, %v8667_v14  ;;  %v8671_v26 = vpop.eup %8670  ;;  %v11550_v20 = vmax.f32 %v10530_v36, %v10644_v41  ;;  %v11552_v36 = vld [vmem:[#allocation11_spill] sm:$0xff]  ;;  %v11553_v17 = vld [vmem:[#allocation14_spill] sm:$0xff] }
 0x6cc   :  { %v11554_v41 = vld [vmem:[#allocation15_spill] sm:$0xff] }
 0x6cd   :  { %v11081_v30 = vmax.f32 %v11549_v12, %v5177_v31  ;;  %v8673_v34 = vpop.eup %8672 }
 0x6ce   :  { %5692 = vmatpush1.bf16.msra.mxu0 %v11069_v33  ;;  %5735 = vmatpush1.bf16.msra.mxu1 %v11074_v16  ;;  %v5178_v57 = vmul.f32 %v8673_v34, %v8671_v26 }
 0x6cf   :  { %6108 = vmatprep.subr.bf16.mxu0 %v10655_v63  ;;  %6151 = vmatprep.subr.bf16.mxu1 %v10660_v35  ;;  %v11555_v63 = vld [vmem:[#allocation16_spill] sm:$0xff]  ;;  %v11556_v35 = vld [vmem:[#allocation17_spill] sm:$0xff] }
 0x6d0   :  { %v11090_v32 = vmax.f32 %v11550_v20, %v5178_v57  ;;  %v5484_v14 = vpack.c.bf16 %v5178_v57, %v5177_v31 }
 0x6d2   :  { %5710 = vmatmul.mubr.bf16.vlgmr.msra.gmra.mrb[36].mxu0 %v5484_v14  ;;  %5753 = vmatmul.mubr.bf16.vlgmr.msra.gmra.mrb[36].mxu1 %v5484_v14 }
 0x6d3   :  { %6109 = vmatpush1.bf16.msra.mxu0 %v10665_v23  ;;  %6152 = vmatpush1.bf16.msra.mxu1 %v10670_v28  ;;  %v11557_v23 = vld [vmem:[#allocation18_spill] sm:$0xff]  ;;  %v11558_v28 = vld [vmem:[#allocation19_spill] sm:$0xff] }
 0x6d4   :  { %6110 = vmatprep.subr.bf16.mxu0 %v10679_v0  ;;  %6153 = vmatprep.subr.bf16.mxu1 %v10684_v29  ;;  %v11559_v0 = vld [vmem:[#allocation20_spill] sm:$0xff] }
 0x6d5   :  { %6140 = vmatprep.mubr.bf16.mxu0 %v11405_v58  ;;  %6183 = vmatprep.mubr.bf16.mxu1 %v11405_v58 }
 0x6d7   :  { %6111 = vmatpush1.bf16.msra.mxu0 %v10689_v21  ;;  %6154 = vmatpush1.bf16.msra.mxu1 %v10694_v48  ;;  %v11560_v48 = vld [vmem:[#allocation12_spill] sm:$0xff] }
 0x6d8   :  { %6112 = vmatprep.subr.bf16.mxu0 %v10703_v56  ;;  %6155 = vmatprep.subr.bf16.mxu1 %v10708_v40 }
 0x6db   :  { %6113 = vmatpush1.bf16.msra.mxu0 %v10713_v1  ;;  %6156 = vmatpush1.bf16.msra.mxu1 %v10718_v8 }
 0x6dc   :  { %6114 = vmatprep.subr.bf16.mxu0 %v10727_v51  ;;  %6157 = vmatprep.subr.bf16.mxu1 %v10732_v54 }
 0x6df   :  { %6115 = vmatpush1.bf16.msra.mxu0 %v10737_v27  ;;  %6158 = vmatpush1.bf16.msra.mxu1 %v10742_v18 }
 0x6e0   :  { %6116 = vmatprep.subr.bf16.mxu0 %v10751_v62  ;;  %6159 = vmatprep.subr.bf16.mxu1 %v10756_v60 }
 0x6e3   :  { %6117 = vmatpush1.bf16.msra.mxu0 %v10761_v50  ;;  %6160 = vmatpush1.bf16.msra.mxu1 %v10766_v61 }
 0x6e4   :  { %6118 = vmatprep.subr.bf16.mxu0 %v10775_v15  ;;  %6161 = vmatprep.subr.bf16.mxu1 %v10780_v52 }
 0x6e7   :  { %6119 = vmatpush1.bf16.msra.mxu0 %v10785_v11  ;;  %6162 = vmatpush1.bf16.msra.mxu1 %v10790_v6 }
 0x6e8   :  { %6120 = vmatprep.subr.bf16.mxu0 %v10799_v3  ;;  %6163 = vmatprep.subr.bf16.mxu1 %v11551_v55 }
 0x6eb   :  { %6121 = vmatpush1.bf16.msra.mxu0 %v11552_v36  ;;  %6164 = vmatpush1.bf16.msra.mxu1 %v11553_v17 }
 0x6ec   :  { %6122 = vmatprep.subr.bf16.mxu0 %v11554_v41  ;;  %6165 = vmatprep.subr.bf16.mxu1 %v11555_v63 }
 0x6ef   :  { %6123 = vmatpush1.bf16.msra.mxu0 %v11556_v35  ;;  %6166 = vmatpush1.bf16.msra.mxu1 %v11557_v23 }
 0x6f0   :  { %6387 = vmatprep.subr.bf16.mxu0 %v11558_v28  ;;  %6430 = vmatprep.subr.bf16.mxu1 %v11559_v0 }
 0x784   :  { %v5432_v29 = vpop.f32.mrb[24].mxu0  ;;  %v5475_v21 = vpop.f32.mrb[24].mxu1 }
 0x785   :  { %v7626_v56 = vadd.f32 %v5432_v29, %v11560_v48  ;;  %v5434_v40 = vpop.f32.mrb[25].mxu0  ;;  %v5477_v1 = vpop.f32.mrb[25].mxu1  ;;  %v7658_v6 = vadd.f32 %v5475_v21, %v9453_v47 }
 0x786   :  { %v7627_v8 = vadd.f32 %v5434_v40, %v9439_v24  ;;  %v5436_v51 = vpop.f32.mrb[26].mxu0  ;;  %v5479_v54 = vpop.f32.mrb[26].mxu1  ;;  %v7659_v11 = vadd.f32 %v5477_v1, %v9448_v42 }
 0x787   :  { %v7439_v27 = vmul.f32 -1.442695, %v7626_v56  ;;  %v7628_v18 = vadd.f32 %v5436_v51, %v11560_v48  ;;  %v5438_v62 = vpop.f32.mrb[27].mxu0  ;;  %v5481_v60 = vpop.f32.mrb[27].mxu1  ;;  %v7660_v57 = vadd.f32 %v5479_v54, %v9453_v47 }
 0x788   :  { %v7441_v50 = vmul.f32 -1.442695, %v7627_v8  ;;  %v7629_v61 = vadd.f32 %v5438_v62, %v9439_v24  ;;  %v7443_v3 = vmul.f32 -1.442695, %v7659_v11  ;;  %v7661_v34 = vadd.f32 %v5481_v60, %v9448_v42 }
 0x789   :  { %8674 = vpow2.f32 %v7439_v27  ;;  %v7440_v15 = vmul.f32 -1.442695, %v7628_v18 }
 0x78a   :  { %8676 = vpow2.f32 %v7441_v50  ;;  %v7442_v52 = vmul.f32 -1.442695, %v7629_v61  ;;  %v7444_v20 = vmul.f32 -1.442695, %v7661_v34  ;;  %v11561_v50 = vld [vmem:[#allocation13_spill] sm:$0xff] }
 0x78b   :  { %8678 = vpow2.f32 %v7440_v15 }
 0x78c   :  { %8680 = vpow2.f32 %v7442_v52 }
 0x78d   :  { %8682 = vtanh.f32 %v7658_v6 }
 0x78e   :  { %8684 = vpow2.f32 %v7443_v3 }
 0x78f   :  { %8686 = vtanh.f32 %v7660_v57 }
 0x793   :  { %v8675_v26 = vpop.eup %8674 }
 0x794   :  { %v8677_v31 = vpop.eup %8676  ;;  %v5777_v12 = vadd.f32 1.0, %v8675_v26 }
 0x795   :  { %v5789_v14 = vadd.f32 1.0, %v8677_v31  ;;  %v8679_v55 = vpop.eup %8678 }
 0x796   :  { %8688 = vrcp.f32 %v5777_v12  ;;  %v5778_v36 = vadd.f32 1.0, %v8679_v55  ;;  %v8681_v17 = vpop.eup %8680 }
 0x797   :  { %8690 = vrcp.f32 %v5789_v14  ;;  %v5790_v41 = vadd.f32 1.0, %v8681_v17  ;;  %v8683_v63 = vpop.eup %8682 }
 0x798   :  { %8692 = vpow2.f32 %v7444_v20  ;;  %v8685_v35 = vpop.eup %8684 }
 0x799   :  { %8694 = vrcp.f32 %v5778_v36  ;;  %v8687_v23 = vpop.eup %8686  ;;  %v5803_v21 = vadd.f32 1.0, %v8685_v35 }
 0x79a   :  { %8696 = vrcp.f32 %v5790_v41 }
 0x79b   :  { %8698 = vrcp.f32 %v5803_v21 }
 0x7a0   :  { %v8689_v28 = vpop.eup %8688 }
 0x7a1   :  { %v8691_v0 = vpop.eup %8690  ;;  %v5813_v29 = vmul.f32 %v8689_v28, %v8683_v63 }
 0x7a2   :  { %v8693_v56 = vpop.eup %8692  ;;  %v5811_v40 = vmul.f32 %v8691_v0, %v10865_v38 }
 0x7a3   :  { %v8695_v1 = vpop.eup %8694  ;;  %v5804_v27 = vadd.f32 1.0, %v8693_v56 }
 0x7a4   :  { %v11135_v8 = vadd.f32 %v5813_v29, %v5811_v40  ;;  %v5814_v51 = vmul.f32 %v8695_v1, %v8687_v23  ;;  %v8697_v54 = vpop.eup %8696 }
 0x7a5   :  { %v5812_v18 = vmul.f32 %v8697_v54, %v10870_v43  ;;  %v5711_v62 = vpop.f32.mrb[36].mxu0  ;;  %v5754_v60 = vpop.f32.mrb[36].mxu1 }
 0x7a6   :  { %8700 = vtanh.f32 %v11135_v8  ;;  %v7670_v61 = vadd.f32 %v5711_v62, %v11561_v50  ;;  %v5713_v15 = vpop.f32.mrb[37].mxu0  ;;  %v5756_v52 = vpop.f32.mrb[37].mxu1  ;;  %v7702_v41 = vadd.f32 %v5754_v60, %v9482_v44 }
 0x7a7   :  { %v11140_v11 = vadd.f32 %v5814_v51, %v5812_v18  ;;  %v7671_v38 = vadd.f32 %v5713_v15, %v9464_v46  ;;  %v5715_v6 = vpop.f32.mrb[38].mxu0  ;;  %v5758_v3 = vpop.f32.mrb[38].mxu1  ;;  %8702 = vrcp.f32 %v5804_v27  ;;  %v7703_v55 = vadd.f32 %v5756_v52, %v9477_v39 }
 0x7a8   :  { %v7445_v34 = vmul.f32 -1.442695, %v7670_v61  ;;  %v7672_v57 = vadd.f32 %v5715_v6, %v11561_v50  ;;  %v5717_v26 = vpop.f32.mrb[39].mxu0  ;;  %v5760_v31 = vpop.f32.mrb[39].mxu1  ;;  %v7704_v0 = vadd.f32 %v5758_v3, %v9482_v44  ;;  %v11562_v6 = vld [vmem:[#allocation21_spill] sm:$0xff] }
 0x7a9   :  { %8704 = vtanh.f32 %v11140_v11  ;;  %v7447_v43 = vmul.f32 -1.442695, %v7671_v38  ;;  %v7673_v12 = vadd.f32 %v5717_v26, %v9464_v46  ;;  %v8699_v36 = vpop.eup %8698  ;;  %v7449_v35 = vmul.f32 -1.442695, %v7703_v55 }
 0x7aa   :  { %8706 = vpow2.f32 %v7445_v34  ;;  %v7446_v20 = vmul.f32 -1.442695, %v7672_v57  ;;  %v7705_v23 = vadd.f32 %v5760_v31, %v9477_v39  ;;  %v11566_v31 = vld [vmem:[#allocation25_spill] sm:$0xff] }
 0x7ab   :  { %8708 = vpow2.f32 %v7447_v43  ;;  %v7448_v14 = vmul.f32 -1.442695, %v7673_v12 }
 0x7ac   :  { %8710 = vpow2.f32 %v7446_v20  ;;  %v7450_v54 = vmul.f32 -1.442695, %v7705_v23  ;;  %v11574_v23 = vld [vmem:[#allocation33_spill] sm:$0xff] }
 0x7ad   :  { %8712 = vpow2.f32 %v7448_v14 }
 0x7ae   :  { %8714 = vtanh.f32 %v7702_v41  ;;  %v11568_v41 = vld [vmem:[#allocation26_spill] sm:$0xff] }
 0x7af   :  { %8716 = vpow2.f32 %v7449_v35  ;;  %v11569_v35 = vld [vmem:[#allocation27_spill] sm:$0xff] }
 0x7b0   :  { %v8701_v17 = vpop.eup %8700  ;;  %8718 = vtanh.f32 %v7704_v0 }
 0x7b1   :  { %v11148_v63 = vmul.f32 %v8701_v17, %v8699_v36  ;;  %v8703_v28 = vpop.eup %8702 }
 0x7b3   :  { %v5825_v29 = vmax.f32 %v10883_v22, %v11148_v63  ;;  %v8705_v21 = vpop.eup %8704 }
 0x7b4   :  { %v8707_v56 = vpop.eup %8706  ;;  %v11154_v40 = vmul.f32 %v8705_v21, %v8703_v28  ;;  %v11576_v21 = vld [vmem:[#allocation35_spill] sm:$0xff] }
 0x7b5   :  { %v8709_v1 = vpop.eup %8708  ;;  %v5843_v51 = vadd.f32 1.0, %v8707_v56  ;;  %v11577_v56 = vld [vmem:[#allocation36_spill] sm:$0xff] }
 0x7b6   :  { %v5855_v27 = vadd.f32 1.0, %v8709_v1  ;;  %v5915_v18 = vpack.c.bf16 %v11154_v40, %v11148_v63  ;;  %v5826_v62 = vmax.f32 %v10898_v9, %v11154_v40  ;;  %v8711_v60 = vpop.eup %8710  ;;  %v11578_v1 = vld [vmem:[#allocation37_spill] sm:$0xff] }
 0x7b7   :  { %8720 = vrcp.f32 %v5843_v51  ;;  %v5844_v61 = vadd.f32 1.0, %v8711_v60  ;;  %v8713_v15 = vpop.eup %8712 }
 0x7b8   :  { %8722 = vrcp.f32 %v5855_v27  ;;  %6141 = vmatmul.mubr.bf16.vlgmr.msra.gmra.mrb[28].mxu0 %v5915_v18  ;;  %6184 = vmatmul.mubr.bf16.vlgmr.msra.gmra.mrb[28].mxu1 %v5915_v18  ;;  %v5856_v52 = vadd.f32 1.0, %v8713_v15  ;;  %v8715_v38 = vpop.eup %8714  ;;  %v8274_v15 = vld [vmem:[%s11307_s8] sm:$0xff]  }
 0x7b9   :  { %8724 = vpow2.f32 %v7450_v54  ;;  %6388 = vmatpush1.bf16.msra.mxu0 %v10888_v25  ;;  %6431 = vmatpush1.bf16.msra.mxu1 %v10893_v59  ;;  %v11563_v25 = vld [vmem:[#allocation22_spill] sm:$0xff]  ;;  %v8717_v59 = vpop.eup %8716 }
 0x7ba   :  { %8726 = vrcp.f32 %v5844_v61  ;;  %6389 = vmatprep.subr.bf16.mxu0 %v10903_v2  ;;  %6432 = vmatprep.subr.bf16.mxu1 %v10908_v49  ;;  %v8719_v3 = vpop.eup %8718  ;;  %v11564_v2 = vld [vmem:[#allocation23_spill] sm:$0xff]  ;;  %v11565_v49 = vld [vmem:[#allocation24_spill] sm:$0xff] }
 0x7bb   :  { %6419 = vmatprep.mubr.bf16.mxu0 %v11405_v58  ;;  %6462 = vmatprep.mubr.bf16.mxu1 %v11405_v58  ;;  %8728 = vrcp.f32 %v5856_v52  ;;  %v5869_v58 = vadd.f32 1.0, %v8717_v59  ;;  %v8804_v52 = vmov 0.0   ;;  %v8280_v59 = vld [vmem:[%s11307_s8 + $0x30] sm:$0xff]  }
 0x7bd   :  { %6390 = vmatpush1.bf16.msra.mxu0 %v10915_v53  ;;  %6433 = vmatpush1.bf16.msra.mxu1 %v10920_v19  ;;  %v11567_v53 = vld [vmem:[#allocation30_spill] sm:$0xff]  ;;  %8730 = vrcp.f32 %v5869_v58  ;;  %v8287_v58 = vld [vmem:[%s11308_s9 + $0x28] sm:$0xff]  }
 0x7be   :  { %6391 = vmatprep.subr.bf16.mxu0 %v11562_v6  ;;  %6434 = vmatprep.subr.bf16.mxu1 %v11563_v25  ;;  %v8278_v6 = vld [vmem:[%s11307_s8 + $0x20] sm:$0xff]   ;;  %v8279_v25 = vld [vmem:[%s11307_s8 + $0x28] sm:$0xff]  }
 0x7c1   :  { %v8721_v34 = vpop.eup %8720  ;;  %6392 = vmatpush1.bf16.msra.mxu0 %v11564_v2  ;;  %6435 = vmatpush1.bf16.msra.mxu1 %v11565_v49  ;;  %v8283_v2 = vld [vmem:[%s11308_s9 + $0x8] sm:$0xff]   ;;  %v8284_v49 = vld [vmem:[%s11308_s9 + $0x10] sm:$0xff]  }
 0x7c2   :  { %v8723_v57 = vpop.eup %8722  ;;  %v5879_v26 = vmul.f32 %v8721_v34, %v8715_v38  ;;  %6393 = vmatprep.subr.bf16.mxu0 %v11566_v31  ;;  %6436 = vmatprep.subr.bf16.mxu1 %v11567_v53  ;;  %v8277_v38 = vld [vmem:[%s11307_s8 + $0x18] sm:$0xff]   ;;  %v8282_v34 = vld [vmem:[%s11308_s9] sm:$0xff]   ;;  %v8288_v31 = vld [vmem:[%s11308_s9 + $0x30] sm:$0xff]  }
 0x7c3   :  { %v8725_v19 = vpop.eup %8724  ;;  %v5877_v43 = vmul.f32 %v8723_v57, %v10985_v7  ;;  %v8285_v57 = vld [vmem:[%s11308_s9 + $0x18] sm:$0xff]  }
 0x7c4   :  { %v8727_v12 = vpop.eup %8726  ;;  %v5870_v36 = vadd.f32 1.0, %v8725_v19  ;;  %v8289_v53 = vld [vmem:[%s11308_s9 + $0x38] sm:$0xff]  }
 0x7c5   :  { %v11175_v20 = vadd.f32 %v5879_v26, %v5877_v43  ;;  %v5880_v14 = vmul.f32 %v8727_v12, %v8719_v3  ;;  %6394 = vmatpush1.bf16.msra.mxu0 %v10965_v5  ;;  %6437 = vmatpush1.bf16.msra.mxu1 %v10970_v4  ;;  %v8729_v55 = vpop.eup %8728  ;;  %v11570_v5 = vld [vmem:[#allocation28_spill] sm:$0xff]  ;;  %v11571_v4 = vld [vmem:[#allocation29_spill] sm:$0xff]  ;;  %v8286_v26 = vld [vmem:[%s11308_s9 + $0x20] sm:$0xff]  }
 0x7c6   :  { %6395 = vmatprep.subr.bf16.mxu0 %v10977_v13  ;;  %6438 = vmatprep.subr.bf16.mxu1 %v10982_v37  ;;  %v5878_v17 = vmul.f32 %v8729_v55, %v11013_v45  ;;  %v11572_v13 = vld [vmem:[#allocation31_spill] sm:$0xff]  ;;  %v11573_v37 = vld [vmem:[#allocation32_spill] sm:$0xff]  ;;  %v11575_v45 = vld [vmem:[#allocation34_spill] sm:$0xff] }
 0x7c7   :  { %8732 = vtanh.f32 %v11175_v20  ;;  %v8731_v28 = vpop.eup %8730  ;;  %v8281_v3 = vld [vmem:[%s11307_s8 + $0x38] sm:$0xff]  }
 0x7c8   :  { %v11183_v7 = vadd.f32 %v5880_v14, %v5878_v17  ;;  %8734 = vrcp.f32 %v5870_v36 }
 0x7c9   :  { %6396 = vmatpush1.bf16.msra.mxu0 %v11568_v41  ;;  %6439 = vmatpush1.bf16.msra.mxu1 %v11569_v35 }
 0x7ca   :  { %6397 = vmatprep.subr.bf16.mxu0 %v11570_v5  ;;  %6440 = vmatprep.subr.bf16.mxu1 %v11571_v4  ;;  %8736 = vtanh.f32 %v11183_v7 }
 0x7cd   :  { %6398 = vmatpush1.bf16.msra.mxu0 %v11572_v13  ;;  %6441 = vmatpush1.bf16.msra.mxu1 %v11573_v37 }
 0x7ce   :  { %6399 = vmatprep.subr.bf16.mxu0 %v11574_v23  ;;  %6442 = vmatprep.subr.bf16.mxu1 %v11575_v45 }
 0x7d1   :  { %v8733_v0 = vpop.eup %8732  ;;  %6400 = vmatpush1.bf16.msra.mxu0 %v11576_v21  ;;  %6443 = vmatpush1.bf16.msra.mxu1 %v11577_v56 }
 0x7d2   :  { %6401 = vmatprep.subr.bf16.mxu0 %v11057_v10  ;;  %6444 = vmatprep.subr.bf16.mxu1 %v11578_v1  ;;  %v11198_v51 = vmul.f32 %v8733_v0, %v8731_v28  ;;  %v8735_v54 = vpop.eup %8734 }
 0x7d4   :  { %v5891_v27 = vmax.f32 %v11081_v30, %v11198_v51  ;;  %v8737_v18 = vpop.eup %8736 }
 0x7d5   :  { %6402 = vmatpush1.bf16.msra.mxu0 %v11069_v33  ;;  %6445 = vmatpush1.bf16.msra.mxu1 %v11074_v16  ;;  %v11204_v60 = vmul.f32 %v8737_v18, %v8735_v54  ;;  %v8275_v16 = vld [vmem:[%s11307_s8 + $0x8] sm:$0xff]   ;;  %v8276_v33 = vld [vmem:[%s11307_s8 + $0x10] sm:$0xff]  }
 0x7d6   :  { %7582 = vmatprep.subr.bf16.mxu1 %v8804_v52  ;;  %7562 = vmatprep.subr.bf16.mxu0 %v8804_v52 }
 0x7d7   :  { %v6194_v61 = vpack.c.bf16 %v11204_v60, %v11198_v51  ;;  %v5892_v10 = vmax.f32 %v11090_v32, %v11204_v60 }
 0x7d9   :  { %6420 = vmatmul.mubr.bf16.vlgmr.msra.gmra.mrb[32].mxu0 %v6194_v61  ;;  %6463 = vmatmul.mubr.bf16.vlgmr.msra.gmra.mrb[32].mxu1 %v6194_v61 }
 0x7da   :  { %7583 = vmatpush3.bf16.msra.mxu1 %v8274_v15  ;;  %7598 = vmatprep.mubr.msk.bf16.mxu1 %vm8805_vm1, %v8804_v52 }
 0x7db   :  { %7584 = vmatprep.subr.bf16.mxu1 %v8804_v52  ;;  %7578 = vmatprep.mubr.msk.bf16.mxu0 %vm8805_vm1, %v8804_v52 }
 0x7dc   :  { %7563 = vmatpush3.bf16.msra.mxu0 %v8282_v34 }
 0x7dd   :  { %7564 = vmatprep.subr.bf16.mxu0 %v8804_v52 }
 0x7de   :  { %7585 = vmatpush3.bf16.msra.mxu1 %v8275_v16 }
 0x7df   :  { %7586 = vmatprep.subr.bf16.mxu1 %v8804_v52 }
 0x7e0   :  { %7565 = vmatpush3.bf16.msra.mxu0 %v8283_v2 }
 0x7e1   :  { %7566 = vmatprep.subr.bf16.mxu0 %v8804_v52 }
 0x7e2   :  { %7587 = vmatpush3.bf16.msra.mxu1 %v8276_v33 }
 0x7e3   :  { %7588 = vmatprep.subr.bf16.mxu1 %v8804_v52 }
 0x7e4   :  { %7567 = vmatpush3.bf16.msra.mxu0 %v8284_v49 }
 0x7e5   :  { %7568 = vmatprep.subr.bf16.mxu0 %v8804_v52 }
 0x7e6   :  { %7589 = vmatpush3.bf16.msra.mxu1 %v8277_v38 }
 0x7e7   :  { %7590 = vmatprep.subr.bf16.mxu1 %v8804_v52 }
 0x7e8   :  { %7569 = vmatpush3.bf16.msra.mxu0 %v8285_v57 }
 0x7e9   :  { %7570 = vmatprep.subr.bf16.mxu0 %v8804_v52 }
 0x7ea   :  { %7591 = vmatpush3.bf16.msra.mxu1 %v8278_v6 }
 0x7eb   :  { %7592 = vmatprep.subr.bf16.mxu1 %v8804_v52 }
 0x7ec   :  { %7571 = vmatpush3.bf16.msra.mxu0 %v8286_v26 }
 0x7ed   :  { %7572 = vmatprep.subr.bf16.mxu0 %v8804_v52 }
 0x7ee   :  { %7593 = vmatpush3.bf16.msra.mxu1 %v8279_v25 }
 0x7ef   :  { %7594 = vmatprep.subr.bf16.mxu1 %v8804_v52 }
 0x7f0   :  { %7573 = vmatpush3.bf16.msra.mxu0 %v8287_v58 }
 0x7f1   :  { %7574 = vmatprep.subr.bf16.mxu0 %v8804_v52 }
 0x7f2   :  { %7595 = vmatpush3.bf16.msra.mxu1 %v8280_v59 }
 0x7f3   :  { %7596 = vmatprep.subr.bf16.mxu1 %v8804_v52 }
 0x7f4   :  { %7575 = vmatpush3.bf16.msra.mxu0 %v8288_v31 }
 0x7f5   :  { %7576 = vmatprep.subr.bf16.mxu0 %v8804_v52 }
 0x7f6   :  { %7597 = vmatpush3.bf16.msra.mxu1 %v8281_v3 }
 0x7f8   :  { %7577 = vmatpush3.bf16.msra.mxu0 %v8289_v53 }
 0x88b   :  { %v6142_v19 = vpop.f32.mrb[28].mxu0  ;;  %v6185_v43 = vpop.f32.mrb[28].mxu1 }
 0x88c   :  { %v7630_v12 = vadd.f32 %v6142_v19, %v11560_v48  ;;  %v6144_v14 = vpop.f32.mrb[29].mxu0  ;;  %v6187_v55 = vpop.f32.mrb[29].mxu1  ;;  %v7662_v21 = vadd.f32 %v6185_v43, %v9453_v47 }
 0x88d   :  { %v7631_v36 = vadd.f32 %v6144_v14, %v9439_v24  ;;  %v6146_v17 = vpop.f32.mrb[30].mxu0  ;;  %v6189_v41 = vpop.f32.mrb[30].mxu1  ;;  %v7663_v0 = vadd.f32 %v6187_v55, %v9448_v42 }
 0x88e   :  { %v7515_v35 = vmul.f32 -1.442695, %v7630_v12  ;;  %v7632_v5 = vadd.f32 %v6146_v17, %v11560_v48  ;;  %v6148_v4 = vpop.f32.mrb[31].mxu0  ;;  %v6191_v13 = vpop.f32.mrb[31].mxu1  ;;  %v7664_v48 = vadd.f32 %v6189_v41, %v9453_v47 }
 0x88f   :  { %v7517_v37 = vmul.f32 -1.442695, %v7631_v36  ;;  %v7633_v23 = vadd.f32 %v6148_v4, %v9439_v24  ;;  %v7519_v56 = vmul.f32 -1.442695, %v7663_v0  ;;  %v7665_v1 = vadd.f32 %v6191_v13, %v9448_v42 }
 0x890   :  { %8738 = vpow2.f32 %v7515_v35  ;;  %v7516_v45 = vmul.f32 -1.442695, %v7632_v5 }
 0x891   :  { %8740 = vpow2.f32 %v7517_v37  ;;  %v7518_v28 = vmul.f32 -1.442695, %v7633_v23  ;;  %v7520_v24 = vmul.f32 -1.442695, %v7665_v1 }
 0x892   :  { %8742 = vpow2.f32 %v7516_v45 }
 0x893   :  { %8744 = vpow2.f32 %v7518_v28 }
 0x894   :  { %8746 = vtanh.f32 %v7662_v21 }
 0x895   :  { %8748 = vpow2.f32 %v7519_v56 }
 0x896   :  { %8750 = vtanh.f32 %v7664_v48 }
 0x89a   :  { %v8739_v54 = vpop.eup %8738 }
 0x89b   :  { %v8741_v18 = vpop.eup %8740  ;;  %v6487_v61 = vadd.f32 1.0, %v8739_v54 }
 0x89c   :  { %v6499_v15 = vadd.f32 1.0, %v8741_v18  ;;  %v8743_v52 = vpop.eup %8742 }
 0x89d   :  { %8752 = vrcp.f32 %v6487_v61  ;;  %v6488_v16 = vadd.f32 1.0, %v8743_v52  ;;  %v8745_v33 = vpop.eup %8744 }
 0x89e   :  { %8754 = vrcp.f32 %v6499_v15  ;;  %v6500_v38 = vadd.f32 1.0, %v8745_v33  ;;  %v8747_v42 = vpop.eup %8746 }
 0x89f   :  { %8756 = vpow2.f32 %v7520_v24  ;;  %v8749_v6 = vpop.eup %8748 }
 0x8a0   :  { %8758 = vrcp.f32 %v6488_v16  ;;  %v8751_v47 = vpop.eup %8750  ;;  %v6513_v34 = vadd.f32 1.0, %v8749_v6 }
 0x8a1   :  { %8760 = vrcp.f32 %v6500_v38 }
 0x8a2   :  { %8762 = vrcp.f32 %v6513_v34 }
 0x8a7   :  { %v8753_v25 = vpop.eup %8752 }
 0x8a8   :  { %v8755_v59 = vpop.eup %8754  ;;  %v6523_v3 = vmul.f32 %v8753_v25, %v8747_v42 }
 0x8a9   :  { %v8757_v2 = vpop.eup %8756  ;;  %v6521_v49 = vmul.f32 %v8755_v59, %v11135_v8 }
 0x8aa   :  { %v8759_v57 = vpop.eup %8758  ;;  %v6514_v53 = vadd.f32 1.0, %v8757_v2 }
 0x8ab   :  { %v6525_v26 = vadd.f32 %v6523_v3, %v6521_v49  ;;  %v6524_v58 = vmul.f32 %v8759_v57, %v8751_v47  ;;  %v8761_v31 = vpop.eup %8760 }
 0x8ac   :  { %v6522_v19 = vmul.f32 %v8761_v31, %v11140_v11  ;;  %v6421_v43 = vpop.f32.mrb[32].mxu0  ;;  %v6464_v12 = vpop.f32.mrb[32].mxu1 }
 0x8ad   :  { %8764 = vtanh.f32 %v6525_v26  ;;  %v7666_v14 = vadd.f32 %v6421_v43, %v11561_v50  ;;  %v6423_v55 = vpop.f32.mrb[33].mxu0  ;;  %v6466_v36 = vpop.f32.mrb[33].mxu1  ;;  %v7698_v1 = vadd.f32 %v6464_v12, %v9482_v44 }
 0x8ae   :  { %v6526_v17 = vadd.f32 %v6524_v58, %v6522_v19  ;;  %v7667_v41 = vadd.f32 %v6423_v55, %v9464_v46  ;;  %v6425_v35 = vpop.f32.mrb[34].mxu0  ;;  %v6468_v8 = vpop.f32.mrb[34].mxu1  ;;  %8766 = vrcp.f32 %v6514_v53  ;;  %v7699_v0 = vadd.f32 %v6466_v36, %v9477_v39 }
 0x8af   :  { %v7521_v5 = vmul.f32 -1.442695, %v7666_v14  ;;  %v7668_v4 = vadd.f32 %v6425_v35, %v11561_v50  ;;  %v6427_v13 = vpop.f32.mrb[35].mxu0  ;;  %v6470_v37 = vpop.f32.mrb[35].mxu1  ;;  %v7700_v61 = vadd.f32 %v6468_v8, %v9482_v44 }
 0x8b0   :  { %8768 = vtanh.f32 %v6526_v17  ;;  %v7523_v23 = vmul.f32 -1.442695, %v7667_v41  ;;  %v7669_v11 = vadd.f32 %v6427_v13, %v9464_v46  ;;  %v8763_v21 = vpop.eup %8762  ;;  %v7525_v50 = vmul.f32 -1.442695, %v7699_v0 }
 0x8b1   :  { %8770 = vpow2.f32 %v7521_v5  ;;  %v7522_v45 = vmul.f32 -1.442695, %v7668_v4  ;;  %v7701_v54 = vadd.f32 %v6470_v37, %v9477_v39  ;;  %v7543_v37 = vld [vmem:[%s11309_s10] ss:$0 sm:$0xff] }
 0x8b2   :  { %8772 = vpow2.f32 %v7523_v23  ;;  %v7524_v28 = vmul.f32 -1.442695, %v7669_v11 }
 0x8b3   :  { %8774 = vpow2.f32 %v7522_v45  ;;  %v7526_v38 = vmul.f32 -1.442695, %v7701_v54 }
 0x8b4   :  { %8776 = vpow2.f32 %v7524_v28 }
 0x8b5   :  { %8778 = vtanh.f32 %v7698_v1 }
 0x8b6   :  { %8780 = vpow2.f32 %v7525_v50 }
 0x8b7   :  { %v8765_v56 = vpop.eup %8764  ;;  %8782 = vtanh.f32 %v7700_v61 }
 0x8b8   :  { %v6531_v48 = vmul.f32 %v8765_v56, %v8763_v21  ;;  %v8767_v18 = vpop.eup %8766 }
 0x8ba   :  { %v6535_v46 = vmax.f32 %v5825_v29, %v6531_v48  ;;  %v8769_v24 = vpop.eup %8768 }
 0x8bb   :  { %v8771_v15 = vpop.eup %8770  ;;  %v6532_v52 = vmul.f32 %v8769_v24, %v8767_v18 }
 0x8bc   :  { %v8773_v16 = vpop.eup %8772  ;;  %v6553_v33 = vadd.f32 1.0, %v8771_v15 }
 0x8bd   :  { %v6565_v42 = vadd.f32 1.0, %v8773_v16  ;;  %v6536_v39 = vmax.f32 %v5826_v62, %v6532_v52  ;;  %v8775_v6 = vpop.eup %8774 }
 0x8be   :  { %8784 = vrcp.f32 %v6553_v33  ;;  %v6554_v44 = vadd.f32 1.0, %v8775_v6  ;;  %v8777_v63 = vpop.eup %8776 }
 0x8bf   :  { %8786 = vrcp.f32 %v6565_v42  ;;  %v6614_v22 = vpack.c.bf16 %v6536_v39, %v6535_v46  ;;  %v6566_v29 = vadd.f32 1.0, %v8777_v63  ;;  %v8779_v47 = vpop.eup %8778 }
 0x8c0   :  { %8788 = vpow2.f32 %v7526_v38  ;;  %v8781_v25 = vpop.eup %8780 }
 0x8c1   :  { %8790 = vrcp.f32 %v6554_v44  ;;  %7599 = vmatmul.mubr.bf16.vlgmr.msra.gmra.mrb[64].mxu1 %v6614_v22  ;;  %v8783_v59 = vpop.eup %8782  ;;  %v6579_v49 = vadd.f32 1.0, %v8781_v25 }
 0x8c2   :  { %8792 = vrcp.f32 %v6566_v29 }
 0x8c3   :  { %8794 = vrcp.f32 %v6579_v49 }
 0x8c8   :  { %v8785_v3 = vpop.eup %8784 }
 0x8c9   :  { %v8787_v34 = vpop.eup %8786  ;;  %v6589_v2 = vmul.f32 %v8785_v3, %v8779_v47 }
 0x8ca   :  { %v8789_v9 = vpop.eup %8788  ;;  %v6587_v40 = vmul.f32 %v8787_v34, %v11175_v20 }
 0x8cb   :  { %v8791_v62 = vpop.eup %8790  ;;  %v6580_v31 = vadd.f32 1.0, %v8789_v9 }
 0x8cc   :  { %v6591_v57 = vadd.f32 %v6589_v2, %v6587_v40  ;;  %v6590_v26 = vmul.f32 %v8791_v62, %v8783_v59  ;;  %v8793_v58 = vpop.eup %8792 }
 0x8cd   :  { %v6588_v53 = vmul.f32 %v8793_v58, %v11183_v7  ;;  %v8795_v43 = vpop.eup %8794 }
 0x8ce   :  { %8796 = vtanh.f32 %v6591_v57 }
 0x8cf   :  { %v6592_v19 = vadd.f32 %v6590_v26, %v6588_v53  ;;  %8798 = vrcp.f32 %v6580_v31 }
 0x8d1   :  { %8800 = vtanh.f32 %v6592_v19 }
 0x8d8   :  { %v8797_v12 = vpop.eup %8796 }
 0x8d9   :  { %v6597_v14 = vmul.f32 %v8797_v12, %v8795_v43  ;;  %v8799_v55 = vpop.eup %8798 }
 0x8db   :  { %v6601_v20 = vmax.f32 %v5891_v27, %v6597_v14  ;;  %v8801_v36 = vpop.eup %8800 }
 0x8dc   :  { %v6598_v17 = vmul.f32 %v8801_v36, %v8799_v55 }
 0x8de   :  { %v6602_v41 = vmax.f32 %v5892_v10, %v6598_v17 }
 0x8e0   :  { %v6633_v35 = vpack.c.bf16 %v6602_v41, %v6601_v20 }
 0x8e2   :  { %7579 = vmatmul.mubr.bf16.vlgmr.msra.gmra.mrb[64].mxu0 %v6633_v35 }
 0x994   :  { %v6821_v7 = vpop.f32.mrb[64].mxu1 }
 0x995   :  { %v7600_v8 = vpop.f32.mrb[65].mxu1 }
 0x996   :  { %v6824_v5 = vpop.f32.mrb[66].mxu1 }
 0x997   :  { %v7601_v4 = vpop.f32.mrb[67].mxu1 }
 0x9b5   :  { %v6732_v13 = vpop.f32.mrb[64].mxu0 }
 0x9b6   :  { %v6822_v23 = vadd.f32 %v6821_v7, %v6732_v13  ;;  %v7580_v30 = vpop.f32.mrb[65].mxu0 }
 0x9b7   :  { %v6735_v51 = vpop.f32.mrb[66].mxu0 }
 0x9b8   :  { %v6835_v27 = vadd.f32 %v7543_v37, %v6822_v23  ;;  %v6825_v11 = vadd.f32 %v6824_v5, %v6735_v51  ;;  %v7581_v45 = vpop.f32.mrb[67].mxu0 }
 0x9ba   :  { %6837 = vst [vmem:[%s11310_s11] sm:$0xff] %v6835_v27  ;;  %v6836_v32 = vadd.f32 %v7543_v37, %v6825_v11 }
 0x9bc   :  { %6838 = vst [vmem:[%s11310_s11 + $0x8] sm:$0xff] %v6836_v32 }

</bundles_post_ra>
